<compile_context>
chip_gen: v5e
topology: v5e:2x2
jax: 0.10.0
libtpu: 0.0.40
codegen_flags: <defaults>
</compile_context>

<pallas_src>
import numpy as np

import jax
import jax.numpy as jnp
from jax.experimental import pallas as pl
from jax.experimental.pallas import tpu as pltpu


# ----------------------------------------------------------------------------
# In-kernel helpers (shared by both kernels)
# ----------------------------------------------------------------------------

def _conv3_stage(x_bf, r_ref, m_ref):
    """3x3 conv stage: sum_kh (R_kh @ x) @ M_kh  ->  f32 pre-activation."""
    acc = None
    for kh in range(3):
        rows = jnp.dot(r_ref[kh], x_bf, preferred_element_type=jnp.float32)
        rows = rows.astype(jnp.bfloat16)          # one-hot selection -> exact
        part = jnp.dot(rows, m_ref[kh], preferred_element_type=jnp.float32)
        acc = part if acc is None else acc + part
    return acc


def _bias_relu_bf16(acc_f32, b_ref):
    """f32 bias + ReLU epilogue, then cast to bf16 for the next matmul."""
    return jnp.maximum(acc_f32 + b_ref[...], 0.0).astype(jnp.bfloat16)


def _backbone(x_bf, r1, m1, b1, r2, m2, b2, r3, m3, b3, r4, m4, b4):
    c1 = _bias_relu_bf16(_conv3_stage(x_bf, r1, m1), b1)   # (16, 128)  16x16x8
    l1 = _bias_relu_bf16(_conv3_stage(c1, r2, m2), b2)     # ( 8, 128)   8x8x16
    l2 = _bias_relu_bf16(_conv3_stage(l1, r3, m3), b3)     # ( 4, 128)   4x4x32
    l3 = _bias_relu_bf16(_conv3_stage(l2, r4, m4), b4)     # ( 4, 128)   4x4x32
    return c1, l1, l2, l3


# ----------------------------------------------------------------------------
# Pallas kernels
# ----------------------------------------------------------------------------

def _ref_kernel(x_ref, wm_ref,
                r1, m1, b1, r2, m2, b2, r3, m3, b3, r4, m4, b4,
                p_ref, o_ref):
    """Reference branch: backbone -> bbox-weighted pooled kernel (1, 128)."""
    x = x_ref[0].astype(jnp.bfloat16)                          # (32, 96)
    _, _, _, l3 = _backbone(x, r1, m1, b1, r2, m2, b2, r3, m3, b3, r4, m4, b4)
    prod = l3.astype(jnp.float32) * wm_ref[0]                  # (4, 128) f32
    rs = jnp.sum(prod, axis=0, keepdims=True)                  # (1, 128)
    # P tiles the per-channel pooled values back across the W lanes.
    o_ref[0] = jnp.dot(rs, p_ref[...], preferred_element_type=jnp.float32)


def _test_kernel(x_ref, rk_ref,
                 r1, m1, b1, r2, m2, b2, r3, m3, b3, r4, m4, b4,
                 madj, badj,
                 rm3, mm3, bm3,
                 rp2, mp2, mp2s, bp2,
                 rp1, mp1, mp1s, bp1,
                 rp0, mp0, mp0s, bp0,
                 rmk, mmk, bmk,
                 ur32, uc32,
                 o_ref):
    """Test branch: backbone + neck(corr*adjust) + fused mask head -> (32,32)."""
    x = x_ref[0].astype(jnp.bfloat16)                          # (32, 96)
    c1, l1, l2, l3 = _backbone(x, r1, m1, b1, r2, m2, b2, r3, m3, b3,
                               r4, m4, b4)

    # Neck: per-channel correlation with ref kernel, fused with 1x1 adjust conv.
    corr = (l3.astype(jnp.float32) * rk_ref[0]).astype(jnp.bfloat16)   # (4,128)
    fus = _bias_relu_bf16(
        jnp.dot(corr, madj[...], preferred_element_type=jnp.float32), badj)

    # Mask head (skip pairs fused into one epilogue, upsamples folded into R/M).
    m3f = _bias_relu_bf16(_conv3_stage(fus, rm3, mm3), bm3)            # (4,128)
    p2 = _bias_relu_bf16(
        _conv3_stage(m3f, rp2, mp2)
        + jnp.dot(l2, mp2s[...], preferred_element_type=jnp.float32), bp2)   # (4,128)
    p1 = _bias_relu_bf16(
        _conv3_stage(p2, rp1, mp1)          # x2 upsample folded into rp1/mp1
        + jnp.dot(l1, mp1s[...], preferred_element_type=jnp.float32), bp1)   # (8,128)
    p0 = _bias_relu_bf16(
        _conv3_stage(p1, rp0, mp0)          # x2 upsample folded into rp0/mp0
        + jnp.dot(c1, mp0s[...], preferred_element_type=jnp.float32), bp0)   # (16,128)

    mk16 = _conv3_stage(p0, rmk, mmk) + bmk[...]                        # (16,16) f32
    # Final nearest-neighbor x2 upsample as two tiny f32 one-hot matmuls.
    up = jnp.dot(ur32[...], mk16, preferred_element_type=jnp.float32)   # (32,16)
    o_ref[0] = jnp.dot(up, uc32[...], preferred_element_type=jnp.float32)  # (32,32)


# ----------------------------------------------------------------------------
# pallas_call wrappers
# ----------------------------------------------------------------------------

_REF_W_ORDER = ("r1", "m1", "b1", "r2", "m2", "b2", "r3", "m3", "b3",
                "r4", "m4", "b4", "P")

_TEST_W_ORDER = ("r1", "m1", "b1", "r2", "m2", "b2", "r3", "m3", "b3",
                 "r4", "m4", "b4",
                 "madj", "badj",
                 "rm3", "mm3", "bm3",
                 "rp2", "mp2", "mp2s", "bp2",
                 "rp1", "mp1", "mp1s", "bp1",
                 "rp0", "mp0", "mp0s", "bp0",
                 "rmk", "mmk", "bmk",
                 "ur32", "uc32")


def _bcast_spec(a):
    nd = a.ndim
    return pl.BlockSpec(a.shape, lambda i, nd=nd: (0,) * nd)


def _batch_spec(a):
    nd = a.ndim
    return pl.BlockSpec((1,) + a.shape[1:], lambda i, nd=nd: (i,) + (0,) * (nd - 1))


def _run_ref(x, wmask, fw):
    n = x.shape[0]
    warr = [fw[k] for k in _REF_W_ORDER]
    return pl.pallas_call(
        _ref_kernel,
        out_shape=jax.ShapeDtypeStruct((n, 1, 128), jnp.float32),
        grid=(n,),
        in_specs=[_batch_spec(x), _batch_spec(wmask)] + [_bcast_spec(a) for a in warr],
        out_specs=pl.BlockSpec((1, 1, 128), lambda i: (i, 0, 0)),
        compiler_params=pltpu.CompilerParams(dimension_semantics=("parallel",)),
    )(x, wmask, *warr)


def _run_test(x, ref_row, fw):
    n = x.shape[0]
    h = x.shape[1]
    warr = [fw[k] for k in _TEST_W_ORDER]
    return pl.pallas_call(
        _test_kernel,
        out_shape=jax.ShapeDtypeStruct((n, h, h), jnp.float32),
        grid=(n,),
        in_specs=[_batch_spec(x), _batch_spec(ref_row)] + [_bcast_spec(a) for a in warr],
        out_specs=pl.BlockSpec((1, h, h), lambda i: (i, 0, 0)),
        compiler_params=pltpu.CompilerParams(dimension_semantics=("parallel",)),
    )(x, ref_row, *warr)


# ----------------------------------------------------------------------------
# Weight folding: convs -> (row-select R, lane-map M, bias-row) matrices
# ----------------------------------------------------------------------------

def _up_rows(hprev):
    u = np.zeros((2 * hprev, hprev), np.float32)
    for h in range(2 * hprev):
        u[h, h // 2] = 1.0
    return u


def _up_cols(wprev, c):
    u = np.zeros((wprev * c, 2 * wprev * c), np.float32)
    for w in range(2 * wprev):
        for ci in range(c):
            u[(w // 2) * c + ci, w * c + ci] = 1.0
    return u


def _fold_conv3(w, b, hin, win, stride):
    """3x3 conv, pad=1.  Returns R (3,Hout,Hin), M (3,Win*Cin,Wout*Cout), brow."""
    _, _, cin, cout = w.shape
    hout = (hin + 2 - 3) // stride + 1
    wout = (win + 2 - 3) // stride + 1
    R = np.zeros((3, hout, hin), np.float32)
    for kh in range(3):
        for ho in range(hout):
            h = stride * ho + kh - 1
            if 0 <= h < hin:
                R[kh, ho, h] = 1.0
    T = np.zeros((win, wout, 3), np.float32)
    for wo in range(wout):
        for kw in range(3):
            wi = stride * wo + kw - 1
            if 0 <= wi < win:
                T[wi, wo, kw] = 1.0
    M = jnp.einsum('xyk,hkio->hxiyo', jnp.asarray(T), w)
    M = M.reshape(3, win * cin, wout * cout)
    brow = jnp.tile(b, wout)[None, :]
    return jnp.asarray(R), M, brow


def _fold_conv1(w, b, wsp):
    """1x1 conv as a block-diagonal lane->lane matrix."""
    cin, cout = w.shape[2], w.shape[3]
    eye = jnp.asarray(np.eye(wsp, dtype=np.float32))
    M = jnp.einsum('xy,io->xiyo', eye, w[0, 0]).reshape(wsp * cin, wsp * cout)
    brow = jnp.tile(b, wsp)[None, :]
    return M, brow


def fold_params(p):
    bf = jnp.bfloat16
    f = {}
    # Backbone (input 32x32x3).
    for name, hin, stride, rk, mk, bk in (('conv1', 32, 2, 'r1', 'm1', 'b1'),
                                          ('layer1', 16, 2, 'r2', 'm2', 'b2'),
                                          ('layer2', 8, 2, 'r3', 'm3', 'b3'),
                                          ('layer3', 4, 1, 'r4', 'm4', 'b4')):
        w, b = p[name]
        R, M, brow = _fold_conv3(w, b, hin, hin, stride)
        f[rk], f[mk], f[bk] = R.astype(bf), M.astype(bf), brow
    # Neck adjust 1x1 at 4x4.
    M, brow = _fold_conv1(*p['adjust'], 4)
    f['madj'], f['badj'] = M.astype(bf), brow
    # m3 conv at 4x4.
    R, M, brow = _fold_conv3(*p['m3'], 4, 4, 1)
    f['rm3'], f['mm3'], f['bm3'] = R.astype(bf), M.astype(bf), brow
    # p2: 3x3 (32->32) + skip 1x1 (32->32) at 4x4, biases fused.
    R, M, bm = _fold_conv3(*p['p2_m'], 4, 4, 1)
    Ms, bs = _fold_conv1(*p['p2_s'], 4)
    f['rp2'], f['mp2'], f['mp2s'], f['bp2'] = R.astype(bf), M.astype(bf), Ms.astype(bf), bm + bs
    # p1: 3x3 (32->16) at 8x8 on x2-upsampled p2 (upsample folded in) + skip 1x1 (16->16).
    R, M, bm = _fold_conv3(*p['p1_m'], 8, 8, 1)
    Rf = jnp.matmul(R, jnp.asarray(_up_rows(4)))            # (3, 8, 4)
    Mf = jnp.matmul(jnp.asarray(_up_cols(4, 32)), M)        # (3, 128, 128)
    Ms, bs = _fold_conv1(*p['p1_s'], 8)
    f['rp1'], f['mp1'], f['mp1s'], f['bp1'] = Rf.astype(bf), Mf.astype(bf), Ms.astype(bf), bm + bs
    # p0: 3x3 (16->8) at 16x16 on x2-upsampled p1 (upsample folded in) + skip 1x1 (8->8).
    R, M, bm = _fold_conv3(*p['p0_m'], 16, 16, 1)
    Rf = jnp.matmul(R, jnp.asarray(_up_rows(8)))            # (3, 16, 8)
    Mf = jnp.matmul(jnp.asarray(_up_cols(8, 16)), M)        # (3, 128, 128)
    Ms, bs = _fold_conv1(*p['p0_s'], 16)
    f['rp0'], f['mp0'], f['mp0s'], f['bp0'] = Rf.astype(bf), Mf.astype(bf), Ms.astype(bf), bm + bs
    # mask_pred: 3x3 (8->1) at 16x16.
    R, M, brow = _fold_conv3(*p['mask_pred'], 16, 16, 1)
    f['rmk'], f['mmk'], f['bmk'] = R.astype(bf), M.astype(bf), brow
    # Final x2 upsample (16x16 -> 32x32) as one-hot matrices (kept f32).
    f['ur32'] = jnp.asarray(_up_rows(16))                   # (32, 16)
    uc = np.zeros((16, 32), np.float32)
    for c2 in range(32):
        uc[c2 // 2, c2] = 1.0
    f['uc32'] = jnp.asarray(uc)                             # (16, 32)
    # Ref-pool channel tiling matrix: P[w*32+c, w'*32+c'] = (c == c').
    f['P'] = jnp.asarray(np.tile(np.eye(32, dtype=np.float32), (4, 4)))
    return f


# ----------------------------------------------------------------------------
# Parameter init (same deterministic synthetic params as before)
# ----------------------------------------------------------------------------

def init_conv(key, kh, kw, cin, cout):
    k1, k2 = jax.random.split(key)
    scale = 1.0 / jnp.sqrt(float(kh * kw * cin))
    w = jax.random.normal(k1, (kh, kw, cin, cout), jnp.float32) * scale
    b = jax.random.normal(k2, (cout,), jnp.float32) * 0.01
    return w, b


def init_params(key):
    keys = jax.random.split(key, 12)
    p = {}
    p['conv1'] = init_conv(keys[0], 3, 3, 3, 8)     # stride 2
    p['layer1'] = init_conv(keys[1], 3, 3, 8, 16)   # stride 2
    p['layer2'] = init_conv(keys[2], 3, 3, 16, 32)  # stride 2
    p['layer3'] = init_conv(keys[3], 3, 3, 32, 32)  # stride 1
    p['adjust'] = init_conv(keys[4], 1, 1, 32, 32)
    p['m3'] = init_conv(keys[5], 3, 3, 32, 32)
    p['p2_m'] = init_conv(keys[6], 3, 3, 32, 32)
    p['p2_s'] = init_conv(keys[7], 1, 1, 32, 32)
    p['p1_m'] = init_conv(keys[8], 3, 3, 32, 16)
    p['p1_s'] = init_conv(keys[9], 1, 1, 16, 16)
    p['p0_m'] = init_conv(keys[10], 3, 3, 16, 8)
    p['p0_s'] = init_conv(keys[11], 1, 1, 8, 8)
    p['mask_pred'] = init_conv(jax.random.fold_in(key, 99), 3, 3, 8, 1)
    return p


# ----------------------------------------------------------------------------
# SEmask_fine forward (functional wrapper)
# ----------------------------------------------------------------------------

def _build_wmask(bb, hf, c, img_size):
    """Normalized bbox cell-center mask, lane-tiled over channels: (N,hf,hf*c)."""
    s = img_size / hf
    centers = (jnp.arange(hf, dtype=jnp.float32) + 0.5) * s
    cy = centers[None, :, None]
    cx = centers[None, None, :]
    x0 = bb[:, 0][:, None, None]
    y0 = bb[:, 1][:, None, None]
    x1 = x0 + bb[:, 2][:, None, None]
    y1 = y0 + bb[:, 3][:, None, None]
    m = ((cx >= x0) & (cx < x1) & (cy >= y0) & (cy < y1)).astype(jnp.float32)
    cnt = jnp.sum(m, axis=(1, 2), keepdims=True)
    m = m / jnp.maximum(cnt, 1.0)
    return jnp.repeat(m, c, axis=2)


def semask_fine_forward(folded, train_imgs, test_imgs, train_bb):
    """train_imgs/test_imgs: (T, B, 3, H, W) NCHW; train_bb: (T, B, 4) x,y,w,h."""
    H = train_imgs.shape[-1]

    # ---- forward_ref ----
    tr = train_imgs.reshape((-1,) + train_imgs.shape[-3:])
    tr = jnp.transpose(tr, (0, 2, 3, 1)).reshape(tr.shape[0], H, -1)   # (N, H, W*3)
    bb = train_bb.reshape(-1, 4)
    wmask = _build_wmask(bb, hf=4, c=32, img_size=float(H))            # (N, 4, 128)
    ref_row = _run_ref(tr, wmask, folded)                              # (N, 1, 128)

    # ---- forward_test ----
    te = test_imgs.reshape((-1,) + test_imgs.shape[-3:])
    te = jnp.transpose(te, (0, 2, 3, 1)).reshape(te.shape[0], H, -1)
    mask = _run_test(te, ref_row, folded)                              # (N, H, W)
    return {'mask': mask.reshape(mask.shape[0], 1, H, H)}              # NCHW


# ----------------------------------------------------------------------------
# Main
# ----------------------------------------------------------------------------

if __name__ == "__main__":
    key = jax.random.PRNGKey(0)
    k_tr, k_te = jax.random.split(key)

    T, B, H, W = 1, 2, 32, 32
    train_imgs = jax.random.normal(k_tr, (T, B, 3, H, W), jnp.float32)
    test_imgs = jax.random.normal(k_te, (T, B, 3, H, W), jnp.float32)
    train_bb = jnp.array([[[8.0, 8.0, 16.0, 16.0],
                           [4.0, 4.0, 20.0, 24.0]]], jnp.float32)   # (T,B,4) x,y,w,h

    params = init_params(jax.random.PRNGKey(1))
    folded = fold_params(params)          # one-time weight preprocessing

    fwd = jax.jit(semask_fine_forward)
    out = fwd(folded, train_imgs, test_imgs, train_bb)
    mask = jax.block_until_ready(out['mask'])

    assert mask.shape == (T * B, 1, H, W)
    assert bool(jnp.all(jnp.isfinite(mask)))
    print("KERNEL_OK")
</pallas_src>

<mosaic_0001>
module attributes {stable_mosaic.version = 11 : i64} {
  func.func @_ref_kernel(%arg0: i32, %arg1: memref<1x32x96xf32, #tpu.memory_space<vmem>>, %arg2: memref<1x4x128xf32, #tpu.memory_space<vmem>>, %arg3: memref<3x16x32xbf16, #tpu.memory_space<vmem>>, %arg4: memref<3x96x128xbf16, #tpu.memory_space<vmem>>, %arg5: memref<1x128xf32, #tpu.memory_space<vmem>>, %arg6: memref<3x8x16xbf16, #tpu.memory_space<vmem>>, %arg7: memref<3x128x128xbf16, #tpu.memory_space<vmem>>, %arg8: memref<1x128xf32, #tpu.memory_space<vmem>>, %arg9: memref<3x4x8xbf16, #tpu.memory_space<vmem>>, %arg10: memref<3x128x128xbf16, #tpu.memory_space<vmem>>, %arg11: memref<1x128xf32, #tpu.memory_space<vmem>>, %arg12: memref<3x4x4xbf16, #tpu.memory_space<vmem>>, %arg13: memref<3x128x128xbf16, #tpu.memory_space<vmem>>, %arg14: memref<1x128xf32, #tpu.memory_space<vmem>>, %arg15: memref<128x128xf32, #tpu.memory_space<vmem>>, %arg16: memref<1x1x128xf32, #tpu.memory_space<vmem>>) attributes {dimension_semantics = [#tpu.dimension_semantics<parallel>], iteration_bounds = array<i64: 2>, scalar_prefetch = 0 : i64, scratch_operands = 0 : i64, tpu.core_type = #tpu.core_type<tc>, window_params = [{transform_indices = @transform_0, window_bounds = array<i64: 1, 32, 96>}, {transform_indices = @transform_1, window_bounds = array<i64: 1, 4, 128>}, {pipeline_mode = #tpu.pipeline_mode<synchronous>, transform_indices = @transform_2, window_bounds = array<i64: 3, 16, 32>}, {pipeline_mode = #tpu.pipeline_mode<synchronous>, transform_indices = @transform_3, window_bounds = array<i64: 3, 96, 128>}, {pipeline_mode = #tpu.pipeline_mode<synchronous>, transform_indices = @transform_4, window_bounds = array<i64: 1, 128>}, {pipeline_mode = #tpu.pipeline_mode<synchronous>, transform_indices = @transform_5, window_bounds = array<i64: 3, 8, 16>}, {pipeline_mode = #tpu.pipeline_mode<synchronous>, transform_indices = @transform_6, window_bounds = array<i64: 3, 128, 128>}, {pipeline_mode = #tpu.pipeline_mode<synchronous>, transform_indices = @transform_7, window_bounds = array<i64: 1, 128>}, {pipeline_mode = #tpu.pipeline_mode<synchronous>, transform_indices = @transform_8, window_bounds = array<i64: 3, 4, 8>}, {pipeline_mode = #tpu.pipeline_mode<synchronous>, transform_indices = @transform_9, window_bounds = array<i64: 3, 128, 128>}, {pipeline_mode = #tpu.pipeline_mode<synchronous>, transform_indices = @transform_10, window_bounds = array<i64: 1, 128>}, {pipeline_mode = #tpu.pipeline_mode<synchronous>, transform_indices = @transform_11, window_bounds = array<i64: 3, 4, 4>}, {pipeline_mode = #tpu.pipeline_mode<synchronous>, transform_indices = @transform_12, window_bounds = array<i64: 3, 128, 128>}, {pipeline_mode = #tpu.pipeline_mode<synchronous>, transform_indices = @transform_13, window_bounds = array<i64: 1, 128>}, {pipeline_mode = #tpu.pipeline_mode<synchronous>, transform_indices = @transform_14, window_bounds = array<i64: 128, 128>}, {transform_indices = @transform_15, window_bounds = array<i64: 1, 1, 128>}]} {
    %c0 = arith.constant 0 : index
    %c0_0 = arith.constant 0 : index
    %c0_1 = arith.constant 0 : index
    %0 = vector.load %arg1[%c0, %c0_0, %c0_1] : memref<1x32x96xf32, #tpu.memory_space<vmem>>, vector<1x32x96xf32>
    %1 = vector.shape_cast %0 : vector<1x32x96xf32> to vector<32x96xf32>
    %2 = arith.truncf %1 : vector<32x96xf32> to vector<32x96xbf16>
    %c0_2 = arith.constant 0 : index
    %c0_3 = arith.constant 0 : index
    %c0_4 = arith.constant 0 : index
    %3 = vector.load %arg3[%c0_2, %c0_3, %c0_4] : memref<3x16x32xbf16, #tpu.memory_space<vmem>>, vector<1x16x32xbf16>
    %4 = vector.shape_cast %3 : vector<1x16x32xbf16> to vector<16x32xbf16>
    %cst = arith.constant dense<0.000000e+00> : vector<16x96xf32>
    %5 = tpu.matmul %4, %2, %cst {dimension_numbers = #tpu.dot_dimension_numbers<[1], [0], [0], [1], [0, 0, 1, 1], [], []>} : vector<16x32xbf16>, vector<32x96xbf16>, vector<16x96xf32> -> vector<16x96xf32>
    %6 = arith.truncf %5 : vector<16x96xf32> to vector<16x96xbf16>
    %c0_5 = arith.constant 0 : index
    %c0_6 = arith.constant 0 : index
    %c0_7 = arith.constant 0 : index
    %7 = vector.load %arg4[%c0_5, %c0_6, %c0_7] : memref<3x96x128xbf16, #tpu.memory_space<vmem>>, vector<1x96x128xbf16>
    %8 = vector.shape_cast %7 : vector<1x96x128xbf16> to vector<96x128xbf16>
    %cst_8 = arith.constant dense<0.000000e+00> : vector<16x128xf32>
    %9 = tpu.matmul %6, %8, %cst_8 {dimension_numbers = #tpu.dot_dimension_numbers<[1], [0], [0], [1], [0, 0, 1, 1], [], []>} : vector<16x96xbf16>, vector<96x128xbf16>, vector<16x128xf32> -> vector<16x128xf32>
    %c1 = arith.constant 1 : index
    %c0_9 = arith.constant 0 : index
    %c0_10 = arith.constant 0 : index
    %10 = vector.load %arg3[%c1, %c0_9, %c0_10] : memref<3x16x32xbf16, #tpu.memory_space<vmem>>, vector<1x16x32xbf16>
    %11 = vector.shape_cast %10 : vector<1x16x32xbf16> to vector<16x32xbf16>
    %cst_11 = arith.constant dense<0.000000e+00> : vector<16x96xf32>
    %12 = tpu.matmul %11, %2, %cst_11 {dimension_numbers = #tpu.dot_dimension_numbers<[1], [0], [0], [1], [0, 0, 1, 1], [], []>} : vector<16x32xbf16>, vector<32x96xbf16>, vector<16x96xf32> -> vector<16x96xf32>
    %13 = arith.truncf %12 : vector<16x96xf32> to vector<16x96xbf16>
    %c1_12 = arith.constant 1 : index
    %c0_13 = arith.constant 0 : index
    %c0_14 = arith.constant 0 : index
    %14 = vector.load %arg4[%c1_12, %c0_13, %c0_14] : memref<3x96x128xbf16, #tpu.memory_space<vmem>>, vector<1x96x128xbf16>
    %15 = vector.shape_cast %14 : vector<1x96x128xbf16> to vector<96x128xbf16>
    %cst_15 = arith.constant dense<0.000000e+00> : vector<16x128xf32>
    %16 = tpu.matmul %13, %15, %cst_15 {dimension_numbers = #tpu.dot_dimension_numbers<[1], [0], [0], [1], [0, 0, 1, 1], [], []>} : vector<16x96xbf16>, vector<96x128xbf16>, vector<16x128xf32> -> vector<16x128xf32>
    %17 = arith.addf %9, %16 : vector<16x128xf32>
    %c2 = arith.constant 2 : index
    %c0_16 = arith.constant 0 : index
    %c0_17 = arith.constant 0 : index
    %18 = vector.load %arg3[%c2, %c0_16, %c0_17] : memref<3x16x32xbf16, #tpu.memory_space<vmem>>, vector<1x16x32xbf16>
    %19 = vector.shape_cast %18 : vector<1x16x32xbf16> to vector<16x32xbf16>
    %cst_18 = arith.constant dense<0.000000e+00> : vector<16x96xf32>
    %20 = tpu.matmul %19, %2, %cst_18 {dimension_numbers = #tpu.dot_dimension_numbers<[1], [0], [0], [1], [0, 0, 1, 1], [], []>} : vector<16x32xbf16>, vector<32x96xbf16>, vector<16x96xf32> -> vector<16x96xf32>
    %21 = arith.truncf %20 : vector<16x96xf32> to vector<16x96xbf16>
    %c2_19 = arith.constant 2 : index
    %c0_20 = arith.constant 0 : index
    %c0_21 = arith.constant 0 : index
    %22 = vector.load %arg4[%c2_19, %c0_20, %c0_21] : memref<3x96x128xbf16, #tpu.memory_space<vmem>>, vector<1x96x128xbf16>
    %23 = vector.shape_cast %22 : vector<1x96x128xbf16> to vector<96x128xbf16>
    %cst_22 = arith.constant dense<0.000000e+00> : vector<16x128xf32>
    %24 = tpu.matmul %21, %23, %cst_22 {dimension_numbers = #tpu.dot_dimension_numbers<[1], [0], [0], [1], [0, 0, 1, 1], [], []>} : vector<16x96xbf16>, vector<96x128xbf16>, vector<16x128xf32> -> vector<16x128xf32>
    %25 = arith.addf %17, %24 : vector<16x128xf32>
    %c0_23 = arith.constant 0 : index
    %c0_24 = arith.constant 0 : index
    %26 = vector.load %arg5[%c0_23, %c0_24] : memref<1x128xf32, #tpu.memory_space<vmem>>, vector<1x128xf32>
    %27 = vector.broadcast %26 : vector<1x128xf32> to vector<16x128xf32>
    %28 = arith.addf %25, %27 : vector<16x128xf32>
    %cst_25 = arith.constant 0.000000e+00 : f32
    %29 = vector.broadcast %cst_25 : f32 to vector<16x128xf32>
    %30 = arith.maximumf %28, %29 : vector<16x128xf32>
    %31 = arith.truncf %30 : vector<16x128xf32> to vector<16x128xbf16>
    %c0_26 = arith.constant 0 : index
    %c0_27 = arith.constant 0 : index
    %c0_28 = arith.constant 0 : index
    %32 = vector.load %arg6[%c0_26, %c0_27, %c0_28] : memref<3x8x16xbf16, #tpu.memory_space<vmem>>, vector<1x8x16xbf16>
    %33 = vector.shape_cast %32 : vector<1x8x16xbf16> to vector<8x16xbf16>
    %cst_29 = arith.constant dense<0.000000e+00> : vector<8x128xf32>
    %34 = tpu.matmul %33, %31, %cst_29 {dimension_numbers = #tpu.dot_dimension_numbers<[1], [0], [0], [1], [0, 0, 1, 1], [], []>} : vector<8x16xbf16>, vector<16x128xbf16>, vector<8x128xf32> -> vector<8x128xf32>
    %35 = arith.truncf %34 : vector<8x128xf32> to vector<8x128xbf16>
    %c0_30 = arith.constant 0 : index
    %c0_31 = arith.constant 0 : index
    %c0_32 = arith.constant 0 : index
    %36 = vector.load %arg7[%c0_30, %c0_31, %c0_32] : memref<3x128x128xbf16, #tpu.memory_space<vmem>>, vector<1x128x128xbf16>
    %37 = vector.shape_cast %36 : vector<1x128x128xbf16> to vector<128x128xbf16>
    %cst_33 = arith.constant dense<0.000000e+00> : vector<8x128xf32>
    %38 = tpu.matmul %35, %37, %cst_33 {dimension_numbers = #tpu.dot_dimension_numbers<[1], [0], [0], [1], [0, 0, 1, 1], [], []>} : vector<8x128xbf16>, vector<128x128xbf16>, vector<8x128xf32> -> vector<8x128xf32>
    %c1_34 = arith.constant 1 : index
    %c0_35 = arith.constant 0 : index
    %c0_36 = arith.constant 0 : index
    %39 = vector.load %arg6[%c1_34, %c0_35, %c0_36] : memref<3x8x16xbf16, #tpu.memory_space<vmem>>, vector<1x8x16xbf16>
    %40 = vector.shape_cast %39 : vector<1x8x16xbf16> to vector<8x16xbf16>
    %cst_37 = arith.constant dense<0.000000e+00> : vector<8x128xf32>
    %41 = tpu.matmul %40, %31, %cst_37 {dimension_numbers = #tpu.dot_dimension_numbers<[1], [0], [0], [1], [0, 0, 1, 1], [], []>} : vector<8x16xbf16>, vector<16x128xbf16>, vector<8x128xf32> -> vector<8x128xf32>
    %42 = arith.truncf %41 : vector<8x128xf32> to vector<8x128xbf16>
    %c1_38 = arith.constant 1 : index
    %c0_39 = arith.constant 0 : index
    %c0_40 = arith.constant 0 : index
    %43 = vector.load %arg7[%c1_38, %c0_39, %c0_40] : memref<3x128x128xbf16, #tpu.memory_space<vmem>>, vector<1x128x128xbf16>
    %44 = vector.shape_cast %43 : vector<1x128x128xbf16> to vector<128x128xbf16>
    %cst_41 = arith.constant dense<0.000000e+00> : vector<8x128xf32>
    %45 = tpu.matmul %42, %44, %cst_41 {dimension_numbers = #tpu.dot_dimension_numbers<[1], [0], [0], [1], [0, 0, 1, 1], [], []>} : vector<8x128xbf16>, vector<128x128xbf16>, vector<8x128xf32> -> vector<8x128xf32>
    %46 = arith.addf %38, %45 : vector<8x128xf32>
    %c2_42 = arith.constant 2 : index
    %c0_43 = arith.constant 0 : index
    %c0_44 = arith.constant 0 : index
    %47 = vector.load %arg6[%c2_42, %c0_43, %c0_44] : memref<3x8x16xbf16, #tpu.memory_space<vmem>>, vector<1x8x16xbf16>
    %48 = vector.shape_cast %47 : vector<1x8x16xbf16> to vector<8x16xbf16>
    %cst_45 = arith.constant dense<0.000000e+00> : vector<8x128xf32>
    %49 = tpu.matmul %48, %31, %cst_45 {dimension_numbers = #tpu.dot_dimension_numbers<[1], [0], [0], [1], [0, 0, 1, 1], [], []>} : vector<8x16xbf16>, vector<16x128xbf16>, vector<8x128xf32> -> vector<8x128xf32>
    %50 = arith.truncf %49 : vector<8x128xf32> to vector<8x128xbf16>
    %c2_46 = arith.constant 2 : index
    %c0_47 = arith.constant 0 : index
    %c0_48 = arith.constant 0 : index
    %51 = vector.load %arg7[%c2_46, %c0_47, %c0_48] : memref<3x128x128xbf16, #tpu.memory_space<vmem>>, vector<1x128x128xbf16>
    %52 = vector.shape_cast %51 : vector<1x128x128xbf16> to vector<128x128xbf16>
    %cst_49 = arith.constant dense<0.000000e+00> : vector<8x128xf32>
    %53 = tpu.matmul %50, %52, %cst_49 {dimension_numbers = #tpu.dot_dimension_numbers<[1], [0], [0], [1], [0, 0, 1, 1], [], []>} : vector<8x128xbf16>, vector<128x128xbf16>, vector<8x128xf32> -> vector<8x128xf32>
    %54 = arith.addf %46, %53 : vector<8x128xf32>
    %c0_50 = arith.constant 0 : index
    %c0_51 = arith.constant 0 : index
    %55 = vector.load %arg8[%c0_50, %c0_51] : memref<1x128xf32, #tpu.memory_space<vmem>>, vector<1x128xf32>
    %56 = vector.broadcast %55 : vector<1x128xf32> to vector<8x128xf32>
    %57 = arith.addf %54, %56 : vector<8x128xf32>
    %cst_52 = arith.constant 0.000000e+00 : f32
    %58 = vector.broadcast %cst_52 : f32 to vector<8x128xf32>
    %59 = arith.maximumf %57, %58 : vector<8x128xf32>
    %60 = arith.truncf %59 : vector<8x128xf32> to vector<8x128xbf16>
    %c0_53 = arith.constant 0 : index
    %c0_54 = arith.constant 0 : index
    %c0_55 = arith.constant 0 : index
    %61 = vector.load %arg9[%c0_53, %c0_54, %c0_55] : memref<3x4x8xbf16, #tpu.memory_space<vmem>>, vector<1x4x8xbf16>
    %62 = vector.shape_cast %61 : vector<1x4x8xbf16> to vector<4x8xbf16>
    %cst_56 = arith.constant dense<0.000000e+00> : vector<4x128xf32>
    %63 = tpu.matmul %62, %60, %cst_56 {dimension_numbers = #tpu.dot_dimension_numbers<[1], [0], [0], [1], [0, 0, 1, 1], [], []>} : vector<4x8xbf16>, vector<8x128xbf16>, vector<4x128xf32> -> vector<4x128xf32>
    %64 = arith.truncf %63 : vector<4x128xf32> to vector<4x128xbf16>
    %c0_57 = arith.constant 0 : index
    %c0_58 = arith.constant 0 : index
    %c0_59 = arith.constant 0 : index
    %65 = vector.load %arg10[%c0_57, %c0_58, %c0_59] : memref<3x128x128xbf16, #tpu.memory_space<vmem>>, vector<1x128x128xbf16>
    %66 = vector.shape_cast %65 : vector<1x128x128xbf16> to vector<128x128xbf16>
    %cst_60 = arith.constant dense<0.000000e+00> : vector<4x128xf32>
    %67 = tpu.matmul %64, %66, %cst_60 {dimension_numbers = #tpu.dot_dimension_numbers<[1], [0], [0], [1], [0, 0, 1, 1], [], []>} : vector<4x128xbf16>, vector<128x128xbf16>, vector<4x128xf32> -> vector<4x128xf32>
    %c1_61 = arith.constant 1 : index
    %c0_62 = arith.constant 0 : index
    %c0_63 = arith.constant 0 : index
    %68 = vector.load %arg9[%c1_61, %c0_62, %c0_63] : memref<3x4x8xbf16, #tpu.memory_space<vmem>>, vector<1x4x8xbf16>
    %69 = vector.shape_cast %68 : vector<1x4x8xbf16> to vector<4x8xbf16>
    %cst_64 = arith.constant dense<0.000000e+00> : vector<4x128xf32>
    %70 = tpu.matmul %69, %60, %cst_64 {dimension_numbers = #tpu.dot_dimension_numbers<[1], [0], [0], [1], [0, 0, 1, 1], [], []>} : vector<4x8xbf16>, vector<8x128xbf16>, vector<4x128xf32> -> vector<4x128xf32>
    %71 = arith.truncf %70 : vector<4x128xf32> to vector<4x128xbf16>
    %c1_65 = arith.constant 1 : index
    %c0_66 = arith.constant 0 : index
    %c0_67 = arith.constant 0 : index
    %72 = vector.load %arg10[%c1_65, %c0_66, %c0_67] : memref<3x128x128xbf16, #tpu.memory_space<vmem>>, vector<1x128x128xbf16>
    %73 = vector.shape_cast %72 : vector<1x128x128xbf16> to vector<128x128xbf16>
    %cst_68 = arith.constant dense<0.000000e+00> : vector<4x128xf32>
    %74 = tpu.matmul %71, %73, %cst_68 {dimension_numbers = #tpu.dot_dimension_numbers<[1], [0], [0], [1], [0, 0, 1, 1], [], []>} : vector<4x128xbf16>, vector<128x128xbf16>, vector<4x128xf32> -> vector<4x128xf32>
    %75 = arith.addf %67, %74 : vector<4x128xf32>
    %c2_69 = arith.constant 2 : index
    %c0_70 = arith.constant 0 : index
    %c0_71 = arith.constant 0 : index
    %76 = vector.load %arg9[%c2_69, %c0_70, %c0_71] : memref<3x4x8xbf16, #tpu.memory_space<vmem>>, vector<1x4x8xbf16>
    %77 = vector.shape_cast %76 : vector<1x4x8xbf16> to vector<4x8xbf16>
    %cst_72 = arith.constant dense<0.000000e+00> : vector<4x128xf32>
    %78 = tpu.matmul %77, %60, %cst_72 {dimension_numbers = #tpu.dot_dimension_numbers<[1], [0], [0], [1], [0, 0, 1, 1], [], []>} : vector<4x8xbf16>, vector<8x128xbf16>, vector<4x128xf32> -> vector<4x128xf32>
    %79 = arith.truncf %78 : vector<4x128xf32> to vector<4x128xbf16>
    %c2_73 = arith.constant 2 : index
    %c0_74 = arith.constant 0 : index
    %c0_75 = arith.constant 0 : index
    %80 = vector.load %arg10[%c2_73, %c0_74, %c0_75] : memref<3x128x128xbf16, #tpu.memory_space<vmem>>, vector<1x128x128xbf16>
    %81 = vector.shape_cast %80 : vector<1x128x128xbf16> to vector<128x128xbf16>
    %cst_76 = arith.constant dense<0.000000e+00> : vector<4x128xf32>
    %82 = tpu.matmul %79, %81, %cst_76 {dimension_numbers = #tpu.dot_dimension_numbers<[1], [0], [0], [1], [0, 0, 1, 1], [], []>} : vector<4x128xbf16>, vector<128x128xbf16>, vector<4x128xf32> -> vector<4x128xf32>
    %83 = arith.addf %75, %82 : vector<4x128xf32>
    %c0_77 = arith.constant 0 : index
    %c0_78 = arith.constant 0 : index
    %84 = vector.load %arg11[%c0_77, %c0_78] : memref<1x128xf32, #tpu.memory_space<vmem>>, vector<1x128xf32>
    %85 = vector.broadcast %84 : vector<1x128xf32> to vector<4x128xf32>
    %86 = arith.addf %83, %85 : vector<4x128xf32>
    %cst_79 = arith.constant 0.000000e+00 : f32
    %87 = vector.broadcast %cst_79 : f32 to vector<4x128xf32>
    %88 = arith.maximumf %86, %87 : vector<4x128xf32>
    %89 = arith.truncf %88 : vector<4x128xf32> to vector<4x128xbf16>
    %c0_80 = arith.constant 0 : index
    %c0_81 = arith.constant 0 : index
    %c0_82 = arith.constant 0 : index
    %90 = vector.load %arg12[%c0_80, %c0_81, %c0_82] : memref<3x4x4xbf16, #tpu.memory_space<vmem>>, vector<1x4x4xbf16>
    %91 = vector.shape_cast %90 : vector<1x4x4xbf16> to vector<4x4xbf16>
    %cst_83 = arith.constant dense<0.000000e+00> : vector<4x128xf32>
    %92 = tpu.matmul %91, %89, %cst_83 {dimension_numbers = #tpu.dot_dimension_numbers<[1], [0], [0], [1], [0, 0, 1, 1], [], []>} : vector<4x4xbf16>, vector<4x128xbf16>, vector<4x128xf32> -> vector<4x128xf32>
    %93 = arith.truncf %92 : vector<4x128xf32> to vector<4x128xbf16>
    %c0_84 = arith.constant 0 : index
    %c0_85 = arith.constant 0 : index
    %c0_86 = arith.constant 0 : index
    %94 = vector.load %arg13[%c0_84, %c0_85, %c0_86] : memref<3x128x128xbf16, #tpu.memory_space<vmem>>, vector<1x128x128xbf16>
    %95 = vector.shape_cast %94 : vector<1x128x128xbf16> to vector<128x128xbf16>
    %cst_87 = arith.constant dense<0.000000e+00> : vector<4x128xf32>
    %96 = tpu.matmul %93, %95, %cst_87 {dimension_numbers = #tpu.dot_dimension_numbers<[1], [0], [0], [1], [0, 0, 1, 1], [], []>} : vector<4x128xbf16>, vector<128x128xbf16>, vector<4x128xf32> -> vector<4x128xf32>
    %c1_88 = arith.constant 1 : index
    %c0_89 = arith.constant 0 : index
    %c0_90 = arith.constant 0 : index
    %97 = vector.load %arg12[%c1_88, %c0_89, %c0_90] : memref<3x4x4xbf16, #tpu.memory_space<vmem>>, vector<1x4x4xbf16>
    %98 = vector.shape_cast %97 : vector<1x4x4xbf16> to vector<4x4xbf16>
    %cst_91 = arith.constant dense<0.000000e+00> : vector<4x128xf32>
    %99 = tpu.matmul %98, %89, %cst_91 {dimension_numbers = #tpu.dot_dimension_numbers<[1], [0], [0], [1], [0, 0, 1, 1], [], []>} : vector<4x4xbf16>, vector<4x128xbf16>, vector<4x128xf32> -> vector<4x128xf32>
    %100 = arith.truncf %99 : vector<4x128xf32> to vector<4x128xbf16>
    %c1_92 = arith.constant 1 : index
    %c0_93 = arith.constant 0 : index
    %c0_94 = arith.constant 0 : index
    %101 = vector.load %arg13[%c1_92, %c0_93, %c0_94] : memref<3x128x128xbf16, #tpu.memory_space<vmem>>, vector<1x128x128xbf16>
    %102 = vector.shape_cast %101 : vector<1x128x128xbf16> to vector<128x128xbf16>
    %cst_95 = arith.constant dense<0.000000e+00> : vector<4x128xf32>
    %103 = tpu.matmul %100, %102, %cst_95 {dimension_numbers = #tpu.dot_dimension_numbers<[1], [0], [0], [1], [0, 0, 1, 1], [], []>} : vector<4x128xbf16>, vector<128x128xbf16>, vector<4x128xf32> -> vector<4x128xf32>
    %104 = arith.addf %96, %103 : vector<4x128xf32>
    %c2_96 = arith.constant 2 : index
    %c0_97 = arith.constant 0 : index
    %c0_98 = arith.constant 0 : index
    %105 = vector.load %arg12[%c2_96, %c0_97, %c0_98] : memref<3x4x4xbf16, #tpu.memory_space<vmem>>, vector<1x4x4xbf16>
    %106 = vector.shape_cast %105 : vector<1x4x4xbf16> to vector<4x4xbf16>
    %cst_99 = arith.constant dense<0.000000e+00> : vector<4x128xf32>
    %107 = tpu.matmul %106, %89, %cst_99 {dimension_numbers = #tpu.dot_dimension_numbers<[1], [0], [0], [1], [0, 0, 1, 1], [], []>} : vector<4x4xbf16>, vector<4x128xbf16>, vector<4x128xf32> -> vector<4x128xf32>
    %108 = arith.truncf %107 : vector<4x128xf32> to vector<4x128xbf16>
    %c2_100 = arith.constant 2 : index
    %c0_101 = arith.constant 0 : index
    %c0_102 = arith.constant 0 : index
    %109 = vector.load %arg13[%c2_100, %c0_101, %c0_102] : memref<3x128x128xbf16, #tpu.memory_space<vmem>>, vector<1x128x128xbf16>
    %110 = vector.shape_cast %109 : vector<1x128x128xbf16> to vector<128x128xbf16>
    %cst_103 = arith.constant dense<0.000000e+00> : vector<4x128xf32>
    %111 = tpu.matmul %108, %110, %cst_103 {dimension_numbers = #tpu.dot_dimension_numbers<[1], [0], [0], [1], [0, 0, 1, 1], [], []>} : vector<4x128xbf16>, vector<128x128xbf16>, vector<4x128xf32> -> vector<4x128xf32>
    %112 = arith.addf %104, %111 : vector<4x128xf32>
    %c0_104 = arith.constant 0 : index
    %c0_105 = arith.constant 0 : index
    %113 = vector.load %arg14[%c0_104, %c0_105] : memref<1x128xf32, #tpu.memory_space<vmem>>, vector<1x128xf32>
    %114 = vector.broadcast %113 : vector<1x128xf32> to vector<4x128xf32>
    %115 = arith.addf %112, %114 : vector<4x128xf32>
    %cst_106 = arith.constant 0.000000e+00 : f32
    %116 = vector.broadcast %cst_106 : f32 to vector<4x128xf32>
    %117 = arith.maximumf %115, %116 : vector<4x128xf32>
    %118 = arith.truncf %117 : vector<4x128xf32> to vector<4x128xbf16>
    %119 = arith.extf %118 : vector<4x128xbf16> to vector<4x128xf32>
    %c0_107 = arith.constant 0 : index
    %c0_108 = arith.constant 0 : index
    %c0_109 = arith.constant 0 : index
    %120 = vector.load %arg2[%c0_107, %c0_108, %c0_109] : memref<1x4x128xf32, #tpu.memory_space<vmem>>, vector<1x4x128xf32>
    %121 = vector.shape_cast %120 : vector<1x4x128xf32> to vector<4x128xf32>
    %122 = arith.mulf %119, %121 : vector<4x128xf32>
    %cst_110 = arith.constant dense<0.000000e+00> : vector<128xf32>
    %123 = vector.multi_reduction <add>, %122, %cst_110 [0] : vector<4x128xf32> to vector<128xf32>
    %124 = vector.shape_cast %123 : vector<128xf32> to vector<1x128xf32>
    %c0_111 = arith.constant 0 : index
    %c0_112 = arith.constant 0 : index
    %125 = vector.load %arg15[%c0_111, %c0_112] : memref<128x128xf32, #tpu.memory_space<vmem>>, vector<128x128xf32>
    %cst_113 = arith.constant dense<0.000000e+00> : vector<1x128xf32>
    %126 = tpu.matmul %124, %125, %cst_113 {dimension_numbers = #tpu.dot_dimension_numbers<[1], [0], [0], [1], [0, 0, 1, 1], [], []>} : vector<1x128xf32>, vector<128x128xf32>, vector<1x128xf32> -> vector<1x128xf32>
    %c0_114 = arith.constant 0 : index
    %c0_115 = arith.constant 0 : index
    %c0_116 = arith.constant 0 : index
    %127 = vector.load %arg16[%c0_114, %c0_115, %c0_116] : memref<1x1x128xf32, #tpu.memory_space<vmem>>, vector<1x1x128xf32>
    %128 = vector.shape_cast %127 : vector<1x1x128xf32> to vector<1x128xf32>
    %129 = vector.shape_cast %126 : vector<1x128xf32> to vector<1x1x128xf32>
    tpu.vector_store %arg16[%c0_114, %c0_115, %c0_116], %129 {strides = array<i32>} : memref<1x1x128xf32, #tpu.memory_space<vmem>>, vector<1x1x128xf32>,
    return
  }
  func.func @transform_0(%arg0: i32) -> (i32, i32, i32) {
    %c0_i32 = arith.constant 0 : i32
    %c0_i32_0 = arith.constant 0 : i32
    %c0_i32_1 = arith.constant 0 : i32
    return %arg0, %c0_i32, %c0_i32_0 : i32, i32, i32
  }
  func.func @transform_1(%arg0: i32) -> (i32, i32, i32) {
    %c0_i32 = arith.constant 0 : i32
    %c0_i32_0 = arith.constant 0 : i32
    %c0_i32_1 = arith.constant 0 : i32
    return %arg0, %c0_i32, %c0_i32_0 : i32, i32, i32
  }
  func.func @transform_2(%arg0: i32) -> (i32, i32, i32) {
    %c0_i32 = arith.constant 0 : i32
    %c0_i32_0 = arith.constant 0 : i32
    %c0_i32_1 = arith.constant 0 : i32
    %c0_i32_2 = arith.constant 0 : i32
    return %c0_i32, %c0_i32_0, %c0_i32_1 : i32, i32, i32
  }
  func.func @transform_3(%arg0: i32) -> (i32, i32, i32) {
    %c0_i32 = arith.constant 0 : i32
    %c0_i32_0 = arith.constant 0 : i32
    %c0_i32_1 = arith.constant 0 : i32
    %c0_i32_2 = arith.constant 0 : i32
    return %c0_i32, %c0_i32_0, %c0_i32_1 : i32, i32, i32
  }
  func.func @transform_4(%arg0: i32) -> (i32, i32) {
    %c0_i32 = arith.constant 0 : i32
    %c0_i32_0 = arith.constant 0 : i32
    %c0_i32_1 = arith.constant 0 : i32
    return %c0_i32, %c0_i32_0 : i32, i32
  }
  func.func @transform_5(%arg0: i32) -> (i32, i32, i32) {
    %c0_i32 = arith.constant 0 : i32
    %c0_i32_0 = arith.constant 0 : i32
    %c0_i32_1 = arith.constant 0 : i32
    %c0_i32_2 = arith.constant 0 : i32
    return %c0_i32, %c0_i32_0, %c0_i32_1 : i32, i32, i32
  }
  func.func @transform_6(%arg0: i32) -> (i32, i32, i32) {
    %c0_i32 = arith.constant 0 : i32
    %c0_i32_0 = arith.constant 0 : i32
    %c0_i32_1 = arith.constant 0 : i32
    %c0_i32_2 = arith.constant 0 : i32
    return %c0_i32, %c0_i32_0, %c0_i32_1 : i32, i32, i32
  }
  func.func @transform_7(%arg0: i32) -> (i32, i32) {
    %c0_i32 = arith.constant 0 : i32
    %c0_i32_0 = arith.constant 0 : i32
    %c0_i32_1 = arith.constant 0 : i32
    return %c0_i32, %c0_i32_0 : i32, i32
  }
  func.func @transform_8(%arg0: i32) -> (i32, i32, i32) {
    %c0_i32 = arith.constant 0 : i32
    %c0_i32_0 = arith.constant 0 : i32
    %c0_i32_1 = arith.constant 0 : i32
    %c0_i32_2 = arith.constant 0 : i32
    return %c0_i32, %c0_i32_0, %c0_i32_1 : i32, i32, i32
  }
  func.func @transform_9(%arg0: i32) -> (i32, i32, i32) {
    %c0_i32 = arith.constant 0 : i32
    %c0_i32_0 = arith.constant 0 : i32
    %c0_i32_1 = arith.constant 0 : i32
    %c0_i32_2 = arith.constant 0 : i32
    return %c0_i32, %c0_i32_0, %c0_i32_1 : i32, i32, i32
  }
  func.func @transform_10(%arg0: i32) -> (i32, i32) {
    %c0_i32 = arith.constant 0 : i32
    %c0_i32_0 = arith.constant 0 : i32
    %c0_i32_1 = arith.constant 0 : i32
    return %c0_i32, %c0_i32_0 : i32, i32
  }
  func.func @transform_11(%arg0: i32) -> (i32, i32, i32) {
    %c0_i32 = arith.constant 0 : i32
    %c0_i32_0 = arith.constant 0 : i32
    %c0_i32_1 = arith.constant 0 : i32
    %c0_i32_2 = arith.constant 0 : i32
    return %c0_i32, %c0_i32_0, %c0_i32_1 : i32, i32, i32
  }
  func.func @transform_12(%arg0: i32) -> (i32, i32, i32) {
    %c0_i32 = arith.constant 0 : i32
    %c0_i32_0 = arith.constant 0 : i32
    %c0_i32_1 = arith.constant 0 : i32
    %c0_i32_2 = arith.constant 0 : i32
    return %c0_i32, %c0_i32_0, %c0_i32_1 : i32, i32, i32
  }
  func.func @transform_13(%arg0: i32) -> (i32, i32) {
    %c0_i32 = arith.constant 0 : i32
    %c0_i32_0 = arith.constant 0 : i32
    %c0_i32_1 = arith.constant 0 : i32
    return %c0_i32, %c0_i32_0 : i32, i32
  }
  func.func @transform_14(%arg0: i32) -> (i32, i32) {
    %c0_i32 = arith.constant 0 : i32
    %c0_i32_0 = arith.constant 0 : i32
    %c0_i32_1 = arith.constant 0 : i32
    return %c0_i32, %c0_i32_0 : i32, i32
  }
  func.func @transform_15(%arg0: i32) -> (i32, i32, i32) {
    %c0_i32 = arith.constant 0 : i32
    %c0_i32_0 = arith.constant 0 : i32
    %c0_i32_1 = arith.constant 0 : i32
    return %arg0, %c0_i32, %c0_i32_0 : i32, i32, i32
  }
}

module attributes {stable_mosaic.version = 11 : i64} {
  func.func @_test_kernel(%arg0: i32, %arg1: memref<1x32x96xf32, #tpu.memory_space<vmem>>, %arg2: memref<1x1x128xf32, #tpu.memory_space<vmem>>, %arg3: memref<3x16x32xbf16, #tpu.memory_space<vmem>>, %arg4: memref<3x96x128xbf16, #tpu.memory_space<vmem>>, %arg5: memref<1x128xf32, #tpu.memory_space<vmem>>, %arg6: memref<3x8x16xbf16, #tpu.memory_space<vmem>>, %arg7: memref<3x128x128xbf16, #tpu.memory_space<vmem>>, %arg8: memref<1x128xf32, #tpu.memory_space<vmem>>, %arg9: memref<3x4x8xbf16, #tpu.memory_space<vmem>>, %arg10: memref<3x128x128xbf16, #tpu.memory_space<vmem>>, %arg11: memref<1x128xf32, #tpu.memory_space<vmem>>, %arg12: memref<3x4x4xbf16, #tpu.memory_space<vmem>>, %arg13: memref<3x128x128xbf16, #tpu.memory_space<vmem>>, %arg14: memref<1x128xf32, #tpu.memory_space<vmem>>, %arg15: memref<128x128xbf16, #tpu.memory_space<vmem>>, %arg16: memref<1x128xf32, #tpu.memory_space<vmem>>, %arg17: memref<3x4x4xbf16, #tpu.memory_space<vmem>>, %arg18: memref<3x128x128xbf16, #tpu.memory_space<vmem>>, %arg19: memref<1x128xf32, #tpu.memory_space<vmem>>, %arg20: memref<3x4x4xbf16, #tpu.memory_space<vmem>>, %arg21: memref<3x128x128xbf16, #tpu.memory_space<vmem>>, %arg22: memref<128x128xbf16, #tpu.memory_space<vmem>>, %arg23: memref<1x128xf32, #tpu.memory_space<vmem>>, %arg24: memref<3x8x4xbf16, #tpu.memory_space<vmem>>, %arg25: memref<3x128x128xbf16, #tpu.memory_space<vmem>>, %arg26: memref<128x128xbf16, #tpu.memory_space<vmem>>, %arg27: memref<1x128xf32, #tpu.memory_space<vmem>>, %arg28: memref<3x16x8xbf16, #tpu.memory_space<vmem>>, %arg29: memref<3x128x128xbf16, #tpu.memory_space<vmem>>, %arg30: memref<128x128xbf16, #tpu.memory_space<vmem>>, %arg31: memref<1x128xf32, #tpu.memory_space<vmem>>, %arg32: memref<3x16x16xbf16, #tpu.memory_space<vmem>>, %arg33: memref<3x128x16xbf16, #tpu.memory_space<vmem>>, %arg34: memref<1x16xf32, #tpu.memory_space<vmem>>, %arg35: memref<32x16xf32, #tpu.memory_space<vmem>>, %arg36: memref<16x32xf32, #tpu.memory_space<vmem>>, %arg37: memref<1x32x32xf32, #tpu.memory_space<vmem>>) attributes {dimension_semantics = [#tpu.dimension_semantics<parallel>], iteration_bounds = array<i64: 2>, scalar_prefetch = 0 : i64, scratch_operands = 0 : i64, tpu.core_type = #tpu.core_type<tc>, window_params = [{transform_indices = @transform_0, window_bounds = array<i64: 1, 32, 96>}, {transform_indices = @transform_1, window_bounds = array<i64: 1, 1, 128>}, {pipeline_mode = #tpu.pipeline_mode<synchronous>, transform_indices = @transform_2, window_bounds = array<i64: 3, 16, 32>}, {pipeline_mode = #tpu.pipeline_mode<synchronous>, transform_indices = @transform_3, window_bounds = array<i64: 3, 96, 128>}, {pipeline_mode = #tpu.pipeline_mode<synchronous>, transform_indices = @transform_4, window_bounds = array<i64: 1, 128>}, {pipeline_mode = #tpu.pipeline_mode<synchronous>, transform_indices = @transform_5, window_bounds = array<i64: 3, 8, 16>}, {pipeline_mode = #tpu.pipeline_mode<synchronous>, transform_indices = @transform_6, window_bounds = array<i64: 3, 128, 128>}, {pipeline_mode = #tpu.pipeline_mode<synchronous>, transform_indices = @transform_7, window_bounds = array<i64: 1, 128>}, {pipeline_mode = #tpu.pipeline_mode<synchronous>, transform_indices = @transform_8, window_bounds = array<i64: 3, 4, 8>}, {pipeline_mode = #tpu.pipeline_mode<synchronous>, transform_indices = @transform_9, window_bounds = array<i64: 3, 128, 128>}, {pipeline_mode = #tpu.pipeline_mode<synchronous>, transform_indices = @transform_10, window_bounds = array<i64: 1, 128>}, {pipeline_mode = #tpu.pipeline_mode<synchronous>, transform_indices = @transform_11, window_bounds = array<i64: 3, 4, 4>}, {pipeline_mode = #tpu.pipeline_mode<synchronous>, transform_indices = @transform_12, window_bounds = array<i64: 3, 128, 128>}, {pipeline_mode = #tpu.pipeline_mode<synchronous>, transform_indices = @transform_13, window_bounds = array<i64: 1, 128>}, {pipeline_mode = #tpu.pipeline_mode<synchronous>, transform_indices = @transform_14, window_bounds = array<i64: 128, 128>}, {pipeline_mode = #tpu.pipeline_mode<synchronous>, transform_indices = @transform_15, window_bounds = array<i64: 1, 128>}, {pipeline_mode = #tpu.pipeline_mode<synchronous>, transform_indices = @transform_16, window_bounds = array<i64: 3, 4, 4>}, {pipeline_mode = #tpu.pipeline_mode<synchronous>, transform_indices = @transform_17, window_bounds = array<i64: 3, 128, 128>}, {pipeline_mode = #tpu.pipeline_mode<synchronous>, transform_indices = @transform_18, window_bounds = array<i64: 1, 128>}, {pipeline_mode = #tpu.pipeline_mode<synchronous>, transform_indices = @transform_19, window_bounds = array<i64: 3, 4, 4>}, {pipeline_mode = #tpu.pipeline_mode<synchronous>, transform_indices = @transform_20, window_bounds = array<i64: 3, 128, 128>}, {pipeline_mode = #tpu.pipeline_mode<synchronous>, transform_indices = @transform_21, window_bounds = array<i64: 128, 128>}, {pipeline_mode = #tpu.pipeline_mode<synchronous>, transform_indices = @transform_22, window_bounds = array<i64: 1, 128>}, {pipeline_mode = #tpu.pipeline_mode<synchronous>, transform_indices = @transform_23, window_bounds = array<i64: 3, 8, 4>}, {pipeline_mode = #tpu.pipeline_mode<synchronous>, transform_indices = @transform_24, window_bounds = array<i64: 3, 128, 128>}, {pipeline_mode = #tpu.pipeline_mode<synchronous>, transform_indices = @transform_25, window_bounds = array<i64: 128, 128>}, {pipeline_mode = #tpu.pipeline_mode<synchronous>, transform_indices = @transform_26, window_bounds = array<i64: 1, 128>}, {pipeline_mode = #tpu.pipeline_mode<synchronous>, transform_indices = @transform_27, window_bounds = array<i64: 3, 16, 8>}, {pipeline_mode = #tpu.pipeline_mode<synchronous>, transform_indices = @transform_28, window_bounds = array<i64: 3, 128, 128>}, {pipeline_mode = #tpu.pipeline_mode<synchronous>, transform_indices = @transform_29, window_bounds = array<i64: 128, 128>}, {pipeline_mode = #tpu.pipeline_mode<synchronous>, transform_indices = @transform_30, window_bounds = array<i64: 1, 128>}, {pipeline_mode = #tpu.pipeline_mode<synchronous>, transform_indices = @transform_31, window_bounds = array<i64: 3, 16, 16>}, {pipeline_mode = #tpu.pipeline_mode<synchronous>, transform_indices = @transform_32, window_bounds = array<i64: 3, 128, 16>}, {pipeline_mode = #tpu.pipeline_mode<synchronous>, transform_indices = @transform_33, window_bounds = array<i64: 1, 16>}, {pipeline_mode = #tpu.pipeline_mode<synchronous>, transform_indices = @transform_34, window_bounds = array<i64: 32, 16>}, {pipeline_mode = #tpu.pipeline_mode<synchronous>, transform_indices = @transform_35, window_bounds = array<i64: 16, 32>}, {transform_indices = @transform_36, window_bounds = array<i64: 1, 32, 32>}]} {
    %c0 = arith.constant 0 : index
    %c0_0 = arith.constant 0 : index
    %c0_1 = arith.constant 0 : index
    %0 = vector.load %arg1[%c0, %c0_0, %c0_1] : memref<1x32x96xf32, #tpu.memory_space<vmem>>, vector<1x32x96xf32>
    %1 = vector.shape_cast %0 : vector<1x32x96xf32> to vector<32x96xf32>
    %2 = arith.truncf %1 : vector<32x96xf32> to vector<32x96xbf16>
    %c0_2 = arith.constant 0 : index
    %c0_3 = arith.constant 0 : index
    %c0_4 = arith.constant 0 : index
    %3 = vector.load %arg3[%c0_2, %c0_3, %c0_4] : memref<3x16x32xbf16, #tpu.memory_space<vmem>>, vector<1x16x32xbf16>
    %4 = vector.shape_cast %3 : vector<1x16x32xbf16> to vector<16x32xbf16>
    %cst = arith.constant dense<0.000000e+00> : vector<16x96xf32>
    %5 = tpu.matmul %4, %2, %cst {dimension_numbers = #tpu.dot_dimension_numbers<[1], [0], [0], [1], [0, 0, 1, 1], [], []>} : vector<16x32xbf16>, vector<32x96xbf16>, vector<16x96xf32> -> vector<16x96xf32>
    %6 = arith.truncf %5 : vector<16x96xf32> to vector<16x96xbf16>
    %c0_5 = arith.constant 0 : index
    %c0_6 = arith.constant 0 : index
    %c0_7 = arith.constant 0 : index
    %7 = vector.load %arg4[%c0_5, %c0_6, %c0_7] : memref<3x96x128xbf16, #tpu.memory_space<vmem>>, vector<1x96x128xbf16>
    %8 = vector.shape_cast %7 : vector<1x96x128xbf16> to vector<96x128xbf16>
    %cst_8 = arith.constant dense<0.000000e+00> : vector<16x128xf32>
    %9 = tpu.matmul %6, %8, %cst_8 {dimension_numbers = #tpu.dot_dimension_numbers<[1], [0], [0], [1], [0, 0, 1, 1], [], []>} : vector<16x96xbf16>, vector<96x128xbf16>, vector<16x128xf32> -> vector<16x128xf32>
    %c1 = arith.constant 1 : index
    %c0_9 = arith.constant 0 : index
    %c0_10 = arith.constant 0 : index
    %10 = vector.load %arg3[%c1, %c0_9, %c0_10] : memref<3x16x32xbf16, #tpu.memory_space<vmem>>, vector<1x16x32xbf16>
    %11 = vector.shape_cast %10 : vector<1x16x32xbf16> to vector<16x32xbf16>
    %cst_11 = arith.constant dense<0.000000e+00> : vector<16x96xf32>
    %12 = tpu.matmul %11, %2, %cst_11 {dimension_numbers = #tpu.dot_dimension_numbers<[1], [0], [0], [1], [0, 0, 1, 1], [], []>} : vector<16x32xbf16>, vector<32x96xbf16>, vector<16x96xf32> -> vector<16x96xf32>
    %13 = arith.truncf %12 : vector<16x96xf32> to vector<16x96xbf16>
    %c1_12 = arith.constant 1 : index
    %c0_13 = arith.constant 0 : index
    %c0_14 = arith.constant 0 : index
    %14 = vector.load %arg4[%c1_12, %c0_13, %c0_14] : memref<3x96x128xbf16, #tpu.memory_space<vmem>>, vector<1x96x128xbf16>
    %15 = vector.shape_cast %14 : vector<1x96x128xbf16> to vector<96x128xbf16>
    %cst_15 = arith.constant dense<0.000000e+00> : vector<16x128xf32>
    %16 = tpu.matmul %13, %15, %cst_15 {dimension_numbers = #tpu.dot_dimension_numbers<[1], [0], [0], [1], [0, 0, 1, 1], [], []>} : vector<16x96xbf16>, vector<96x128xbf16>, vector<16x128xf32> -> vector<16x128xf32>
    %17 = arith.addf %9, %16 : vector<16x128xf32>
    %c2 = arith.constant 2 : index
    %c0_16 = arith.constant 0 : index
    %c0_17 = arith.constant 0 : index
    %18 = vector.load %arg3[%c2, %c0_16, %c0_17] : memref<3x16x32xbf16, #tpu.memory_space<vmem>>, vector<1x16x32xbf16>
    %19 = vector.shape_cast %18 : vector<1x16x32xbf16> to vector<16x32xbf16>
    %cst_18 = arith.constant dense<0.000000e+00> : vector<16x96xf32>
    %20 = tpu.matmul %19, %2, %cst_18 {dimension_numbers = #tpu.dot_dimension_numbers<[1], [0], [0], [1], [0, 0, 1, 1], [], []>} : vector<16x32xbf16>, vector<32x96xbf16>, vector<16x96xf32> -> vector<16x96xf32>
    %21 = arith.truncf %20 : vector<16x96xf32> to vector<16x96xbf16>
    %c2_19 = arith.constant 2 : index
    %c0_20 = arith.constant 0 : index
    %c0_21 = arith.constant 0 : index
    %22 = vector.load %arg4[%c2_19, %c0_20, %c0_21] : memref<3x96x128xbf16, #tpu.memory_space<vmem>>, vector<1x96x128xbf16>
    %23 = vector.shape_cast %22 : vector<1x96x128xbf16> to vector<96x128xbf16>
    %cst_22 = arith.constant dense<0.000000e+00> : vector<16x128xf32>
    %24 = tpu.matmul %21, %23, %cst_22 {dimension_numbers = #tpu.dot_dimension_numbers<[1], [0], [0], [1], [0, 0, 1, 1], [], []>} : vector<16x96xbf16>, vector<96x128xbf16>, vector<16x128xf32> -> vector<16x128xf32>
    %25 = arith.addf %17, %24 : vector<16x128xf32>
    %c0_23 = arith.constant 0 : index
    %c0_24 = arith.constant 0 : index
    %26 = vector.load %arg5[%c0_23, %c0_24] : memref<1x128xf32, #tpu.memory_space<vmem>>, vector<1x128xf32>
    %27 = vector.broadcast %26 : vector<1x128xf32> to vector<16x128xf32>
    %28 = arith.addf %25, %27 : vector<16x128xf32>
    %cst_25 = arith.constant 0.000000e+00 : f32
    %29 = vector.broadcast %cst_25 : f32 to vector<16x128xf32>
    %30 = arith.maximumf %28, %29 : vector<16x128xf32>
    %31 = arith.truncf %30 : vector<16x128xf32> to vector<16x128xbf16>
    %c0_26 = arith.constant 0 : index
    %c0_27 = arith.constant 0 : index
    %c0_28 = arith.constant 0 : index
    %32 = vector.load %arg6[%c0_26, %c0_27, %c0_28] : memref<3x8x16xbf16, #tpu.memory_space<vmem>>, vector<1x8x16xbf16>
    %33 = vector.shape_cast %32 : vector<1x8x16xbf16> to vector<8x16xbf16>
    %cst_29 = arith.constant dense<0.000000e+00> : vector<8x128xf32>
    %34 = tpu.matmul %33, %31, %cst_29 {dimension_numbers = #tpu.dot_dimension_numbers<[1], [0], [0], [1], [0, 0, 1, 1], [], []>} : vector<8x16xbf16>, vector<16x128xbf16>, vector<8x128xf32> -> vector<8x128xf32>
    %35 = arith.truncf %34 : vector<8x128xf32> to vector<8x128xbf16>
    %c0_30 = arith.constant 0 : index
    %c0_31 = arith.constant 0 : index
    %c0_32 = arith.constant 0 : index
    %36 = vector.load %arg7[%c0_30, %c0_31, %c0_32] : memref<3x128x128xbf16, #tpu.memory_space<vmem>>, vector<1x128x128xbf16>
    %37 = vector.shape_cast %36 : vector<1x128x128xbf16> to vector<128x128xbf16>
    %cst_33 = arith.constant dense<0.000000e+00> : vector<8x128xf32>
    %38 = tpu.matmul %35, %37, %cst_33 {dimension_numbers = #tpu.dot_dimension_numbers<[1], [0], [0], [1], [0, 0, 1, 1], [], []>} : vector<8x128xbf16>, vector<128x128xbf16>, vector<8x128xf32> -> vector<8x128xf32>
    %c1_34 = arith.constant 1 : index
    %c0_35 = arith.constant 0 : index
    %c0_36 = arith.constant 0 : index
    %39 = vector.load %arg6[%c1_34, %c0_35, %c0_36] : memref<3x8x16xbf16, #tpu.memory_space<vmem>>, vector<1x8x16xbf16>
    %40 = vector.shape_cast %39 : vector<1x8x16xbf16> to vector<8x16xbf16>
    %cst_37 = arith.constant dense<0.000000e+00> : vector<8x128xf32>
    %41 = tpu.matmul %40, %31, %cst_37 {dimension_numbers = #tpu.dot_dimension_numbers<[1], [0], [0], [1], [0, 0, 1, 1], [], []>} : vector<8x16xbf16>, vector<16x128xbf16>, vector<8x128xf32> -> vector<8x128xf32>
    %42 = arith.truncf %41 : vector<8x128xf32> to vector<8x128xbf16>
    %c1_38 = arith.constant 1 : index
    %c0_39 = arith.constant 0 : index
    %c0_40 = arith.constant 0 : index
    %43 = vector.load %arg7[%c1_38, %c0_39, %c0_40] : memref<3x128x128xbf16, #tpu.memory_space<vmem>>, vector<1x128x128xbf16>
    %44 = vector.shape_cast %43 : vector<1x128x128xbf16> to vector<128x128xbf16>
    %cst_41 = arith.constant dense<0.000000e+00> : vector<8x128xf32>
    %45 = tpu.matmul %42, %44, %cst_41 {dimension_numbers = #tpu.dot_dimension_numbers<[1], [0], [0], [1], [0, 0, 1, 1], [], []>} : vector<8x128xbf16>, vector<128x128xbf16>, vector<8x128xf32> -> vector<8x128xf32>
    %46 = arith.addf %38, %45 : vector<8x128xf32>
    %c2_42 = arith.constant 2 : index
    %c0_43 = arith.constant 0 : index
    %c0_44 = arith.constant 0 : index
    %47 = vector.load %arg6[%c2_42, %c0_43, %c0_44] : memref<3x8x16xbf16, #tpu.memory_space<vmem>>, vector<1x8x16xbf16>
    %48 = vector.shape_cast %47 : vector<1x8x16xbf16> to vector<8x16xbf16>
    %cst_45 = arith.constant dense<0.000000e+00> : vector<8x128xf32>
    %49 = tpu.matmul %48, %31, %cst_45 {dimension_numbers = #tpu.dot_dimension_numbers<[1], [0], [0], [1], [0, 0, 1, 1], [], []>} : vector<8x16xbf16>, vector<16x128xbf16>, vector<8x128xf32> -> vector<8x128xf32>
    %50 = arith.truncf %49 : vector<8x128xf32> to vector<8x128xbf16>
    %c2_46 = arith.constant 2 : index
    %c0_47 = arith.constant 0 : index
    %c0_48 = arith.constant 0 : index
    %51 = vector.load %arg7[%c2_46, %c0_47, %c0_48] : memref<3x128x128xbf16, #tpu.memory_space<vmem>>, vector<1x128x128xbf16>
    %52 = vector.shape_cast %51 : vector<1x128x128xbf16> to vector<128x128xbf16>
    %cst_49 = arith.constant dense<0.000000e+00> : vector<8x128xf32>
    %53 = tpu.matmul %50, %52, %cst_49 {dimension_numbers = #tpu.dot_dimension_numbers<[1], [0], [0], [1], [0, 0, 1, 1], [], []>} : vector<8x128xbf16>, vector<128x128xbf16>, vector<8x128xf32> -> vector<8x128xf32>
    %54 = arith.addf %46, %53 : vector<8x128xf32>
    %c0_50 = arith.constant 0 : index
    %c0_51 = arith.constant 0 : index
    %55 = vector.load %arg8[%c0_50, %c0_51] : memref<1x128xf32, #tpu.memory_space<vmem>>, vector<1x128xf32>
    %56 = vector.broadcast %55 : vector<1x128xf32> to vector<8x128xf32>
    %57 = arith.addf %54, %56 : vector<8x128xf32>
    %cst_52 = arith.constant 0.000000e+00 : f32
    %58 = vector.broadcast %cst_52 : f32 to vector<8x128xf32>
    %59 = arith.maximumf %57, %58 : vector<8x128xf32>
    %60 = arith.truncf %59 : vector<8x128xf32> to vector<8x128xbf16>
    %c0_53 = arith.constant 0 : index
    %c0_54 = arith.constant 0 : index
    %c0_55 = arith.constant 0 : index
    %61 = vector.load %arg9[%c0_53, %c0_54, %c0_55] : memref<3x4x8xbf16, #tpu.memory_space<vmem>>, vector<1x4x8xbf16>
    %62 = vector.shape_cast %61 : vector<1x4x8xbf16> to vector<4x8xbf16>
    %cst_56 = arith.constant dense<0.000000e+00> : vector<4x128xf32>
    %63 = tpu.matmul %62, %60, %cst_56 {dimension_numbers = #tpu.dot_dimension_numbers<[1], [0], [0], [1], [0, 0, 1, 1], [], []>} : vector<4x8xbf16>, vector<8x128xbf16>, vector<4x128xf32> -> vector<4x128xf32>
    %64 = arith.truncf %63 : vector<4x128xf32> to vector<4x128xbf16>
    %c0_57 = arith.constant 0 : index
    %c0_58 = arith.constant 0 : index
    %c0_59 = arith.constant 0 : index
    %65 = vector.load %arg10[%c0_57, %c0_58, %c0_59] : memref<3x128x128xbf16, #tpu.memory_space<vmem>>, vector<1x128x128xbf16>
    %66 = vector.shape_cast %65 : vector<1x128x128xbf16> to vector<128x128xbf16>
    %cst_60 = arith.constant dense<0.000000e+00> : vector<4x128xf32>
    %67 = tpu.matmul %64, %66, %cst_60 {dimension_numbers = #tpu.dot_dimension_numbers<[1], [0], [0], [1], [0, 0, 1, 1], [], []>} : vector<4x128xbf16>, vector<128x128xbf16>, vector<4x128xf32> -> vector<4x128xf32>
    %c1_61 = arith.constant 1 : index
    %c0_62 = arith.constant 0 : index
    %c0_63 = arith.constant 0 : index
    %68 = vector.load %arg9[%c1_61, %c0_62, %c0_63] : memref<3x4x8xbf16, #tpu.memory_space<vmem>>, vector<1x4x8xbf16>
    %69 = vector.shape_cast %68 : vector<1x4x8xbf16> to vector<4x8xbf16>
    %cst_64 = arith.constant dense<0.000000e+00> : vector<4x128xf32>
    %70 = tpu.matmul %69, %60, %cst_64 {dimension_numbers = #tpu.dot_dimension_numbers<[1], [0], [0], [1], [0, 0, 1, 1], [], []>} : vector<4x8xbf16>, vector<8x128xbf16>, vector<4x128xf32> -> vector<4x128xf32>
    %71 = arith.truncf %70 : vector<4x128xf32> to vector<4x128xbf16>
    %c1_65 = arith.constant 1 : index
    %c0_66 = arith.constant 0 : index
    %c0_67 = arith.constant 0 : index
    %72 = vector.load %arg10[%c1_65, %c0_66, %c0_67] : memref<3x128x128xbf16, #tpu.memory_space<vmem>>, vector<1x128x128xbf16>
    %73 = vector.shape_cast %72 : vector<1x128x128xbf16> to vector<128x128xbf16>
    %cst_68 = arith.constant dense<0.000000e+00> : vector<4x128xf32>
    %74 = tpu.matmul %71, %73, %cst_68 {dimension_numbers = #tpu.dot_dimension_numbers<[1], [0], [0], [1], [0, 0, 1, 1], [], []>} : vector<4x128xbf16>, vector<128x128xbf16>, vector<4x128xf32> -> vector<4x128xf32>
    %75 = arith.addf %67, %74 : vector<4x128xf32>
    %c2_69 = arith.constant 2 : index
    %c0_70 = arith.constant 0 : index
    %c0_71 = arith.constant 0 : index
    %76 = vector.load %arg9[%c2_69, %c0_70, %c0_71] : memref<3x4x8xbf16, #tpu.memory_space<vmem>>, vector<1x4x8xbf16>
    %77 = vector.shape_cast %76 : vector<1x4x8xbf16> to vector<4x8xbf16>
    %cst_72 = arith.constant dense<0.000000e+00> : vector<4x128xf32>
    %78 = tpu.matmul %77, %60, %cst_72 {dimension_numbers = #tpu.dot_dimension_numbers<[1], [0], [0], [1], [0, 0, 1, 1], [], []>} : vector<4x8xbf16>, vector<8x128xbf16>, vector<4x128xf32> -> vector<4x128xf32>
    %79 = arith.truncf %78 : vector<4x128xf32> to vector<4x128xbf16>
    %c2_73 = arith.constant 2 : index
    %c0_74 = arith.constant 0 : index
    %c0_75 = arith.constant 0 : index
    %80 = vector.load %arg10[%c2_73, %c0_74, %c0_75] : memref<3x128x128xbf16, #tpu.memory_space<vmem>>, vector<1x128x128xbf16>
    %81 = vector.shape_cast %80 : vector<1x128x128xbf16> to vector<128x128xbf16>
    %cst_76 = arith.constant dense<0.000000e+00> : vector<4x128xf32>
    %82 = tpu.matmul %79, %81, %cst_76 {dimension_numbers = #tpu.dot_dimension_numbers<[1], [0], [0], [1], [0, 0, 1, 1], [], []>} : vector<4x128xbf16>, vector<128x128xbf16>, vector<4x128xf32> -> vector<4x128xf32>
    %83 = arith.addf %75, %82 : vector<4x128xf32>
    %c0_77 = arith.constant 0 : index
    %c0_78 = arith.constant 0 : index
    %84 = vector.load %arg11[%c0_77, %c0_78] : memref<1x128xf32, #tpu.memory_space<vmem>>, vector<1x128xf32>
    %85 = vector.broadcast %84 : vector<1x128xf32> to vector<4x128xf32>
    %86 = arith.addf %83, %85 : vector<4x128xf32>
    %cst_79 = arith.constant 0.000000e+00 : f32
    %87 = vector.broadcast %cst_79 : f32 to vector<4x128xf32>
    %88 = arith.maximumf %86, %87 : vector<4x128xf32>
    %89 = arith.truncf %88 : vector<4x128xf32> to vector<4x128xbf16>
    %c0_80 = arith.constant 0 : index
    %c0_81 = arith.constant 0 : index
    %c0_82 = arith.constant 0 : index
    %90 = vector.load %arg12[%c0_80, %c0_81, %c0_82] : memref<3x4x4xbf16, #tpu.memory_space<vmem>>, vector<1x4x4xbf16>
    %91 = vector.shape_cast %90 : vector<1x4x4xbf16> to vector<4x4xbf16>
    %cst_83 = arith.constant dense<0.000000e+00> : vector<4x128xf32>
    %92 = tpu.matmul %91, %89, %cst_83 {dimension_numbers = #tpu.dot_dimension_numbers<[1], [0], [0], [1], [0, 0, 1, 1], [], []>} : vector<4x4xbf16>, vector<4x128xbf16>, vector<4x128xf32> -> vector<4x128xf32>
    %93 = arith.truncf %92 : vector<4x128xf32> to vector<4x128xbf16>
    %c0_84 = arith.constant 0 : index
    %c0_85 = arith.constant 0 : index
    %c0_86 = arith.constant 0 : index
    %94 = vector.load %arg13[%c0_84, %c0_85, %c0_86] : memref<3x128x128xbf16, #tpu.memory_space<vmem>>, vector<1x128x128xbf16>
    %95 = vector.shape_cast %94 : vector<1x128x128xbf16> to vector<128x128xbf16>
    %cst_87 = arith.constant dense<0.000000e+00> : vector<4x128xf32>
    %96 = tpu.matmul %93, %95, %cst_87 {dimension_numbers = #tpu.dot_dimension_numbers<[1], [0], [0], [1], [0, 0, 1, 1], [], []>} : vector<4x128xbf16>, vector<128x128xbf16>, vector<4x128xf32> -> vector<4x128xf32>
    %c1_88 = arith.constant 1 : index
    %c0_89 = arith.constant 0 : index
    %c0_90 = arith.constant 0 : index
    %97 = vector.load %arg12[%c1_88, %c0_89, %c0_90] : memref<3x4x4xbf16, #tpu.memory_space<vmem>>, vector<1x4x4xbf16>
    %98 = vector.shape_cast %97 : vector<1x4x4xbf16> to vector<4x4xbf16>
    %cst_91 = arith.constant dense<0.000000e+00> : vector<4x128xf32>
    %99 = tpu.matmul %98, %89, %cst_91 {dimension_numbers = #tpu.dot_dimension_numbers<[1], [0], [0], [1], [0, 0, 1, 1], [], []>} : vector<4x4xbf16>, vector<4x128xbf16>, vector<4x128xf32> -> vector<4x128xf32>
    %100 = arith.truncf %99 : vector<4x128xf32> to vector<4x128xbf16>
    %c1_92 = arith.constant 1 : index
    %c0_93 = arith.constant 0 : index
    %c0_94 = arith.constant 0 : index
    %101 = vector.load %arg13[%c1_92, %c0_93, %c0_94] : memref<3x128x128xbf16, #tpu.memory_space<vmem>>, vector<1x128x128xbf16>
    %102 = vector.shape_cast %101 : vector<1x128x128xbf16> to vector<128x128xbf16>
    %cst_95 = arith.constant dense<0.000000e+00> : vector<4x128xf32>
    %103 = tpu.matmul %100, %102, %cst_95 {dimension_numbers = #tpu.dot_dimension_numbers<[1], [0], [0], [1], [0, 0, 1, 1], [], []>} : vector<4x128xbf16>, vector<128x128xbf16>, vector<4x128xf32> -> vector<4x128xf32>
    %104 = arith.addf %96, %103 : vector<4x128xf32>
    %c2_96 = arith.constant 2 : index
    %c0_97 = arith.constant 0 : index
    %c0_98 = arith.constant 0 : index
    %105 = vector.load %arg12[%c2_96, %c0_97, %c0_98] : memref<3x4x4xbf16, #tpu.memory_space<vmem>>, vector<1x4x4xbf16>
    %106 = vector.shape_cast %105 : vector<1x4x4xbf16> to vector<4x4xbf16>
    %cst_99 = arith.constant dense<0.000000e+00> : vector<4x128xf32>
    %107 = tpu.matmul %106, %89, %cst_99 {dimension_numbers = #tpu.dot_dimension_numbers<[1], [0], [0], [1], [0, 0, 1, 1], [], []>} : vector<4x4xbf16>, vector<4x128xbf16>, vector<4x128xf32> -> vector<4x128xf32>
    %108 = arith.truncf %107 : vector<4x128xf32> to vector<4x128xbf16>
    %c2_100 = arith.constant 2 : index
    %c0_101 = arith.constant 0 : index
    %c0_102 = arith.constant 0 : index
    %109 = vector.load %arg13[%c2_100, %c0_101, %c0_102] : memref<3x128x128xbf16, #tpu.memory_space<vmem>>, vector<1x128x128xbf16>
    %110 = vector.shape_cast %109 : vector<1x128x128xbf16> to vector<128x128xbf16>
    %cst_103 = arith.constant dense<0.000000e+00> : vector<4x128xf32>
    %111 = tpu.matmul %108, %110, %cst_103 {dimension_numbers = #tpu.dot_dimension_numbers<[1], [0], [0], [1], [0, 0, 1, 1], [], []>} : vector<4x128xbf16>, vector<128x128xbf16>, vector<4x128xf32> -> vector<4x128xf32>
    %112 = arith.addf %104, %111 : vector<4x128xf32>
    %c0_104 = arith.constant 0 : index
    %c0_105 = arith.constant 0 : index
    %113 = vector.load %arg14[%c0_104, %c0_105] : memref<1x128xf32, #tpu.memory_space<vmem>>, vector<1x128xf32>
    %114 = vector.broadcast %113 : vector<1x128xf32> to vector<4x128xf32>
    %115 = arith.addf %112, %114 : vector<4x128xf32>
    %cst_106 = arith.constant 0.000000e+00 : f32
    %116 = vector.broadcast %cst_106 : f32 to vector<4x128xf32>
    %117 = arith.maximumf %115, %116 : vector<4x128xf32>
    %118 = arith.truncf %117 : vector<4x128xf32> to vector<4x128xbf16>
    %119 = arith.extf %118 : vector<4x128xbf16> to vector<4x128xf32>
    %c0_107 = arith.constant 0 : index
    %c0_108 = arith.constant 0 : index
    %c0_109 = arith.constant 0 : index
    %120 = vector.load %arg2[%c0_107, %c0_108, %c0_109] : memref<1x1x128xf32, #tpu.memory_space<vmem>>, vector<1x1x128xf32>
    %121 = vector.shape_cast %120 : vector<1x1x128xf32> to vector<1x128xf32>
    %122 = vector.broadcast %121 : vector<1x128xf32> to vector<4x128xf32>
    %123 = arith.mulf %119, %122 : vector<4x128xf32>
    %124 = arith.truncf %123 : vector<4x128xf32> to vector<4x128xbf16>
    %c0_110 = arith.constant 0 : index
    %c0_111 = arith.constant 0 : index
    %125 = vector.load %arg15[%c0_110, %c0_111] : memref<128x128xbf16, #tpu.memory_space<vmem>>, vector<128x128xbf16>
    %cst_112 = arith.constant dense<0.000000e+00> : vector<4x128xf32>
    %126 = tpu.matmul %124, %125, %cst_112 {dimension_numbers = #tpu.dot_dimension_numbers<[1], [0], [0], [1], [0, 0, 1, 1], [], []>} : vector<4x128xbf16>, vector<128x128xbf16>, vector<4x128xf32> -> vector<4x128xf32>
    %c0_113 = arith.constant 0 : index
    %c0_114 = arith.constant 0 : index
    %127 = vector.load %arg16[%c0_113, %c0_114] : memref<1x128xf32, #tpu.memory_space<vmem>>, vector<1x128xf32>
    %128 = vector.broadcast %127 : vector<1x128xf32> to vector<4x128xf32>
    %129 = arith.addf %126, %128 : vector<4x128xf32>
    %cst_115 = arith.constant 0.000000e+00 : f32
    %130 = vector.broadcast %cst_115 : f32 to vector<4x128xf32>
    %131 = arith.maximumf %129, %130 : vector<4x128xf32>
    %132 = arith.truncf %131 : vector<4x128xf32> to vector<4x128xbf16>
    %c0_116 = arith.constant 0 : index
    %c0_117 = arith.constant 0 : index
    %c0_118 = arith.constant 0 : index
    %133 = vector.load %arg17[%c0_116, %c0_117, %c0_118] : memref<3x4x4xbf16, #tpu.memory_space<vmem>>, vector<1x4x4xbf16>
    %134 = vector.shape_cast %133 : vector<1x4x4xbf16> to vector<4x4xbf16>
    %cst_119 = arith.constant dense<0.000000e+00> : vector<4x128xf32>
    %135 = tpu.matmul %134, %132, %cst_119 {dimension_numbers = #tpu.dot_dimension_numbers<[1], [0], [0], [1], [0, 0, 1, 1], [], []>} : vector<4x4xbf16>, vector<4x128xbf16>, vector<4x128xf32> -> vector<4x128xf32>
    %136 = arith.truncf %135 : vector<4x128xf32> to vector<4x128xbf16>
    %c0_120 = arith.constant 0 : index
    %c0_121 = arith.constant 0 : index
    %c0_122 = arith.constant 0 : index
    %137 = vector.load %arg18[%c0_120, %c0_121, %c0_122] : memref<3x128x128xbf16, #tpu.memory_space<vmem>>, vector<1x128x128xbf16>
    %138 = vector.shape_cast %137 : vector<1x128x128xbf16> to vector<128x128xbf16>
    %cst_123 = arith.constant dense<0.000000e+00> : vector<4x128xf32>
    %139 = tpu.matmul %136, %138, %cst_123 {dimension_numbers = #tpu.dot_dimension_numbers<[1], [0], [0], [1], [0, 0, 1, 1], [], []>} : vector<4x128xbf16>, vector<128x128xbf16>, vector<4x128xf32> -> vector<4x128xf32>
    %c1_124 = arith.constant 1 : index
    %c0_125 = arith.constant 0 : index
    %c0_126 = arith.constant 0 : index
    %140 = vector.load %arg17[%c1_124, %c0_125, %c0_126] : memref<3x4x4xbf16, #tpu.memory_space<vmem>>, vector<1x4x4xbf16>
    %141 = vector.shape_cast %140 : vector<1x4x4xbf16> to vector<4x4xbf16>
    %cst_127 = arith.constant dense<0.000000e+00> : vector<4x128xf32>
    %142 = tpu.matmul %141, %132, %cst_127 {dimension_numbers = #tpu.dot_dimension_numbers<[1], [0], [0], [1], [0, 0, 1, 1], [], []>} : vector<4x4xbf16>, vector<4x128xbf16>, vector<4x128xf32> -> vector<4x128xf32>
    %143 = arith.truncf %142 : vector<4x128xf32> to vector<4x128xbf16>
    %c1_128 = arith.constant 1 : index
    %c0_129 = arith.constant 0 : index
    %c0_130 = arith.constant 0 : index
    %144 = vector.load %arg18[%c1_128, %c0_129, %c0_130] : memref<3x128x128xbf16, #tpu.memory_space<vmem>>, vector<1x128x128xbf16>
    %145 = vector.shape_cast %144 : vector<1x128x128xbf16> to vector<128x128xbf16>
    %cst_131 = arith.constant dense<0.000000e+00> : vector<4x128xf32>
    %146 = tpu.matmul %143, %145, %cst_131 {dimension_numbers = #tpu.dot_dimension_numbers<[1], [0], [0], [1], [0, 0, 1, 1], [], []>} : vector<4x128xbf16>, vector<128x128xbf16>, vector<4x128xf32> -> vector<4x128xf32>
    %147 = arith.addf %139, %146 : vector<4x128xf32>
    %c2_132 = arith.constant 2 : index
    %c0_133 = arith.constant 0 : index
    %c0_134 = arith.constant 0 : index
    %148 = vector.load %arg17[%c2_132, %c0_133, %c0_134] : memref<3x4x4xbf16, #tpu.memory_space<vmem>>, vector<1x4x4xbf16>
    %149 = vector.shape_cast %148 : vector<1x4x4xbf16> to vector<4x4xbf16>
    %cst_135 = arith.constant dense<0.000000e+00> : vector<4x128xf32>
    %150 = tpu.matmul %149, %132, %cst_135 {dimension_numbers = #tpu.dot_dimension_numbers<[1], [0], [0], [1], [0, 0, 1, 1], [], []>} : vector<4x4xbf16>, vector<4x128xbf16>, vector<4x128xf32> -> vector<4x128xf32>
    %151 = arith.truncf %150 : vector<4x128xf32> to vector<4x128xbf16>
    %c2_136 = arith.constant 2 : index
    %c0_137 = arith.constant 0 : index
    %c0_138 = arith.constant 0 : index
    %152 = vector.load %arg18[%c2_136, %c0_137, %c0_138] : memref<3x128x128xbf16, #tpu.memory_space<vmem>>, vector<1x128x128xbf16>
    %153 = vector.shape_cast %152 : vector<1x128x128xbf16> to vector<128x128xbf16>
    %cst_139 = arith.constant dense<0.000000e+00> : vector<4x128xf32>
    %154 = tpu.matmul %151, %153, %cst_139 {dimension_numbers = #tpu.dot_dimension_numbers<[1], [0], [0], [1], [0, 0, 1, 1], [], []>} : vector<4x128xbf16>, vector<128x128xbf16>, vector<4x128xf32> -> vector<4x128xf32>
    %155 = arith.addf %147, %154 : vector<4x128xf32>
    %c0_140 = arith.constant 0 : index
    %c0_141 = arith.constant 0 : index
    %156 = vector.load %arg19[%c0_140, %c0_141] : memref<1x128xf32, #tpu.memory_space<vmem>>, vector<1x128xf32>
    %157 = vector.broadcast %156 : vector<1x128xf32> to vector<4x128xf32>
    %158 = arith.addf %155, %157 : vector<4x128xf32>
    %cst_142 = arith.constant 0.000000e+00 : f32
    %159 = vector.broadcast %cst_142 : f32 to vector<4x128xf32>
    %160 = arith.maximumf %158, %159 : vector<4x128xf32>
    %161 = arith.truncf %160 : vector<4x128xf32> to vector<4x128xbf16>
    %c0_143 = arith.constant 0 : index
    %c0_144 = arith.constant 0 : index
    %c0_145 = arith.constant 0 : index
    %162 = vector.load %arg20[%c0_143, %c0_144, %c0_145] : memref<3x4x4xbf16, #tpu.memory_space<vmem>>, vector<1x4x4xbf16>
    %163 = vector.shape_cast %162 : vector<1x4x4xbf16> to vector<4x4xbf16>
    %cst_146 = arith.constant dense<0.000000e+00> : vector<4x128xf32>
    %164 = tpu.matmul %163, %161, %cst_146 {dimension_numbers = #tpu.dot_dimension_numbers<[1], [0], [0], [1], [0, 0, 1, 1], [], []>} : vector<4x4xbf16>, vector<4x128xbf16>, vector<4x128xf32> -> vector<4x128xf32>
    %165 = arith.truncf %164 : vector<4x128xf32> to vector<4x128xbf16>
    %c0_147 = arith.constant 0 : index
    %c0_148 = arith.constant 0 : index
    %c0_149 = arith.constant 0 : index
    %166 = vector.load %arg21[%c0_147, %c0_148, %c0_149] : memref<3x128x128xbf16, #tpu.memory_space<vmem>>, vector<1x128x128xbf16>
    %167 = vector.shape_cast %166 : vector<1x128x128xbf16> to vector<128x128xbf16>
    %cst_150 = arith.constant dense<0.000000e+00> : vector<4x128xf32>
    %168 = tpu.matmul %165, %167, %cst_150 {dimension_numbers = #tpu.dot_dimension_numbers<[1], [0], [0], [1], [0, 0, 1, 1], [], []>} : vector<4x128xbf16>, vector<128x128xbf16>, vector<4x128xf32> -> vector<4x128xf32>
    %c1_151 = arith.constant 1 : index
    %c0_152 = arith.constant 0 : index
    %c0_153 = arith.constant 0 : index
    %169 = vector.load %arg20[%c1_151, %c0_152, %c0_153] : memref<3x4x4xbf16, #tpu.memory_space<vmem>>, vector<1x4x4xbf16>
    %170 = vector.shape_cast %169 : vector<1x4x4xbf16> to vector<4x4xbf16>
    %cst_154 = arith.constant dense<0.000000e+00> : vector<4x128xf32>
    %171 = tpu.matmul %170, %161, %cst_154 {dimension_numbers = #tpu.dot_dimension_numbers<[1], [0], [0], [1], [0, 0, 1, 1], [], []>} : vector<4x4xbf16>, vector<4x128xbf16>, vector<4x128xf32> -> vector<4x128xf32>
    %172 = arith.truncf %171 : vector<4x128xf32> to vector<4x128xbf16>
    %c1_155 = arith.constant 1 : index
    %c0_156 = arith.constant 0 : index
    %c0_157 = arith.constant 0 : index
    %173 = vector.load %arg21[%c1_155, %c0_156, %c0_157] : memref<3x128x128xbf16, #tpu.memory_space<vmem>>, vector<1x128x128xbf16>
    %174 = vector.shape_cast %173 : vector<1x128x128xbf16> to vector<128x128xbf16>
    %cst_158 = arith.constant dense<0.000000e+00> : vector<4x128xf32>
    %175 = tpu.matmul %172, %174, %cst_158 {dimension_numbers = #tpu.dot_dimension_numbers<[1], [0], [0], [1], [0, 0, 1, 1], [], []>} : vector<4x128xbf16>, vector<128x128xbf16>, vector<4x128xf32> -> vector<4x128xf32>
    %176 = arith.addf %168, %175 : vector<4x128xf32>
    %c2_159 = arith.constant 2 : index
    %c0_160 = arith.constant 0 : index
    %c0_161 = arith.constant 0 : index
    %177 = vector.load %arg20[%c2_159, %c0_160, %c0_161] : memref<3x4x4xbf16, #tpu.memory_space<vmem>>, vector<1x4x4xbf16>
    %178 = vector.shape_cast %177 : vector<1x4x4xbf16> to vector<4x4xbf16>
    %cst_162 = arith.constant dense<0.000000e+00> : vector<4x128xf32>
    %179 = tpu.matmul %178, %161, %cst_162 {dimension_numbers = #tpu.dot_dimension_numbers<[1], [0], [0], [1], [0, 0, 1, 1], [], []>} : vector<4x4xbf16>, vector<4x128xbf16>, vector<4x128xf32> -> vector<4x128xf32>
    %180 = arith.truncf %179 : vector<4x128xf32> to vector<4x128xbf16>
    %c2_163 = arith.constant 2 : index
    %c0_164 = arith.constant 0 : index
    %c0_165 = arith.constant 0 : index
    %181 = vector.load %arg21[%c2_163, %c0_164, %c0_165] : memref<3x128x128xbf16, #tpu.memory_space<vmem>>, vector<1x128x128xbf16>
    %182 = vector.shape_cast %181 : vector<1x128x128xbf16> to vector<128x128xbf16>
    %cst_166 = arith.constant dense<0.000000e+00> : vector<4x128xf32>
    %183 = tpu.matmul %180, %182, %cst_166 {dimension_numbers = #tpu.dot_dimension_numbers<[1], [0], [0], [1], [0, 0, 1, 1], [], []>} : vector<4x128xbf16>, vector<128x128xbf16>, vector<4x128xf32> -> vector<4x128xf32>
    %184 = arith.addf %176, %183 : vector<4x128xf32>
    %c0_167 = arith.constant 0 : index
    %c0_168 = arith.constant 0 : index
    %185 = vector.load %arg22[%c0_167, %c0_168] : memref<128x128xbf16, #tpu.memory_space<vmem>>, vector<128x128xbf16>
    %cst_169 = arith.constant dense<0.000000e+00> : vector<4x128xf32>
    %186 = tpu.matmul %89, %185, %cst_169 {dimension_numbers = #tpu.dot_dimension_numbers<[1], [0], [0], [1], [0, 0, 1, 1], [], []>} : vector<4x128xbf16>, vector<128x128xbf16>, vector<4x128xf32> -> vector<4x128xf32>
    %187 = arith.addf %184, %186 : vector<4x128xf32>
    %c0_170 = arith.constant 0 : index
    %c0_171 = arith.constant 0 : index
    %188 = vector.load %arg23[%c0_170, %c0_171] : memref<1x128xf32, #tpu.memory_space<vmem>>, vector<1x128xf32>
    %189 = vector.broadcast %188 : vector<1x128xf32> to vector<4x128xf32>
    %190 = arith.addf %187, %189 : vector<4x128xf32>
    %cst_172 = arith.constant 0.000000e+00 : f32
    %191 = vector.broadcast %cst_172 : f32 to vector<4x128xf32>
    %192 = arith.maximumf %190, %191 : vector<4x128xf32>
    %193 = arith.truncf %192 : vector<4x128xf32> to vector<4x128xbf16>
    %c0_173 = arith.constant 0 : index
    %c0_174 = arith.constant 0 : index
    %c0_175 = arith.constant 0 : index
    %194 = vector.load %arg24[%c0_173, %c0_174, %c0_175] : memref<3x8x4xbf16, #tpu.memory_space<vmem>>, vector<1x8x4xbf16>
    %195 = vector.shape_cast %194 : vector<1x8x4xbf16> to vector<8x4xbf16>
    %cst_176 = arith.constant dense<0.000000e+00> : vector<8x128xf32>
    %196 = tpu.matmul %195, %193, %cst_176 {dimension_numbers = #tpu.dot_dimension_numbers<[1], [0], [0], [1], [0, 0, 1, 1], [], []>} : vector<8x4xbf16>, vector<4x128xbf16>, vector<8x128xf32> -> vector<8x128xf32>
    %197 = arith.truncf %196 : vector<8x128xf32> to vector<8x128xbf16>
    %c0_177 = arith.constant 0 : index
    %c0_178 = arith.constant 0 : index
    %c0_179 = arith.constant 0 : index
    %198 = vector.load %arg25[%c0_177, %c0_178, %c0_179] : memref<3x128x128xbf16, #tpu.memory_space<vmem>>, vector<1x128x128xbf16>
    %199 = vector.shape_cast %198 : vector<1x128x128xbf16> to vector<128x128xbf16>
    %cst_180 = arith.constant dense<0.000000e+00> : vector<8x128xf32>
    %200 = tpu.matmul %197, %199, %cst_180 {dimension_numbers = #tpu.dot_dimension_numbers<[1], [0], [0], [1], [0, 0, 1, 1], [], []>} : vector<8x128xbf16>, vector<128x128xbf16>, vector<8x128xf32> -> vector<8x128xf32>
    %c1_181 = arith.constant 1 : index
    %c0_182 = arith.constant 0 : index
    %c0_183 = arith.constant 0 : index
    %201 = vector.load %arg24[%c1_181, %c0_182, %c0_183] : memref<3x8x4xbf16, #tpu.memory_space<vmem>>, vector<1x8x4xbf16>
    %202 = vector.shape_cast %201 : vector<1x8x4xbf16> to vector<8x4xbf16>
    %cst_184 = arith.constant dense<0.000000e+00> : vector<8x128xf32>
    %203 = tpu.matmul %202, %193, %cst_184 {dimension_numbers = #tpu.dot_dimension_numbers<[1], [0], [0], [1], [0, 0, 1, 1], [], []>} : vector<8x4xbf16>, vector<4x128xbf16>, vector<8x128xf32> -> vector<8x128xf32>
    %204 = arith.truncf %203 : vector<8x128xf32> to vector<8x128xbf16>
    %c1_185 = arith.constant 1 : index
    %c0_186 = arith.constant 0 : index
    %c0_187 = arith.constant 0 : index
    %205 = vector.load %arg25[%c1_185, %c0_186, %c0_187] : memref<3x128x128xbf16, #tpu.memory_space<vmem>>, vector<1x128x128xbf16>
    %206 = vector.shape_cast %205 : vector<1x128x128xbf16> to vector<128x128xbf16>
    %cst_188 = arith.constant dense<0.000000e+00> : vector<8x128xf32>
    %207 = tpu.matmul %204, %206, %cst_188 {dimension_numbers = #tpu.dot_dimension_numbers<[1], [0], [0], [1], [0, 0, 1, 1], [], []>} : vector<8x128xbf16>, vector<128x128xbf16>, vector<8x128xf32> -> vector<8x128xf32>
    %208 = arith.addf %200, %207 : vector<8x128xf32>
    %c2_189 = arith.constant 2 : index
    %c0_190 = arith.constant 0 : index
    %c0_191 = arith.constant 0 : index
    %209 = vector.load %arg24[%c2_189, %c0_190, %c0_191] : memref<3x8x4xbf16, #tpu.memory_space<vmem>>, vector<1x8x4xbf16>
    %210 = vector.shape_cast %209 : vector<1x8x4xbf16> to vector<8x4xbf16>
    %cst_192 = arith.constant dense<0.000000e+00> : vector<8x128xf32>
    %211 = tpu.matmul %210, %193, %cst_192 {dimension_numbers = #tpu.dot_dimension_numbers<[1], [0], [0], [1], [0, 0, 1, 1], [], []>} : vector<8x4xbf16>, vector<4x128xbf16>, vector<8x128xf32> -> vector<8x128xf32>
    %212 = arith.truncf %211 : vector<8x128xf32> to vector<8x128xbf16>
    %c2_193 = arith.constant 2 : index
    %c0_194 = arith.constant 0 : index
    %c0_195 = arith.constant 0 : index
    %213 = vector.load %arg25[%c2_193, %c0_194, %c0_195] : memref<3x128x128xbf16, #tpu.memory_space<vmem>>, vector<1x128x128xbf16>
    %214 = vector.shape_cast %213 : vector<1x128x128xbf16> to vector<128x128xbf16>
    %cst_196 = arith.constant dense<0.000000e+00> : vector<8x128xf32>
    %215 = tpu.matmul %212, %214, %cst_196 {dimension_numbers = #tpu.dot_dimension_numbers<[1], [0], [0], [1], [0, 0, 1, 1], [], []>} : vector<8x128xbf16>, vector<128x128xbf16>, vector<8x128xf32> -> vector<8x128xf32>
    %216 = arith.addf %208, %215 : vector<8x128xf32>
    %c0_197 = arith.constant 0 : index
    %c0_198 = arith.constant 0 : index
    %217 = vector.load %arg26[%c0_197, %c0_198] : memref<128x128xbf16, #tpu.memory_space<vmem>>, vector<128x128xbf16>
    %cst_199 = arith.constant dense<0.000000e+00> : vector<8x128xf32>
    %218 = tpu.matmul %60, %217, %cst_199 {dimension_numbers = #tpu.dot_dimension_numbers<[1], [0], [0], [1], [0, 0, 1, 1], [], []>} : vector<8x128xbf16>, vector<128x128xbf16>, vector<8x128xf32> -> vector<8x128xf32>
    %219 = arith.addf %216, %218 : vector<8x128xf32>
    %c0_200 = arith.constant 0 : index
    %c0_201 = arith.constant 0 : index
    %220 = vector.load %arg27[%c0_200, %c0_201] : memref<1x128xf32, #tpu.memory_space<vmem>>, vector<1x128xf32>
    %221 = vector.broadcast %220 : vector<1x128xf32> to vector<8x128xf32>
    %222 = arith.addf %219, %221 : vector<8x128xf32>
    %cst_202 = arith.constant 0.000000e+00 : f32
    %223 = vector.broadcast %cst_202 : f32 to vector<8x128xf32>
    %224 = arith.maximumf %222, %223 : vector<8x128xf32>
    %225 = arith.truncf %224 : vector<8x128xf32> to vector<8x128xbf16>
    %c0_203 = arith.constant 0 : index
    %c0_204 = arith.constant 0 : index
    %c0_205 = arith.constant 0 : index
    %226 = vector.load %arg28[%c0_203, %c0_204, %c0_205] : memref<3x16x8xbf16, #tpu.memory_space<vmem>>, vector<1x16x8xbf16>
    %227 = vector.shape_cast %226 : vector<1x16x8xbf16> to vector<16x8xbf16>
    %cst_206 = arith.constant dense<0.000000e+00> : vector<16x128xf32>
    %228 = tpu.matmul %227, %225, %cst_206 {dimension_numbers = #tpu.dot_dimension_numbers<[1], [0], [0], [1], [0, 0, 1, 1], [], []>} : vector<16x8xbf16>, vector<8x128xbf16>, vector<16x128xf32> -> vector<16x128xf32>
    %229 = arith.truncf %228 : vector<16x128xf32> to vector<16x128xbf16>
    %c0_207 = arith.constant 0 : index
    %c0_208 = arith.constant 0 : index
    %c0_209 = arith.constant 0 : index
    %230 = vector.load %arg29[%c0_207, %c0_208, %c0_209] : memref<3x128x128xbf16, #tpu.memory_space<vmem>>, vector<1x128x128xbf16>
    %231 = vector.shape_cast %230 : vector<1x128x128xbf16> to vector<128x128xbf16>
    %cst_210 = arith.constant dense<0.000000e+00> : vector<16x128xf32>
    %232 = tpu.matmul %229, %231, %cst_210 {dimension_numbers = #tpu.dot_dimension_numbers<[1], [0], [0], [1], [0, 0, 1, 1], [], []>} : vector<16x128xbf16>, vector<128x128xbf16>, vector<16x128xf32> -> vector<16x128xf32>
    %c1_211 = arith.constant 1 : index
    %c0_212 = arith.constant 0 : index
    %c0_213 = arith.constant 0 : index
    %233 = vector.load %arg28[%c1_211, %c0_212, %c0_213] : memref<3x16x8xbf16, #tpu.memory_space<vmem>>, vector<1x16x8xbf16>
    %234 = vector.shape_cast %233 : vector<1x16x8xbf16> to vector<16x8xbf16>
    %cst_214 = arith.constant dense<0.000000e+00> : vector<16x128xf32>
    %235 = tpu.matmul %234, %225, %cst_214 {dimension_numbers = #tpu.dot_dimension_numbers<[1], [0], [0], [1], [0, 0, 1, 1], [], []>} : vector<16x8xbf16>, vector<8x128xbf16>, vector<16x128xf32> -> vector<16x128xf32>
    %236 = arith.truncf %235 : vector<16x128xf32> to vector<16x128xbf16>
    %c1_215 = arith.constant 1 : index
    %c0_216 = arith.constant 0 : index
    %c0_217 = arith.constant 0 : index
    %237 = vector.load %arg29[%c1_215, %c0_216, %c0_217] : memref<3x128x128xbf16, #tpu.memory_space<vmem>>, vector<1x128x128xbf16>
    %238 = vector.shape_cast %237 : vector<1x128x128xbf16> to vector<128x128xbf16>
    %cst_218 = arith.constant dense<0.000000e+00> : vector<16x128xf32>
    %239 = tpu.matmul %236, %238, %cst_218 {dimension_numbers = #tpu.dot_dimension_numbers<[1], [0], [0], [1], [0, 0, 1, 1], [], []>} : vector<16x128xbf16>, vector<128x128xbf16>, vector<16x128xf32> -> vector<16x128xf32>
    %240 = arith.addf %232, %239 : vector<16x128xf32>
    %c2_219 = arith.constant 2 : index
    %c0_220 = arith.constant 0 : index
    %c0_221 = arith.constant 0 : index
    %241 = vector.load %arg28[%c2_219, %c0_220, %c0_221] : memref<3x16x8xbf16, #tpu.memory_space<vmem>>, vector<1x16x8xbf16>
    %242 = vector.shape_cast %241 : vector<1x16x8xbf16> to vector<16x8xbf16>
    %cst_222 = arith.constant dense<0.000000e+00> : vector<16x128xf32>
    %243 = tpu.matmul %242, %225, %cst_222 {dimension_numbers = #tpu.dot_dimension_numbers<[1], [0], [0], [1], [0, 0, 1, 1], [], []>} : vector<16x8xbf16>, vector<8x128xbf16>, vector<16x128xf32> -> vector<16x128xf32>
    %244 = arith.truncf %243 : vector<16x128xf32> to vector<16x128xbf16>
    %c2_223 = arith.constant 2 : index
    %c0_224 = arith.constant 0 : index
    %c0_225 = arith.constant 0 : index
    %245 = vector.load %arg29[%c2_223, %c0_224, %c0_225] : memref<3x128x128xbf16, #tpu.memory_space<vmem>>, vector<1x128x128xbf16>
    %246 = vector.shape_cast %245 : vector<1x128x128xbf16> to vector<128x128xbf16>
    %cst_226 = arith.constant dense<0.000000e+00> : vector<16x128xf32>
    %247 = tpu.matmul %244, %246, %cst_226 {dimension_numbers = #tpu.dot_dimension_numbers<[1], [0], [0], [1], [0, 0, 1, 1], [], []>} : vector<16x128xbf16>, vector<128x128xbf16>, vector<16x128xf32> -> vector<16x128xf32>
    %248 = arith.addf %240, %247 : vector<16x128xf32>
    %c0_227 = arith.constant 0 : index
    %c0_228 = arith.constant 0 : index
    %249 = vector.load %arg30[%c0_227, %c0_228] : memref<128x128xbf16, #tpu.memory_space<vmem>>, vector<128x128xbf16>
    %cst_229 = arith.constant dense<0.000000e+00> : vector<16x128xf32>
    %250 = tpu.matmul %31, %249, %cst_229 {dimension_numbers = #tpu.dot_dimension_numbers<[1], [0], [0], [1], [0, 0, 1, 1], [], []>} : vector<16x128xbf16>, vector<128x128xbf16>, vector<16x128xf32> -> vector<16x128xf32>
    %251 = arith.addf %248, %250 : vector<16x128xf32>
    %c0_230 = arith.constant 0 : index
    %c0_231 = arith.constant 0 : index
    %252 = vector.load %arg31[%c0_230, %c0_231] : memref<1x128xf32, #tpu.memory_space<vmem>>, vector<1x128xf32>
    %253 = vector.broadcast %252 : vector<1x128xf32> to vector<16x128xf32>
    %254 = arith.addf %251, %253 : vector<16x128xf32>
    %cst_232 = arith.constant 0.000000e+00 : f32
    %255 = vector.broadcast %cst_232 : f32 to vector<16x128xf32>
    %256 = arith.maximumf %254, %255 : vector<16x128xf32>
    %257 = arith.truncf %256 : vector<16x128xf32> to vector<16x128xbf16>
    %c0_233 = arith.constant 0 : index
    %c0_234 = arith.constant 0 : index
    %c0_235 = arith.constant 0 : index
    %258 = vector.load %arg32[%c0_233, %c0_234, %c0_235] : memref<3x16x16xbf16, #tpu.memory_space<vmem>>, vector<1x16x16xbf16>
    %259 = vector.shape_cast %258 : vector<1x16x16xbf16> to vector<16x16xbf16>
    %cst_236 = arith.constant dense<0.000000e+00> : vector<16x128xf32>
    %260 = tpu.matmul %259, %257, %cst_236 {dimension_numbers = #tpu.dot_dimension_numbers<[1], [0], [0], [1], [0, 0, 1, 1], [], []>} : vector<16x16xbf16>, vector<16x128xbf16>, vector<16x128xf32> -> vector<16x128xf32>
    %261 = arith.truncf %260 : vector<16x128xf32> to vector<16x128xbf16>
    %c0_237 = arith.constant 0 : index
    %c0_238 = arith.constant 0 : index
    %c0_239 = arith.constant 0 : index
    %262 = vector.load %arg33[%c0_237, %c0_238, %c0_239] : memref<3x128x16xbf16, #tpu.memory_space<vmem>>, vector<1x128x16xbf16>
    %263 = vector.shape_cast %262 : vector<1x128x16xbf16> to vector<128x16xbf16>
    %cst_240 = arith.constant dense<0.000000e+00> : vector<16x16xf32>
    %264 = tpu.matmul %261, %263, %cst_240 {dimension_numbers = #tpu.dot_dimension_numbers<[1], [0], [0], [1], [0, 0, 1, 1], [], []>} : vector<16x128xbf16>, vector<128x16xbf16>, vector<16x16xf32> -> vector<16x16xf32>
    %c1_241 = arith.constant 1 : index
    %c0_242 = arith.constant 0 : index
    %c0_243 = arith.constant 0 : index
    %265 = vector.load %arg32[%c1_241, %c0_242, %c0_243] : memref<3x16x16xbf16, #tpu.memory_space<vmem>>, vector<1x16x16xbf16>
    %266 = vector.shape_cast %265 : vector<1x16x16xbf16> to vector<16x16xbf16>
    %cst_244 = arith.constant dense<0.000000e+00> : vector<16x128xf32>
    %267 = tpu.matmul %266, %257, %cst_244 {dimension_numbers = #tpu.dot_dimension_numbers<[1], [0], [0], [1], [0, 0, 1, 1], [], []>} : vector<16x16xbf16>, vector<16x128xbf16>, vector<16x128xf32> -> vector<16x128xf32>
    %268 = arith.truncf %267 : vector<16x128xf32> to vector<16x128xbf16>
    %c1_245 = arith.constant 1 : index
    %c0_246 = arith.constant 0 : index
    %c0_247 = arith.constant 0 : index
    %269 = vector.load %arg33[%c1_245, %c0_246, %c0_247] : memref<3x128x16xbf16, #tpu.memory_space<vmem>>, vector<1x128x16xbf16>
    %270 = vector.shape_cast %269 : vector<1x128x16xbf16> to vector<128x16xbf16>
    %cst_248 = arith.constant dense<0.000000e+00> : vector<16x16xf32>
    %271 = tpu.matmul %268, %270, %cst_248 {dimension_numbers = #tpu.dot_dimension_numbers<[1], [0], [0], [1], [0, 0, 1, 1], [], []>} : vector<16x128xbf16>, vector<128x16xbf16>, vector<16x16xf32> -> vector<16x16xf32>
    %272 = arith.addf %264, %271 : vector<16x16xf32>
    %c2_249 = arith.constant 2 : index
    %c0_250 = arith.constant 0 : index
    %c0_251 = arith.constant 0 : index
    %273 = vector.load %arg32[%c2_249, %c0_250, %c0_251] : memref<3x16x16xbf16, #tpu.memory_space<vmem>>, vector<1x16x16xbf16>
    %274 = vector.shape_cast %273 : vector<1x16x16xbf16> to vector<16x16xbf16>
    %cst_252 = arith.constant dense<0.000000e+00> : vector<16x128xf32>
    %275 = tpu.matmul %274, %257, %cst_252 {dimension_numbers = #tpu.dot_dimension_numbers<[1], [0], [0], [1], [0, 0, 1, 1], [], []>} : vector<16x16xbf16>, vector<16x128xbf16>, vector<16x128xf32> -> vector<16x128xf32>
    %276 = arith.truncf %275 : vector<16x128xf32> to vector<16x128xbf16>
    %c2_253 = arith.constant 2 : index
    %c0_254 = arith.constant 0 : index
    %c0_255 = arith.constant 0 : index
    %277 = vector.load %arg33[%c2_253, %c0_254, %c0_255] : memref<3x128x16xbf16, #tpu.memory_space<vmem>>, vector<1x128x16xbf16>
    %278 = vector.shape_cast %277 : vector<1x128x16xbf16> to vector<128x16xbf16>
    %cst_256 = arith.constant dense<0.000000e+00> : vector<16x16xf32>
    %279 = tpu.matmul %276, %278, %cst_256 {dimension_numbers = #tpu.dot_dimension_numbers<[1], [0], [0], [1], [0, 0, 1, 1], [], []>} : vector<16x128xbf16>, vector<128x16xbf16>, vector<16x16xf32> -> vector<16x16xf32>
    %280 = arith.addf %272, %279 : vector<16x16xf32>
    %c0_257 = arith.constant 0 : index
    %c0_258 = arith.constant 0 : index
    %281 = vector.load %arg34[%c0_257, %c0_258] : memref<1x16xf32, #tpu.memory_space<vmem>>, vector<1x16xf32>
    %282 = vector.broadcast %281 : vector<1x16xf32> to vector<16x16xf32>
    %283 = arith.addf %280, %282 : vector<16x16xf32>
    %c0_259 = arith.constant 0 : index
    %c0_260 = arith.constant 0 : index
    %284 = vector.load %arg35[%c0_259, %c0_260] : memref<32x16xf32, #tpu.memory_space<vmem>>, vector<32x16xf32>
    %cst_261 = arith.constant dense<0.000000e+00> : vector<32x16xf32>
    %285 = tpu.matmul %284, %283, %cst_261 {dimension_numbers = #tpu.dot_dimension_numbers<[1], [0], [0], [1], [0, 0, 1, 1], [], []>} : vector<32x16xf32>, vector<16x16xf32>, vector<32x16xf32> -> vector<32x16xf32>
    %c0_262 = arith.constant 0 : index
    %c0_263 = arith.constant 0 : index
    %286 = vector.load %arg36[%c0_262, %c0_263] : memref<16x32xf32, #tpu.memory_space<vmem>>, vector<16x32xf32>
    %cst_264 = arith.constant dense<0.000000e+00> : vector<32x32xf32>
    %287 = tpu.matmul %285, %286, %cst_264 {dimension_numbers = #tpu.dot_dimension_numbers<[1], [0], [0], [1], [0, 0, 1, 1], [], []>} : vector<32x16xf32>, vector<16x32xf32>, vector<32x32xf32> -> vector<32x32xf32>
    %c0_265 = arith.constant 0 : index
    %c0_266 = arith.constant 0 : index
    %c0_267 = arith.constant 0 : index
    %288 = vector.load %arg37[%c0_265, %c0_266, %c0_267] : memref<1x32x32xf32, #tpu.memory_space<vmem>>, vector<1x32x32xf32>
    %289 = vector.shape_cast %288 : vector<1x32x32xf32> to vector<32x32xf32>
    %290 = vector.shape_cast %287 : vector<32x32xf32> to vector<1x32x32xf32>
    tpu.vector_store %arg37[%c0_265, %c0_266, %c0_267], %290 {strides = array<i32>} : memref<1x32x32xf32, #tpu.memory_space<vmem>>, vector<1x32x32xf32>,
    return
  }
  func.func @transform_0(%arg0: i32) -> (i32, i32, i32) {
    %c0_i32 = arith.constant 0 : i32
    %c0_i32_0 = arith.constant 0 : i32
    %c0_i32_1 = arith.constant 0 : i32
    return %arg0, %c0_i32, %c0_i32_0 : i32, i32, i32
  }
  func.func @transform_1(%arg0: i32) -> (i32, i32, i32) {
    %c0_i32 = arith.constant 0 : i32
    %c0_i32_0 = arith.constant 0 : i32
    %c0_i32_1 = arith.constant 0 : i32
    return %arg0, %c0_i32, %c0_i32_0 : i32, i32, i32
  }
  func.func @transform_2(%arg0: i32) -> (i32, i32, i32) {
    %c0_i32 = arith.constant 0 : i32
    %c0_i32_0 = arith.constant 0 : i32
    %c0_i32_1 = arith.constant 0 : i32
    %c0_i32_2 = arith.constant 0 : i32
    return %c0_i32, %c0_i32_0, %c0_i32_1 : i32, i32, i32
  }
  func.func @transform_3(%arg0: i32) -> (i32, i32, i32) {
    %c0_i32 = arith.constant 0 : i32
    %c0_i32_0 = arith.constant 0 : i32
    %c0_i32_1 = arith.constant 0 : i32
    %c0_i32_2 = arith.constant 0 : i32
    return %c0_i32, %c0_i32_0, %c0_i32_1 : i32, i32, i32
  }
  func.func @transform_4(%arg0: i32) -> (i32, i32) {
    %c0_i32 = arith.constant 0 : i32
    %c0_i32_0 = arith.constant 0 : i32
    %c0_i32_1 = arith.constant 0 : i32
    return %c0_i32, %c0_i32_0 : i32, i32
  }
  func.func @transform_5(%arg0: i32) -> (i32, i32, i32) {
    %c0_i32 = arith.constant 0 : i32
    %c0_i32_0 = arith.constant 0 : i32
    %c0_i32_1 = arith.constant 0 : i32
    %c0_i32_2 = arith.constant 0 : i32
    return %c0_i32, %c0_i32_0, %c0_i32_1 : i32, i32, i32
  }
  func.func @transform_6(%arg0: i32) -> (i32, i32, i32) {
    %c0_i32 = arith.constant 0 : i32
    %c0_i32_0 = arith.constant 0 : i32
    %c0_i32_1 = arith.constant 0 : i32
    %c0_i32_2 = arith.constant 0 : i32
    return %c0_i32, %c0_i32_0, %c0_i32_1 : i32, i32, i32
  }
  func.func @transform_7(%arg0: i32) -> (i32, i32) {
    %c0_i32 = arith.constant 0 : i32
    %c0_i32_0 = arith.constant 0 : i32
    %c0_i32_1 = arith.constant 0 : i32
    return %c0_i32, %c0_i32_0 : i32, i32
  }
  func.func @transform_8(%arg0: i32) -> (i32, i32, i32) {
    %c0_i32 = arith.constant 0 : i32
    %c0_i32_0 = arith.constant 0 : i32
    %c0_i32_1 = arith.constant 0 : i32
    %c0_i32_2 = arith.constant 0 : i32
    return %c0_i32, %c0_i32_0, %c0_i32_1 : i32, i32, i32
  }
  func.func @transform_9(%arg0: i32) -> (i32, i32, i32) {
    %c0_i32 = arith.constant 0 : i32
    %c0_i32_0 = arith.constant 0 : i32
    %c0_i32_1 = arith.constant 0 : i32
    %c0_i32_2 = arith.constant 0 : i32
    return %c0_i32, %c0_i32_0, %c0_i32_1 : i32, i32, i32
  }
  func.func @transform_10(%arg0: i32) -> (i32, i32) {
    %c0_i32 = arith.constant 0 : i32
    %c0_i32_0 = arith.constant 0 : i32
    %c0_i32_1 = arith.constant 0 : i32
    return %c0_i32, %c0_i32_0 : i32, i32
  }
  func.func @transform_11(%arg0: i32) -> (i32, i32, i32) {
    %c0_i32 = arith.constant 0 : i32
    %c0_i32_0 = arith.constant 0 : i32
    %c0_i32_1 = arith.constant 0 : i32
    %c0_i32_2 = arith.constant 0 : i32
    return %c0_i32, %c0_i32_0, %c0_i32_1 : i32, i32, i32
  }
  func.func @transform_12(%arg0: i32) -> (i32, i32, i32) {
    %c0_i32 = arith.constant 0 : i32
    %c0_i32_0 = arith.constant 0 : i32
    %c0_i32_1 = arith.constant 0 : i32
    %c0_i32_2 = arith.constant 0 : i32
    return %c0_i32, %c0_i32_0, %c0_i32_1 : i32, i32, i32
  }
  func.func @transform_13(%arg0: i32) -> (i32, i32) {
    %c0_i32 = arith.constant 0 : i32
    %c0_i32_0 = arith.constant 0 : i32
    %c0_i32_1 = arith.constant 0 : i32
    return %c0_i32, %c0_i32_0 : i32, i32
  }
  func.func @transform_14(%arg0: i32) -> (i32, i32) {
    %c0_i32 = arith.constant 0 : i32
    %c0_i32_0 = arith.constant 0 : i32
    %c0_i32_1 = arith.constant 0 : i32
    return %c0_i32, %c0_i32_0 : i32, i32
  }
  func.func @transform_15(%arg0: i32) -> (i32, i32) {
    %c0_i32 = arith.constant 0 : i32
    %c0_i32_0 = arith.constant 0 : i32
    %c0_i32_1 = arith.constant 0 : i32
    return %c0_i32, %c0_i32_0 : i32, i32
  }
  func.func @transform_16(%arg0: i32) -> (i32, i32, i32) {
    %c0_i32 = arith.constant 0 : i32
    %c0_i32_0 = arith.constant 0 : i32
    %c0_i32_1 = arith.constant 0 : i32
    %c0_i32_2 = arith.constant 0 : i32
    return %c0_i32, %c0_i32_0, %c0_i32_1 : i32, i32, i32
  }
  func.func @transform_17(%arg0: i32) -> (i32, i32, i32) {
    %c0_i32 = arith.constant 0 : i32
    %c0_i32_0 = arith.constant 0 : i32
    %c0_i32_1 = arith.constant 0 : i32
    %c0_i32_2 = arith.constant 0 : i32
    return %c0_i32, %c0_i32_0, %c0_i32_1 : i32, i32, i32
  }
  func.func @transform_18(%arg0: i32) -> (i32, i32) {
    %c0_i32 = arith.constant 0 : i32
    %c0_i32_0 = arith.constant 0 : i32
    %c0_i32_1 = arith.constant 0 : i32
    return %c0_i32, %c0_i32_0 : i32, i32
  }
  func.func @transform_19(%arg0: i32) -> (i32, i32, i32) {
    %c0_i32 = arith.constant 0 : i32
    %c0_i32_0 = arith.constant 0 : i32
    %c0_i32_1 = arith.constant 0 : i32
    %c0_i32_2 = arith.constant 0 : i32
    return %c0_i32, %c0_i32_0, %c0_i32_1 : i32, i32, i32
  }
  func.func @transform_20(%arg0: i32) -> (i32, i32, i32) {
    %c0_i32 = arith.constant 0 : i32
    %c0_i32_0 = arith.constant 0 : i32
    %c0_i32_1 = arith.constant 0 : i32
    %c0_i32_2 = arith.constant 0 : i32
    return %c0_i32, %c0_i32_0, %c0_i32_1 : i32, i32, i32
  }
  func.func @transform_21(%arg0: i32) -> (i32, i32) {
    %c0_i32 = arith.constant 0 : i32
    %c0_i32_0 = arith.constant 0 : i32
    %c0_i32_1 = arith.constant 0 : i32
    return %c0_i32, %c0_i32_0 : i32, i32
  }
  func.func @transform_22(%arg0: i32) -> (i32, i32) {
    %c0_i32 = arith.constant 0 : i32
    %c0_i32_0 = arith.constant 0 : i32
    %c0_i32_1 = arith.constant 0 : i32
    return %c0_i32, %c0_i32_0 : i32, i32
  }
  func.func @transform_23(%arg0: i32) -> (i32, i32, i32) {
    %c0_i32 = arith.constant 0 : i32
    %c0_i32_0 = arith.constant 0 : i32
    %c0_i32_1 = arith.constant 0 : i32
    %c0_i32_2 = arith.constant 0 : i32
    return %c0_i32, %c0_i32_0, %c0_i32_1 : i32, i32, i32
  }
  func.func @transform_24(%arg0: i32) -> (i32, i32, i32) {
    %c0_i32 = arith.constant 0 : i32
    %c0_i32_0 = arith.constant 0 : i32
    %c0_i32_1 = arith.constant 0 : i32
    %c0_i32_2 = arith.constant 0 : i32
    return %c0_i32, %c0_i32_0, %c0_i32_1 : i32, i32, i32
  }
  func.func @transform_25(%arg0: i32) -> (i32, i32) {
    %c0_i32 = arith.constant 0 : i32
    %c0_i32_0 = arith.constant 0 : i32
    %c0_i32_1 = arith.constant 0 : i32
    return %c0_i32, %c0_i32_0 : i32, i32
  }
  func.func @transform_26(%arg0: i32) -> (i32, i32) {
    %c0_i32 = arith.constant 0 : i32
    %c0_i32_0 = arith.constant 0 : i32
    %c0_i32_1 = arith.constant 0 : i32
    return %c0_i32, %c0_i32_0 : i32, i32
  }
  func.func @transform_27(%arg0: i32) -> (i32, i32, i32) {
    %c0_i32 = arith.constant 0 : i32
    %c0_i32_0 = arith.constant 0 : i32
    %c0_i32_1 = arith.constant 0 : i32
    %c0_i32_2 = arith.constant 0 : i32
    return %c0_i32, %c0_i32_0, %c0_i32_1 : i32, i32, i32
  }
  func.func @transform_28(%arg0: i32) -> (i32, i32, i32) {
    %c0_i32 = arith.constant 0 : i32
    %c0_i32_0 = arith.constant 0 : i32
    %c0_i32_1 = arith.constant 0 : i32
    %c0_i32_2 = arith.constant 0 : i32
    return %c0_i32, %c0_i32_0, %c0_i32_1 : i32, i32, i32
  }
  func.func @transform_29(%arg0: i32) -> (i32, i32) {
    %c0_i32 = arith.constant 0 : i32
    %c0_i32_0 = arith.constant 0 : i32
    %c0_i32_1 = arith.constant 0 : i32
    return %c0_i32, %c0_i32_0 : i32, i32
  }
  func.func @transform_30(%arg0: i32) -> (i32, i32) {
    %c0_i32 = arith.constant 0 : i32
    %c0_i32_0 = arith.constant 0 : i32
    %c0_i32_1 = arith.constant 0 : i32
    return %c0_i32, %c0_i32_0 : i32, i32
  }
  func.func @transform_31(%arg0: i32) -> (i32, i32, i32) {
    %c0_i32 = arith.constant 0 : i32
    %c0_i32_0 = arith.constant 0 : i32
    %c0_i32_1 = arith.constant 0 : i32
    %c0_i32_2 = arith.constant 0 : i32
    return %c0_i32, %c0_i32_0, %c0_i32_1 : i32, i32, i32
  }
  func.func @transform_32(%arg0: i32) -> (i32, i32, i32) {
    %c0_i32 = arith.constant 0 : i32
    %c0_i32_0 = arith.constant 0 : i32
    %c0_i32_1 = arith.constant 0 : i32
    %c0_i32_2 = arith.constant 0 : i32
    return %c0_i32, %c0_i32_0, %c0_i32_1 : i32, i32, i32
  }
  func.func @transform_33(%arg0: i32) -> (i32, i32) {
    %c0_i32 = arith.constant 0 : i32
    %c0_i32_0 = arith.constant 0 : i32
    %c0_i32_1 = arith.constant 0 : i32
    return %c0_i32, %c0_i32_0 : i32, i32
  }
  func.func @transform_34(%arg0: i32) -> (i32, i32) {
    %c0_i32 = arith.constant 0 : i32
    %c0_i32_0 = arith.constant 0 : i32
    %c0_i32_1 = arith.constant 0 : i32
    return %c0_i32, %c0_i32_0 : i32, i32
  }
  func.func @transform_35(%arg0: i32) -> (i32, i32) {
    %c0_i32 = arith.constant 0 : i32
    %c0_i32_0 = arith.constant 0 : i32
    %c0_i32_1 = arith.constant 0 : i32
    return %c0_i32, %c0_i32_0 : i32, i32
  }
  func.func @transform_36(%arg0: i32) -> (i32, i32, i32) {
    %c0_i32 = arith.constant 0 : i32
    %c0_i32_0 = arith.constant 0 : i32
    %c0_i32_1 = arith.constant 0 : i32
    return %arg0, %c0_i32, %c0_i32_0 : i32, i32, i32
  }
}

</mosaic_0001>

<bundles_post_ra>
// kernel: semask_fine_forward.2
= control target key start
LH: loop header
LB: loop body
LE: loop exit
PB: predicated region body
PF: predicated region fallthrough
CT: control target
= control target key end

     0   :  { %s3133_s0 = inlined_call_operand.vmem [shape: f32[2,32,96], index: 0, kind: input, shape index: {}]   ;;  %s3134_s1 = inlined_call_operand.vmem [shape: f32[2,4,128], index: 1, kind: input, shape index: {}]   ;;  %s3135_s2 = inlined_call_operand.hbm [shape: bf16[3,16,32], index: 2, kind: input, shape index: {}]   ;;  %s3136_s3 = inlined_call_operand.hbm [shape: bf16[3,96,128], index: 3, kind: input, shape index: {}]   ;;  %s3137_s4 = inlined_call_operand.vmem [shape: f32[1,128], index: 4, kind: input, shape index: {}]   ;;  %s3138_s5 = inlined_call_operand.vmem [shape: bf16[3,8,16], index: 5, kind: input, shape index: {}]   ;;  %s3139_s6 = inlined_call_operand.vmem [shape: bf16[3,128,128], index: 6, kind: input, shape index: {}]   ;;  %s3140_s7 = inlined_call_operand.vmem [shape: f32[1,128], index: 7, kind: input, shape index: {}]   ;;  %s3141_s8 = inlined_call_operand.vmem [shape: bf16[3,4,8], index: 8, kind: input, shape index: {}]   ;;  %s3142_s9 = inlined_call_operand.vmem [shape: bf16[3,128,128], index: 9, kind: input, shape index: {}]   ;;  %s3143_s10 = inlined_call_operand.vmem [shape: f32[1,128], index: 10, kind: input, shape index: {}]   ;;  %s3144_s11 = inlined_call_operand.hbm [shape: bf16[3,4,4], index: 11, kind: input, shape index: {}]   ;;  %s3145_s12 = inlined_call_operand.vmem [shape: bf16[3,128,128], index: 12, kind: input, shape index: {}]   ;;  %s3146_s13 = inlined_call_operand.vmem [shape: f32[1,128], index: 13, kind: input, shape index: {}]   ;;  %s3147_s14 = inlined_call_operand.hbm [shape: f32[128,128], index: 14, kind: input, shape index: {}]   ;;  %s3148_s15 = inlined_call_operand.vmem [shape: f32[2,1,128], index: 15, kind: output, shape index: {}]  }
   0x1   :  { %3150 = sst [smem:[#allocation13_spill]] %s3135_s2 }
   0x2   :  { %3151 = sst [smem:[#allocation14_spill]] %s3136_s3 }
   0x3   :  { %3152 = sst [smem:[#allocation15_spill]] %s3144_s11 }
   0x4   :  { %3153 = sst [smem:[#allocation16_spill]] %s3148_s15 }
   0x5   :  { %20 = vsyncpa [#allocation3], 0 }
   0x6   :  { %21 = vsyncpa [#allocation5], 0 }
   0x7   :  { %22 = vsyncpa [#allocation8], 0  ;;  %s2806_s18 = smov 0  }
   0x8 LB: > { %3154 = sst [smem:[#allocation12_spill]] %s2714_s18  ;;  %s2812_s19 = sadd.s32 4294967295, %s2714_s18   ;;  %s2714_s18 = sphi %s2806_s18, %s28_s18  }
   0x9   : > { %p1920_p0 = scmp.ge.s32.totalorder %s2714_s18, 1  ;;  %p384_p1 = scmp.lt.s32.totalorder %s2714_s18, 3 }
   0xa   : > { %p2546_p2 = scmp.eq.s32.totalorder %s2812_s19, 0  ;;  %s3155_s3 = sld [smem:[#allocation14_spill]] }
   0xb   : > { %p2820_p3 = pnand %p1920_p0, %p384_p1  ;;  %s3157_s2 = sld [smem:[#allocation13_spill]] }
   0xc   : > { %s2716_s27 = smov [#allocation4]   ;;  %s2717_s30 = smov [#allocation2]  }
   0xd   : > { %p2533_p4 = pneg %p2820_p3  ;;  %s411_s28 = sshll.u32 %s2716_s27, 4  ;;  %s412_s28 = int_to_ptr.vmem [resolvable:$true] %s411_s28 }
   0xe   : > { %s397_s16 = sshll.u32 %s2717_s30, 4  ;;  %s3159_s11 = sld [smem:[#allocation15_spill]]  ;;  %s398_s16 = int_to_ptr.vmem [resolvable:$true] %s397_s16 }
   0xf   : > { %p2831_p5 = pnand %p2546_p2, %p2533_p4  ;;  %s2718_s24 = smov 64  }
  0x10   : > { %s409_s22 = sshll.u32 %s3155_s3, 4  ;;  %s2719_s25 = smov 4   ;;  %s410_s22 = int_to_ptr.hbm [resolvable:$true] %s409_s22 }
  0x11   : > { %s395_s26 = sshll.u32 %s3157_s2, 4  ;;  %s2720_s27 = smov [#allocation6]   ;;  %s396_s26 = int_to_ptr.hbm [resolvable:$true] %s395_s26 }
  0x12   : > { %2539 = dma.hbm_to_vmem [thread:$0]  (!%p2831_p5), %s410_s22, 2304, %s412_s28, [#allocation5], %s2718_s24, %s2718_s24, %s2719_s25  }
  0x13   : > { %2536 = dma.hbm_to_vmem [thread:$0]  (!%p2831_p5), %s396_s26, 384, %s398_s16, [#allocation3], %s2718_s24, %s2718_s24, %s2719_s25  }
  0x14   : > { %s444_s21 = sshll.u32 %s3159_s11, 4  ;;  %s446_s2 = sshll.u32 %s2720_s27, 4  ;;  %s445_s21 = int_to_ptr.hbm [resolvable:$true] %s444_s21  ;;  %s447_s2 = int_to_ptr.vmem [resolvable:$true] %s446_s2 }
  0x15   : > { %s2721_s3 = smov 32   ;;  %s2722_s18 = smov 2  }
  0x16   : > { %2542 = dma.hbm_to_vmem [thread:$0]  (!%p2831_p5), %s445_s21, 96, %s447_s2, [#allocation5], %s2721_s3, %s2721_s3, %s2722_s18  }
  0x17   : > { %s464_s17 = sshll.u32 %s3147_s14, 4  ;;  %s2723_s20 = smov [#allocation7]   ;;  %s465_s17 = int_to_ptr.hbm [resolvable:$true] %s464_s17 }
  0x18   : > { %s466_s11 = sshll.u32 %s2723_s20, 4  ;;  %s2724_s22 = smov 128   ;;  %s467_s11 = int_to_ptr.vmem [resolvable:$true] %s466_s11 }
  0x19   : > { %s2725_s28 = smov 8   ;;  %497 = sbr.rel (%p2820_p3) target bundleno = 1341 (0x53d), region = 80 }
  0x1a   : > { %2545 = dma.hbm_to_vmem [thread:$0]  (!%p2831_p5), %s465_s17, 2048, %s467_s11, [#allocation8], %s2724_s22, %s2724_s22, %s2725_s28  }
  0x1e   : > { %2701 = dma.done.wait (%p2546_p2), [#allocation3], 384  }
  0x1f   : > { %2703 = vsyncadd (%p2546_p2), [#allocation3], 4294966912 }
  0x20   : > { %2705 = dma.done.wait (%p2546_p2), [#allocation5], 2400  }
  0x21   : > { %2707 = vsyncadd (%p2546_p2), [#allocation5], 4294964896 }
  0x22   : > { %2709 = dma.done.wait (%p2546_p2), [#allocation8], 2048  }
  0x23   : > { %2711 = vsyncadd (%p2546_p2), [#allocation8], 4294965248  ;;  %p563_p6 = scmp.lt.s32.totalorder %s2812_s19, 1  ;;  %v2437_v5 = vld [vmem:[#allocation4 + $0x58] sm:$0xff]  ;;  %v2430_v6 = vld [vmem:[#allocation4 + $0x28] sm:$0xff]  ;;  %vm589_vm0 = vcmask 261120  }
  0x24   : > { %701 = vmatpush.bf16.msra.mxu2 %v2437_v5  ;;  %754 = vmatpush.bf16.msra.mxu3 %v2430_v6  ;;  %v2436_v8 = vld [vmem:[#allocation4 + $0x50] sm:$0xff]  ;;  %v2429_v9 = vld [vmem:[#allocation4 + $0x20] sm:$0xff]  ;;  %v2424_v10 = vld [vmem:[#allocation2] sm:$0xff]  ;;  %vm695_vm1 = vcmask 785408   ;;  %vm870_vm2 = vcmask 130048   ;;  %vm1172_vm3 = vcmask 1043456  }
  0x25   : > { %s3163_s19 = smov (!%p563_p6, %s2812_s19), 1  ;;  %v2431_v11 = vld [vmem:[#allocation2 + $0x8] sm:$0xff]  ;;  %v2435_v12 = vld [vmem:[#allocation4 + $0x48] sm:$0xff]  ;;  %v2428_v13 = vld [vmem:[#allocation4 + $0x18] sm:$0xff]  ;;  %vm1168_vm4 = vcmask 64512   ;;  %vm1474_vm5 = vcmask 1041408  }
  0x26   : > { %s2423_s2 = sshll.u32 %s3163_s19, 5  ;;  %v2438_v14 = vld [vmem:[#allocation2 + $0x10] sm:$0xff]  ;;  %v2434_v15 = vld [vmem:[#allocation4 + $0x40] sm:$0xff]  ;;  %v2427_v16 = vld [vmem:[#allocation4 + $0x10] sm:$0xff]  ;;  %vm1470_vm6 = vcmask 31744   ;;  %s1933_s26 = sshll.u32 %s3163_s19, 2 }
  0x27   : > { %s567_s15 = scalar_lea.vmem %s3133_s0, %s2423_s2  ;;  %v2433_v17 = vld [vmem:[#allocation4 + $0x38] sm:$0xff]  ;;  %v2426_v18 = vld [vmem:[#allocation4 + $0x8] sm:$0xff]  ;;  %v2432_v20 = vld [vmem:[#allocation4 + $0x30] sm:$0xff]  ;;  %s571_s21 = scalar_lea.vmem %s3134_s1, %s1933_s26 }
  0x28   : > { %v578_v0 = vld [vmem:[%s567_s15 + $0x10] sm:$0xff]  ;;  %v579_v1 = vld [vmem:[%s567_s15 + $0x18] sm:$0xff]  ;;  %v576_v2 = vld [vmem:[%s567_s15] sm:$0xff]  ;;  %702 = vmatpush.bf16.msra.mxu2 %v2436_v8  ;;  %755 = vmatpush.bf16.msra.mxu3 %v2429_v9  ;;  %s3160_s27 = sld [smem:[#allocation16_spill]] }
  0x29   : > { %v581_v3 = vpack.c.bf16 %v579_v1, %v578_v0  ;;  %v577_v4 = vld [vmem:[%s567_s15 + $0x8] sm:$0xff]  ;;  %v2444_v19 = vld [vmem:[#allocation4 + $0x88] sm:$0xff]  ;;  %v2425_v21 = vld [vmem:[#allocation4] sm:$0xff] }
  0x2a   : > { %v580_v7 = vpack.c.bf16 %v577_v4, %v576_v2  ;;  %v2443_v22 = vld [vmem:[#allocation4 + $0x80] sm:$0xff]  ;;  %v2442_v23 = vld [vmem:[#allocation4 + $0x78] sm:$0xff]  ;;  %v2441_v24 = vld [vmem:[#allocation4 + $0x70] sm:$0xff] }
  0x2b   : > { %599 = vmatpush.bf16.msra.mxu0 %v581_v3  ;;  %637 = vmatpush.bf16.msra.mxu1 %v581_v3  ;;  %v2440_v25 = vld [vmem:[#allocation4 + $0x68] sm:$0xff]  ;;  %v2439_v26 = vld [vmem:[#allocation4 + $0x60] sm:$0xff]  ;;  %v2451_v46 = vld [vmem:[%s3139_s6 + $0x30] sm:$0xff] }
  0x2c   : > { %703 = vmatpush.bf16.msra.mxu2 %v2435_v12  ;;  %756 = vmatpush.bf16.msra.mxu3 %v2428_v13  ;;  %v2452_v42 = vld [vmem:[%s3139_s6 + $0x38] sm:$0xff]  ;;  %v2572_v45 = vld [vmem:[%s3137_s4] ss:$0 sm:$0xff]  ;;  %v2459_v47 = vld [vmem:[%s3139_s6 + $0x70] sm:$0xff] }
  0x2d   : > { %v2460_v43 = vld [vmem:[%s3139_s6 + $0x78] sm:$0xff]  ;;  %v2450_v52 = vld [vmem:[%s3139_s6 + $0x28] sm:$0xff]  ;;  %v2449_v57 = vld [vmem:[%s3139_s6 + $0x20] sm:$0xff] }
  0x2e   : > { %v2458_v53 = vld [vmem:[%s3139_s6 + $0x68] sm:$0xff]  ;;  %v2468_v59 = vld [vmem:[%s3139_s6 + $0xb8] sm:$0xff]  ;;  %v2457_v60 = vld [vmem:[%s3139_s6 + $0x60] sm:$0xff]  ;;  %s574_s30 = scalar_lea.vmem %s3160_s27, %s3163_s19 }
  0x2f   : > { %600 = vmatpush.bf16.msra.mxu0 %v580_v7  ;;  %638 = vmatpush.bf16.msra.mxu1 %v580_v7  ;;  %v869_v61 = vld [vmem:[%s3138_s5] sm:$0xf]  ;;  %v2025_v62 = vld [vmem:[%s3138_s5 + $0x4] sm:$0xf]  ;;  %v2448_v63 = vld [vmem:[%s3139_s6 + $0x18] sm:$0xff] }
  0x30   : > { %704 = vmatpush.bf16.msra.mxu2 %v2434_v15  ;;  %757 = vmatpush.bf16.msra.mxu3 %v2427_v16  ;;  %v2467_v0 = vld [vmem:[%s3139_s6 + $0xb0] sm:$0xff]  ;;  %v2456_v1 = vld [vmem:[%s3139_s6 + $0x58] sm:$0xff]  ;;  %v2446_v5 = vld [vmem:[%s3139_s6 + $0x8] sm:$0xff] }
  0x31   : > { %v2447_v2 = vld [vmem:[%s3139_s6 + $0x10] sm:$0xff]  ;;  %v2107_v6 = vld [vmem:[%s3138_s5 + $0x8] sm:$0xf]  ;;  %v2465_v8 = vld [vmem:[%s3139_s6 + $0xa0] sm:$0xff] }
  0x32   : > { %1938 = vmatmul.msk.bf16.vlgmr.msra.gmra.mxu0 %vm589_vm0, %v2424_v10  ;;  %1943 = vmatmul.msk.bf16.vlgmr.msra.gmra.mxu1 %vm589_vm0, %v2431_v11  ;;  %v2455_v4 = vld [vmem:[%s3139_s6 + $0x50] sm:$0xff]  ;;  %v2454_v9 = vld [vmem:[%s3139_s6 + $0x48] sm:$0xff]  ;;  %v2464_v10 = vld [vmem:[%s3139_s6 + $0x98] sm:$0xff] }
  0x33   : > { %783 = vmatpush.bf16.msrb.mxu0 %v581_v3  ;;  %846 = vmatpush.bf16.msrb.mxu1 %v2444_v19  ;;  %v2466_v3 = vld [vmem:[%s3139_s6 + $0xa8] sm:$0xff]  ;;  %v2453_v11 = vld [vmem:[%s3139_s6 + $0x40] sm:$0xff]  ;;  %v2463_v12 = vld [vmem:[%s3139_s6 + $0x90] sm:$0xff] }
  0x34   : > { %705 = vmatpush.bf16.msra.mxu2 %v2433_v17  ;;  %758 = vmatpush.bf16.msra.mxu3 %v2426_v18  ;;  %v2462_v13 = vld [vmem:[%s3139_s6 + $0x88] sm:$0xff] }
  0x37   : > { %784 = vmatpush.bf16.msrb.mxu0 %v580_v7  ;;  %847 = vmatpush.bf16.msrb.mxu1 %v2443_v22  ;;  %v2445_v7 = vld [vmem:[%s3139_s6] sm:$0xff] }
  0x38   : > { %706 = vmatpush.bf16.msra.mxu2 %v2432_v20  ;;  %759 = vmatpush.bf16.msra.mxu3 %v2425_v21 }
  0x3b   : > { %848 = vmatpush.bf16.msrb.mxu1 %v2442_v23 }
  0x3c   : > { %988 = vmatpush.bf16.msrb.mxu3 %v2460_v43  ;;  %v2492_v43 = vld [vmem:[%s3142_s9 + $0xb8] sm:$0xff] }
  0x3f   : > { %849 = vmatpush.bf16.msrb.mxu1 %v2441_v24 }
  0x40   : > { %989 = vmatpush.bf16.msrb.mxu3 %v2459_v47  ;;  %v2240_v47 = vld [vmem:[%s3141_s8 + $0x4] sm:$0x3] }
  0x42   : > { %1998 = vmatmul.msk.bf16.vlgmr.msrb.gmra.mxu0 %vm589_vm0, %v2438_v14  ;;  %v2461_v14 = vld [vmem:[%s3139_s6 + $0x80] sm:$0xff] }
  0x43   : > { %850 = vmatpush.bf16.msrb.mxu1 %v2440_v25  ;;  %v2484_v25 = vld [vmem:[%s3142_s9 + $0x78] sm:$0xff] }
  0x44   : > { %990 = vmatpush.bf16.msrb.mxu3 %v2458_v53  ;;  %v2489_v53 = vld [vmem:[%s3142_s9 + $0xa0] sm:$0xff] }
  0x47   : > { %851 = vmatpush.bf16.msrb.mxu1 %v2439_v26  ;;  %v2483_v26 = vld [vmem:[%s3142_s9 + $0x70] sm:$0xff] }
  0x48   : > { %991 = vmatpush.bf16.msrb.mxu3 %v2457_v60  ;;  %v2469_v60 = vld [vmem:[%s3142_s9] sm:$0xff] }
  0x4b   : > { %1049 = vmatpush.bf16.msra.mxu1 %v2452_v42 }
  0x4c   : > { %992 = vmatpush.bf16.msrb.mxu3 %v2456_v1 }
  0x4f   : > { %1050 = vmatpush.bf16.msra.mxu1 %v2451_v46  ;;  %v1167_v46 = vld [vmem:[%s3141_s8] sm:$0x3] }
  0x50   : > { %993 = vmatpush.bf16.msrb.mxu3 %v2455_v4 }
  0x53   : > { %1051 = vmatpush.bf16.msra.mxu1 %v2450_v52  ;;  %v2473_v52 = vld [vmem:[%s3142_s9 + $0x20] sm:$0xff] }
  0x54   : > { %994 = vmatpush.bf16.msrb.mxu3 %v2454_v9  ;;  %v2508_v9 = vld [vmem:[%s3145_s12 + $0x78] sm:$0xff] }
  0x57   : > { %1052 = vmatpush.bf16.msra.mxu1 %v2449_v57  ;;  %v2487_v57 = vld [vmem:[%s3142_s9 + $0x90] sm:$0xff] }
  0x58   : > { %995 = vmatpush.bf16.msrb.mxu3 %v2453_v11  ;;  %v2507_v11 = vld [vmem:[%s3145_s12 + $0x70] sm:$0xff] }
  0x5b   : > { %1053 = vmatpush.bf16.msra.mxu1 %v2448_v63  ;;  %v2485_v63 = vld [vmem:[%s3142_s9 + $0x80] sm:$0xff] }
  0x5f   : > { %1054 = vmatpush.bf16.msra.mxu1 %v2447_v2 }
  0x63   : > { %1055 = vmatpush.bf16.msra.mxu1 %v2446_v5 }
  0x67   : > { %1056 = vmatpush.bf16.msra.mxu1 %v2445_v7 }
  0xaf   : > { %v602_v27 = vpop.f32.mrf.mxu0  ;;  %v640_v28 = vpop.f32.mrf.mxu1 }
  0xb7   : > { %v604_v29 = vpop.f32.mrf.mxu0  ;;  %v642_v30 = vpop.f32.mrf.mxu1 }
  0xb8   : > { %v607_v31 = vpack.c.bf16 %v604_v29, %v602_v27  ;;  %v645_v32 = vpack.c.bf16 %v642_v30, %v640_v28  ;;  %v2482_v28 = vld [vmem:[%s3142_s9 + $0x68] sm:$0xff]  ;;  %v2481_v30 = vld [vmem:[%s3142_s9 + $0x60] sm:$0xff] }
  0xba   : > { %1968 = vmatmul.msk.bf16.vlgmr.msra.gmra.mxu2 %vm695_vm1, %v645_v32  ;;  %1993 = vmatmul.msk.bf16.vlgmr.msra.gmra.mxu3 %vm695_vm1, %v607_v31  ;;  %v2480_v31 = vld [vmem:[%s3142_s9 + $0x58] sm:$0xff] }
  0xbf   : > { %v786_v33 = vpop.f32.mrf.mxu0 }
  0xc7   : > { %v788_v34 = vpop.f32.mrf.mxu0 }
  0xc8   : > { %v791_v35 = vpack.c.bf16 %v788_v34, %v786_v33  ;;  %v2573_v34 = vld [vmem:[%s3140_s7] ss:$0 sm:$0xff] }
  0xca   : > { %2023 = vmatmul.msk.bf16.vlgmr.msrb.gmra.mxu1 %vm695_vm1, %v791_v35 }
  0xcb   : > { %1290 = vmatpush.bf16.msrb.mxu1 %v2484_v25 }
  0xcf   : > { %1291 = vmatpush.bf16.msrb.mxu1 %v2483_v26  ;;  %v2500_v26 = vld [vmem:[%s3145_s12 + $0x38] sm:$0xff] }
  0xd3   : > { %1292 = vmatpush.bf16.msrb.mxu1 %v2482_v28  ;;  %v2516_v28 = vld [vmem:[%s3145_s12 + $0xb8] sm:$0xff] }
  0xd7   : > { %1293 = vmatpush.bf16.msrb.mxu1 %v2481_v30  ;;  %v1469_v30 = vld [vmem:[#allocation6] sm:$0x3] }
  0xdb   : > { %1294 = vmatpush.bf16.msrb.mxu1 %v2480_v31  ;;  %v1509_v31 = vld [vmem:[#allocation6 + $0x2] sm:$0x3] }
 0x13d   : > { %v708_v36 = vpop.f32.mrf.mxu2  ;;  %v761_v37 = vpop.f32.mrf.mxu3 }
 0x13e   : > { %v762_v39 = vadd.f32 %v761_v37, %v708_v36  ;;  %v2479_v36 = vld [vmem:[%s3142_s9 + $0x50] sm:$0xff] }
 0x13f   : > { %1295 = vmatpush.bf16.msrb.mxu1 %v2479_v36  ;;  %v2514_v36 = vld [vmem:[%s3145_s12 + $0xa8] sm:$0xff] }
 0x145   : > { %v710_v40 = vpop.f32.mrf.mxu2  ;;  %v763_v41 = vpop.f32.mrf.mxu3 }
 0x146   : > { %v764_v48 = vadd.f32 %v763_v41, %v710_v40  ;;  %v2476_v41 = vld [vmem:[%s3142_s9 + $0x38] sm:$0xff] }
 0x147   : > { %v853_v38 = vpop.f32.mrf.mxu1 }
 0x148   : > { %v858_v44 = vadd.f32 %v853_v38, %v762_v39 }
 0x14a   : > { %v864_v50 = vadd.f32 %v2572_v45, %v858_v44 }
 0x14c   : > { %v866_v55 = vmax.f32 %v864_v50, 0.0  ;;  %v2474_v50 = vld [vmem:[%s3142_s9 + $0x28] sm:$0xff] }
 0x14f   : > { %v855_v49 = vpop.f32.mrf.mxu1 }
 0x150   : > { %v859_v51 = vadd.f32 %v855_v49, %v764_v48  ;;  %v2475_v48 = vld [vmem:[%s3142_s9 + $0x30] sm:$0xff] }
 0x151   : > { %v2491_v49 = vld [vmem:[%s3142_s9 + $0xb0] sm:$0xff] }
 0x152   : > { %v865_v54 = vadd.f32 %v2572_v45, %v859_v51  ;;  %v2158_v45 = vld [vmem:[%s3141_s8 + $0x2] sm:$0x3]  ;;  %v2490_v51 = vld [vmem:[%s3142_s9 + $0xa8] sm:$0xff] }
 0x154   : > { %v867_v56 = vmax.f32 %v865_v54, 0.0  ;;  %v2472_v54 = vld [vmem:[%s3142_s9 + $0x18] sm:$0xff] }
 0x156   : > { %v868_v58 = vpack.c.bf16 %v867_v56, %v866_v55  ;;  %v2488_v55 = vld [vmem:[%s3142_s9 + $0x98] sm:$0xff]  ;;  %v2471_v56 = vld [vmem:[%s3142_s9 + $0x10] sm:$0xff] }
 0x158   : > { %881 = vmatpush.bf16.msra.mxu0 %v868_v58  ;;  %916 = vmatpush.bf16.msrb.mxu2 %v868_v58 }
 0x15b   : > { %2024 = vmatmul.msk.bf16.vlgmr.msra.gmra.mxu0 %vm870_vm2, %v869_v61  ;;  %2026 = vmatmul.msk.bf16.vlgmr.msrb.gmra.mxu2 %vm870_vm2, %v2025_v62  ;;  %v2486_v61 = vld [vmem:[%s3142_s9 + $0x88] sm:$0xff]  ;;  %v2477_v62 = vld [vmem:[%s3142_s9 + $0x40] sm:$0xff] }
 0x15c   : > { %1074 = vmatpush.bf16.msrb.mxu0 %v868_v58  ;;  %1146 = vmatpush.bf16.msra.mxu2 %v2468_v59  ;;  %v2470_v58 = vld [vmem:[%s3142_s9 + $0x8] sm:$0xff] }
 0x15d   : > { %v2478_v59 = vld [vmem:[%s3142_s9 + $0x48] sm:$0xff] }
 0x15e   : > { %1296 = vmatpush.bf16.msrb.mxu1 %v2478_v59  ;;  %v1795_v59 = vld [vmem:[#allocation7 + $0x70] sm:$0xff] }
 0x160   : > { %1147 = vmatpush.bf16.msra.mxu2 %v2467_v0 }
 0x162   : > { %1297 = vmatpush.bf16.msrb.mxu1 %v2477_v62  ;;  %v1792_v62 = vld [vmem:[#allocation7 + $0x58] sm:$0xff] }
 0x164   : > { %1148 = vmatpush.bf16.msra.mxu2 %v2466_v3 }
 0x168   : > { %1149 = vmatpush.bf16.msra.mxu2 %v2465_v8 }
 0x16b   : > { %2108 = vmatmul.msk.bf16.vlgmr.msrb.gmra.mxu0 %vm870_vm2, %v2107_v6 }
 0x16c   : > { %1150 = vmatpush.bf16.msra.mxu2 %v2464_v10 }
 0x170   : > { %1151 = vmatpush.bf16.msra.mxu2 %v2463_v12  ;;  %v2506_v12 = vld [vmem:[%s3145_s12 + $0x68] sm:$0xff] }
 0x174   : > { %1152 = vmatpush.bf16.msra.mxu2 %v2462_v13 }
 0x178   : > { %1153 = vmatpush.bf16.msra.mxu2 %v2461_v14 }
 0x1d8   : > { %v883_v15 = vpop.f32.mrf.mxu0 }
 0x1d9   : > { %v887_v16 = vpack.c.bf16 %v883_v15, %v883_v15  ;;  %v2505_v15 = vld [vmem:[%s3145_s12 + $0x60] sm:$0xff] }
 0x1db   : > { %1057 = vmatmul.bf16.vlgmr.msra.gmra.mxu1 %v887_v16 }
 0x1de   : > { %v918_v17 = vpop.f32.mrf.mxu2 }
 0x1df   : > { %v922_v18 = vpack.c.bf16 %v918_v17, %v918_v17  ;;  %v2574_v17 = vld [vmem:[%s3143_s10] ss:$0 sm:$0xff] }
 0x1e0   : > { %v885_v19 = vpop.f32.mrf.mxu0 }
 0x1e1   : > { %996 = vmatmul.bf16.vlgmr.msrb.gmra.mxu3 %v922_v18  ;;  %v2504_v18 = vld [vmem:[%s3145_s12 + $0x58] sm:$0xff] }
 0x1e6   : > { %v920_v20 = vpop.f32.mrf.mxu2 }
 0x1e8   : > { %v1076_v21 = vpop.f32.mrf.mxu0 }
 0x1e9   : > { %v1080_v22 = vpack.c.bf16 %v1076_v21, %v1076_v21 }
 0x1eb   : > { %1154 = vmatmul.bf16.vlgmr.msra.gmra.mxu2 %v1080_v22 }
 0x1f0   : > { %v1078_v23 = vpop.f32.mrf.mxu0 }
 0x1f1   : > { %v2503_v23 = vld [vmem:[%s3145_s12 + $0x50] sm:$0xff] }
 0x258   : > { %v1058_v24 = vpop.f32.mrf.mxu1 }
 0x260   : > { %v1060_v27 = vpop.f32.mrf.mxu1 }
 0x264   : > { %v997_v29 = vpop.f32.mrf.mxu3 }
 0x265   : > { %v1059_v33 = vadd.f32 %v1058_v24, %v997_v29 }
 0x26c   : > { %v999_v32 = vpop.f32.mrf.mxu3 }
 0x26d   : > { %v1667_v32 = vld [vmem:[#allocation6 + $0x4] sm:$0x3] }
 0x26e   : > { %v1155_v35 = vpop.f32.mrf.mxu2 }
 0x26f   : > { %v1159_v37 = vadd.f32 %v1155_v35, %v1059_v33  ;;  %v2499_v33 = vld [vmem:[%s3145_s12 + $0x30] sm:$0xff]  ;;  %v2498_v35 = vld [vmem:[%s3145_s12 + $0x28] sm:$0xff] }
 0x271   : > { %v1164_v38 = vadd.f32 %v2573_v34, %v1159_v37  ;;  %v2515_v34 = vld [vmem:[%s3145_s12 + $0xb0] sm:$0xff]  ;;  %v2497_v37 = vld [vmem:[%s3145_s12 + $0x20] sm:$0xff] }
 0x273   : > { %v1165_v39 = vmax.f32 %v1164_v38, 0.0  ;;  %v2513_v38 = vld [vmem:[%s3145_s12 + $0xa0] sm:$0xff] }
 0x275   : > { %v1166_v40 = vpack.c.bf16 %v1165_v39, %v1165_v39  ;;  %v2496_v39 = vld [vmem:[%s3145_s12 + $0x18] sm:$0xff] }
 0x276   : > { %v1157_v42 = vpop.f32.mrf.mxu2 }
 0x277   : > { %v1174_v44 = vsel %vm1172_vm3, %v1166_v40, 0  ;;  %v2512_v40 = vld [vmem:[%s3145_s12 + $0x98] sm:$0xff]  ;;  %v2494_v42 = vld [vmem:[%s3145_s12 + $0x8] sm:$0xff] }
 0x278   : > { %1183 = vmatpush.bf16.msra.mxu0 %v1174_v44  ;;  %1218 = vmatpush.bf16.msra.mxu3 %v1174_v44 }
 0x279   : > { %1376 = vmatpush.bf16.msrb.mxu2 %v1174_v44  ;;  %v2502_v44 = vld [vmem:[%s3145_s12 + $0x48] sm:$0xff] }
 0x27b   : > { %2159 = vmatmul.msk.bf16.vlgmr.msra.gmra.mxu3 %vm1168_vm4, %v2158_v45  ;;  %2157 = vmatmul.msk.bf16.vlgmr.msra.gmra.mxu0 %vm1168_vm4, %v1167_v46  ;;  %v2510_v45 = vld [vmem:[%s3145_s12 + $0x88] sm:$0xff]  ;;  %v2501_v46 = vld [vmem:[%s3145_s12 + $0x40] sm:$0xff] }
 0x27c   : > { %1351 = vmatpush.bf16.msrb.mxu0 %v2476_v41  ;;  %1448 = vmatpush.bf16.msrb.mxu3 %v2492_v43  ;;  %v2495_v41 = vld [vmem:[%s3145_s12 + $0x10] sm:$0xff] }
 0x27d   : > { %2241 = vmatmul.msk.bf16.vlgmr.msrb.gmra.mxu2 %vm1168_vm4, %v2240_v47  ;;  %v2511_v43 = vld [vmem:[%s3145_s12 + $0x90] sm:$0xff]  ;;  %v2493_v47 = vld [vmem:[%s3145_s12] sm:$0xff] }
 0x280   : > { %1352 = vmatpush.bf16.msrb.mxu0 %v2475_v48  ;;  %1449 = vmatpush.bf16.msrb.mxu3 %v2491_v49  ;;  %v2509_v48 = vld [vmem:[%s3145_s12 + $0x80] sm:$0xff] }
 0x281   : > { %v1796_v49 = vld [vmem:[#allocation7 + $0x78] sm:$0xff] }
 0x284   : > { %1353 = vmatpush.bf16.msrb.mxu0 %v2474_v50  ;;  %1450 = vmatpush.bf16.msrb.mxu3 %v2490_v51 }
 0x288   : > { %1354 = vmatpush.bf16.msrb.mxu0 %v2473_v52  ;;  %1451 = vmatpush.bf16.msrb.mxu3 %v2489_v53 }
 0x28c   : > { %1355 = vmatpush.bf16.msrb.mxu0 %v2472_v54  ;;  %1452 = vmatpush.bf16.msrb.mxu3 %v2488_v55 }
 0x290   : > { %1356 = vmatpush.bf16.msrb.mxu0 %v2471_v56  ;;  %1453 = vmatpush.bf16.msrb.mxu3 %v2487_v57 }
 0x294   : > { %1357 = vmatpush.bf16.msrb.mxu0 %v2470_v58  ;;  %1454 = vmatpush.bf16.msrb.mxu3 %v2486_v61  ;;  %v1793_v61 = vld [vmem:[#allocation7 + $0x60] sm:$0xff] }
 0x298   : > { %1358 = vmatpush.bf16.msrb.mxu0 %v2469_v60  ;;  %1455 = vmatpush.bf16.msrb.mxu3 %v2485_v63  ;;  %v1794_v60 = vld [vmem:[#allocation7 + $0x68] sm:$0xff]  ;;  %v1791_v63 = vld [vmem:[#allocation7 + $0x50] sm:$0xff] }
 0x29c   : > { %1592 = vmatpush.bf16.msra.mxu0 %v2508_v9  ;;  %v1782_v9 = vld [vmem:[#allocation7 + $0x8] sm:$0xff] }
 0x2a0   : > { %1593 = vmatpush.bf16.msra.mxu0 %v2507_v11 }
 0x2a4   : > { %1594 = vmatpush.bf16.msra.mxu0 %v2506_v12 }
 0x2a8   : > { %1595 = vmatpush.bf16.msra.mxu0 %v2505_v15  ;;  %v2575_v15 = vld [vmem:[%s3146_s13] ss:$0 sm:$0xff] }
 0x2ac   : > { %1596 = vmatpush.bf16.msra.mxu0 %v2504_v18 }
 0x2b0   : > { %1597 = vmatpush.bf16.msra.mxu0 %v2503_v23 }
 0x2b4   : > { %1598 = vmatpush.bf16.msra.mxu0 %v2502_v44 }
 0x2b8   : > { %1599 = vmatpush.bf16.msra.mxu0 %v2501_v46 }
 0x2f8   : > { %v1185_v0 = vpop.f32.mrf.mxu0 }
 0x2f9   : > { %v1189_v1 = vpack.c.bf16 %v1185_v0, %v1185_v0  ;;  %v1790_v0 = vld [vmem:[#allocation7 + $0x48] sm:$0xff] }
 0x2fb   : > { %1359 = vmatmul.bf16.vlgmr.msrb.gmra.mxu0 %v1189_v1  ;;  %v1789_v1 = vld [vmem:[#allocation7 + $0x40] sm:$0xff] }
 0x2fe   : > { %v1220_v2 = vpop.f32.mrf.mxu3 }
 0x2ff   : > { %v1224_v3 = vpack.c.bf16 %v1220_v2, %v1220_v2  ;;  %v1788_v2 = vld [vmem:[#allocation7 + $0x38] sm:$0xff] }
 0x300   : > { %v1378_v4 = vpop.f32.mrf.mxu2  ;;  %v1187_v6 = vpop.f32.mrf.mxu0 }
 0x301   : > { %v1382_v5 = vpack.c.bf16 %v1378_v4, %v1378_v4  ;;  %1298 = vmatmul.bf16.vlgmr.msrb.gmra.mxu1 %v1224_v3  ;;  %v1787_v3 = vld [vmem:[#allocation7 + $0x30] sm:$0xff]  ;;  %v1786_v4 = vld [vmem:[#allocation7 + $0x28] sm:$0xff] }
 0x303   : > { %1456 = vmatmul.bf16.vlgmr.msrb.gmra.mxu3 %v1382_v5  ;;  %v1785_v5 = vld [vmem:[#allocation7 + $0x20] sm:$0xff] }
 0x306   : > { %v1222_v7 = vpop.f32.mrf.mxu3 }
 0x307   : > { %v1784_v7 = vld [vmem:[#allocation7 + $0x18] sm:$0xff] }
 0x308   : > { %v1380_v8 = vpop.f32.mrf.mxu2 }
 0x309   : > { %v1783_v8 = vld [vmem:[#allocation7 + $0x10] sm:$0xff] }
 0x378   : > { %v1360_v10 = vpop.f32.mrf.mxu0 }
 0x37e   : > { %v1299_v13 = vpop.f32.mrf.mxu1 }
 0x37f   : > { %v1361_v16 = vadd.f32 %v1360_v10, %v1299_v13  ;;  %v1781_v10 = vld [vmem:[#allocation7] sm:$0xff] }
 0x380   : > { %v1362_v14 = vpop.f32.mrf.mxu0 }
 0x386   : > { %v1457_v19 = vpop.f32.mrf.mxu3  ;;  %v1301_v21 = vpop.f32.mrf.mxu1 }
 0x387   : > { %v1461_v20 = vadd.f32 %v1457_v19, %v1361_v16 }
 0x389   : > { %v1466_v22 = vadd.f32 %v2574_v17, %v1461_v20 }
 0x38b   : > { %v1467_v24 = vmax.f32 %v1466_v22, 0.0  ;;  %v1772_v22 = vld [vmem:[%s571_s21] sm:$0xf] }
 0x38d   : > { %v1468_v25 = vpack.c.bf16 %v1467_v24, %v1467_v24 }
 0x38e   : > { %v1459_v27 = vpop.f32.mrf.mxu3 }
 0x38f   : > { %v1476_v29 = vsel %vm1474_vm5, %v1468_v25, 0 }
 0x390   : > { %1485 = vmatpush.bf16.msra.mxu2 %v1476_v29  ;;  %1520 = vmatpush.bf16.msra.mxu1 %v1476_v29 }
 0x391   : > { %1678 = vmatpush.bf16.msra.mxu3 %v1476_v29 }
 0x393   : > { %2290 = vmatmul.msk.bf16.vlgmr.msra.gmra.mxu2 %vm1470_vm6, %v1469_v30  ;;  %2291 = vmatmul.msk.bf16.vlgmr.msra.gmra.mxu1 %vm1470_vm6, %v1509_v31 }
 0x394   : > { %1653 = vmatpush.bf16.msrb.mxu2 %v2500_v26  ;;  %1750 = vmatpush.bf16.msrb.mxu1 %v2516_v28 }
 0x395   : > { %2372 = vmatmul.msk.bf16.vlgmr.msra.gmra.mxu3 %vm1470_vm6, %v1667_v32 }
 0x396   : > { %1797 = vmatpush.msrb.mxu3 %v1796_v49 }
 0x398   : > { %1654 = vmatpush.bf16.msrb.mxu2 %v2499_v33  ;;  %1751 = vmatpush.bf16.msrb.mxu1 %v2515_v34 }
 0x399   : > { %1798 = vmatpush.msrb.mxu3 %v1795_v59 }
 0x39b   : > { %1799 = vmatpush.msrb.mxu3 %v1794_v60 }
 0x39c   : > { %1655 = vmatpush.bf16.msrb.mxu2 %v2498_v35  ;;  %1752 = vmatpush.bf16.msrb.mxu1 %v2514_v36 }
 0x39d   : > { %1800 = vmatpush.msrb.mxu3 %v1793_v61 }
 0x39f   : > { %1801 = vmatpush.msrb.mxu3 %v1792_v62 }
 0x3a0   : > { %1656 = vmatpush.bf16.msrb.mxu2 %v2497_v37  ;;  %1753 = vmatpush.bf16.msrb.mxu1 %v2513_v38 }
 0x3a1   : > { %1802 = vmatpush.msrb.mxu3 %v1791_v63 }
 0x3a3   : > { %1803 = vmatpush.msrb.mxu3 %v1790_v0 }
 0x3a4   : > { %1657 = vmatpush.bf16.msrb.mxu2 %v2496_v39  ;;  %1754 = vmatpush.bf16.msrb.mxu1 %v2512_v40 }
 0x3a5   : > { %1804 = vmatpush.msrb.mxu3 %v1789_v1 }
 0x3a7   : > { %1805 = vmatpush.msrb.mxu3 %v1788_v2 }
 0x3a8   : > { %1658 = vmatpush.bf16.msrb.mxu2 %v2495_v41  ;;  %1755 = vmatpush.bf16.msrb.mxu1 %v2511_v43 }
 0x3a9   : > { %1806 = vmatpush.msrb.mxu3 %v1787_v3 }
 0x3ab   : > { %1807 = vmatpush.msrb.mxu3 %v1786_v4 }
 0x3ac   : > { %1659 = vmatpush.bf16.msrb.mxu2 %v2494_v42  ;;  %1756 = vmatpush.bf16.msrb.mxu1 %v2510_v45 }
 0x3ad   : > { %1808 = vmatpush.msrb.mxu3 %v1785_v5 }
 0x3af   : > { %1809 = vmatpush.msrb.mxu3 %v1784_v7 }
 0x3b0   : > { %1660 = vmatpush.bf16.msrb.mxu2 %v2493_v47  ;;  %1757 = vmatpush.bf16.msrb.mxu1 %v2509_v48 }
 0x3b1   : > { %1810 = vmatpush.msrb.mxu3 %v1783_v8 }
 0x3b3   : > { %1811 = vmatpush.msrb.mxu3 %v1782_v9 }
 0x3b5   : > { %1812 = vmatpush.msrb.mxu3 %v1781_v10 }
 0x410   : > { %v1522_v50 = vpop.f32.mrf.mxu1 }
 0x411   : > { %v1526_v51 = vpack.c.bf16 %v1522_v50, %v1522_v50 }
 0x413   : > { %1600 = vmatmul.bf16.vlgmr.msra.gmra.mxu0 %v1526_v51 }
 0x416   : > { %v1487_v52 = vpop.f32.mrf.mxu2 }
 0x417   : > { %v1491_v53 = vpack.c.bf16 %v1487_v52, %v1487_v52 }
 0x418   : > { %v1680_v54 = vpop.f32.mrf.mxu3  ;;  %v1524_v56 = vpop.f32.mrf.mxu1 }
 0x419   : > { %v1684_v55 = vpack.c.bf16 %v1680_v54, %v1680_v54  ;;  %1661 = vmatmul.bf16.vlgmr.msrb.gmra.mxu2 %v1491_v53 }
 0x41b   : > { %1758 = vmatmul.bf16.vlgmr.msrb.gmra.mxu1 %v1684_v55 }
 0x41e   : > { %v1489_v57 = vpop.f32.mrf.mxu2 }
 0x420   : > { %v1682_v58 = vpop.f32.mrf.mxu3 }
 0x490   : > { %v1601_v6 = vpop.f32.mrf.mxu0 }
 0x498   : > { %v1759_v11 = vpop.f32.mrf.mxu1  ;;  %v1603_v12 = vpop.f32.mrf.mxu0 }
 0x49c   : > { %v1662_v13 = vpop.f32.mrf.mxu2 }
 0x49d   : > { %v1663_v14 = vadd.f32 %v1662_v13, %v1601_v6 }
 0x49f   : > { %v1763_v16 = vadd.f32 %v1759_v11, %v1663_v14 }
 0x4a0   : > { %v1761_v17 = vpop.f32.mrf.mxu1 }
 0x4a1   : > { %v1768_v18 = vadd.f32 %v2575_v15, %v1763_v16 }
 0x4a3   : > { %v1769_v19 = vmax.f32 %v1768_v18, 0.0 }
 0x4a4   : > { %v1664_v20 = vpop.f32.mrf.mxu2 }
 0x4a5   : > { %v1770_v21 = vpack.c.bf16 %v1769_v19, %v1769_v19 }
 0x4a7   : > { %v1771_v23 = vunpack.c.l.bf16 %v1770_v21 }
 0x4a9   : > { %v1773_v24 = vmul.f32 %v1772_v22, %v1771_v23 }
 0x4ab   : > { %v1774_v25 = vsel %vm1172_vm3, %v1773_v24, 0.0 }
 0x4ac   : > { %v1775_v26 = vrot.slane %v1774_v25, 4 }
 0x4ae   : > { %v1776_v27 = vadd.f32 %v1775_v26, %v1774_v25 }
 0x4b0   : > { %v1777_v28 = vrot.slane %v1776_v27, 2 }
 0x4b2   : > { %v1778_v29 = vadd.f32 %v1777_v28, %v1776_v27 }
 0x4b4   : > { %v1779_v30 = vrot.slane %v1778_v29, 1 }
 0x4b6   : > { %v1780_v31 = vadd.f32 %v1779_v30, %v1778_v29 }
 0x4b8   : > { %1813 = vmatmul.f32.vlgmr.msrb.gmra.mxu3 %v1780_v31 }
 0x53b   : > { %v1814_v32 = vpop.f32.mrf.mxu3 }
 0x53c   : > { %1817 = vst [vmem:[%s574_s30] sm:$0x1] %v1814_v32 }
 0x53d PF: > { %s3161_s17 = sld [smem:[#allocation12_spill]] }
 0x543   : > { %s28_s18 = sadd.s32 1, %s3161_s17  }
 0x544   : > { %p25_p7 = scmp.ge.s32.totalorder %s28_s18, 4  }
 0x546   :  { %27 = sbr.rel (!%p25_p7) target bundleno = 8 (0x8), region = 146 }
 0x54b   :  { %1835 = vsyncpa [#allocation3], 1 }
 0x54c   :  { %1837 = vsyncpa [#allocation3 + $0x1], 1 }
 0x54d   :  { %1838 = vsyncpa [#allocation5], 1 }
 0x54e   :  { %1839 = vsyncpa [#allocation8], 1 }

// kernel: semask_fine_forward.3
= control target key start
LH: loop header
LB: loop body
LE: loop exit
PB: predicated region body
PF: predicated region fallthrough
CT: control target
= control target key end

     0   :  { %s6629_s6 = smov 1   ;;  %s6630_s10 = smov 2   ;;  %s7365_s0 = inlined_call_operand.smem [shape: u32[37], index: -1, kind: input, shape index: {}] }
   0x1   :  { %s6686_s5 = sld [smem:[%s7365_s0]]   ;;  %s6631_s14 = smov 3  }
   0x2   :  { %s6691_s9 = sld [smem:[%s7365_s0 + %s6629_s6]]   ;;  %s6632_s18 = smov 4  }
   0x3   :  { %s6696_s13 = sld [smem:[%s7365_s0 + %s6630_s10]]   ;;  %s6633_s22 = smov 5  }
   0x4   :  { %s6701_s17 = sld [smem:[%s7365_s0 + %s6631_s14]]   ;;  %s6634_s26 = smov 6  }
   0x5   :  { %s6706_s21 = sld [smem:[%s7365_s0 + %s6632_s18]]   ;;  %s6635_s30 = smov 7  }
   0x6   :  { %s6711_s25 = sld [smem:[%s7365_s0 + %s6633_s22]]   ;;  %s6636_s4 = smov 8  }
   0x7   :  { %7401 = sst [smem:[#allocation20_spill]] %s6686_s5  ;;  %s6637_s10 = smov 9  }
   0x8   :  { %7402 = sst [smem:[#allocation21_spill]] %s6691_s9  ;;  %s6638_s15 = smov 10  }
   0x9   :  { %7403 = sst [smem:[#allocation22_spill]] %s6696_s13  ;;  %s6639_s20 = smov 11  }
   0xa   :  { %s6716_s29 = sld [smem:[%s7365_s0 + %s6634_s26]]   ;;  %s6640_s26 = smov 12  }
   0xb   :  { %s6721_s3 = sld [smem:[%s7365_s0 + %s6635_s30]]   ;;  %s6641_s1 = smov 13  }
   0xc   :  { %s6726_s8 = sld [smem:[%s7365_s0 + %s6636_s4]]   ;;  %s6642_s7 = smov 14  }
   0xd   :  { %s6731_s14 = sld [smem:[%s7365_s0 + %s6637_s10]]   ;;  %s6644_s22 = smov 16  }
   0xe   :  { %s6736_s19 = sld [smem:[%s7365_s0 + %s6638_s15]]   ;;  %s6643_s15 = smov 15  }
   0xf   :  { %s6741_s24 = sld [smem:[%s7365_s0 + %s6639_s20]]   ;;  %s6645_s28 = smov 17  }
  0x10   :  { %s6746_s30 = sld [smem:[%s7365_s0 + %s6640_s26]]  }
  0x11   :  { %7404 = sst [smem:[#allocation23_spill]] %s6721_s3 }
  0x12   :  { %7405 = sst [smem:[#allocation24_spill]] %s6726_s8 }
  0x13   :  { %s6751_s6 = sld [smem:[%s7365_s0 + %s6641_s1]]  }
  0x14   :  { %7406 = sst [smem:[#allocation25_spill]] %s6736_s19 }
  0x15   :  { %7407 = sst [smem:[#allocation26_spill]] %s6741_s24 }
  0x16   :  { %7408 = sst [smem:[#allocation27_spill]] %s6746_s30 }
  0x17   :  { %s6756_s12 = sld [smem:[%s7365_s0 + %s6642_s7]]   ;;  %s6646_s7 = smov 18  }
  0x18   :  { %s6761_s20 = sld [smem:[%s7365_s0 + %s6643_s15]]   ;;  %s6647_s15 = smov 19  }
  0x19   :  { %7409 = sst [smem:[#allocation28_spill]] %s6751_s6 }
  0x1a   :  { %s6766_s27 = sld [smem:[%s7365_s0 + %s6644_s22]]   ;;  %s6648_s22 = smov 20  }
  0x1b   :  { %s6771_s4 = sld [smem:[%s7365_s0 + %s6645_s28]]   ;;  %s6649_s28 = smov 21  }
  0x1c   :  { %s6776_s6 = sld [smem:[%s7365_s0 + %s6646_s7]]   ;;  %s6650_s7 = smov 22  }
  0x1d   :  { %7410 = sst [smem:[#allocation29_spill]] %s6756_s12 }
  0x1e   :  { %7411 = sst [smem:[#allocation30_spill]] %s6761_s20 }
  0x1f   :  { %s6781_s20 = sld [smem:[%s7365_s0 + %s6647_s15]]   ;;  %s6651_s15 = smov 23  }
  0x20   :  { %7412 = sst [smem:[#allocation31_spill]] %s6766_s27 }
  0x21   :  { %7413 = sst [smem:[#allocation32_spill]] %s6771_s4 }
  0x22   :  { %7414 = sst [smem:[#allocation33_spill]] %s6776_s6 }
  0x23   :  { %s6786_s9 = sld [smem:[%s7365_s0 + %s6648_s22]]   ;;  %s6652_s22 = smov 24  }
  0x24   :  { %s6791_s4 = sld [smem:[%s7365_s0 + %s6649_s28]]   ;;  %s6653_s28 = smov 25  }
  0x25   :  { %s6796_s6 = sld [smem:[%s7365_s0 + %s6650_s7]]   ;;  %s6654_s7 = smov 26  }
  0x26   :  { %s6801_s12 = sld [smem:[%s7365_s0 + %s6651_s15]]   ;;  %s6655_s15 = smov 27  }
  0x27   :  { %s6811_s24 = sld [smem:[%s7365_s0 + %s6653_s28]]   ;;  %s6657_s28 = smov 29  }
  0x28   :  { %s6831_s19 = sld [smem:[%s7365_s0 + %s6657_s28]]   ;;  %s6661_s28 = smov 33  }
  0x29   :  { %7415 = sst [smem:[#allocation34_spill]] %s6786_s9 }
  0x2a   :  { %7416 = sst [smem:[#allocation35_spill]] %s6791_s4 }
  0x2b   :  { %7417 = sst [smem:[#allocation36_spill]] %s6796_s6 }
  0x2c   :  { %7418 = sst [smem:[#allocation37_spill]] %s6801_s12 }
  0x2d   :  { %s6806_s9 = sld [smem:[%s7365_s0 + %s6652_s22]]   ;;  %s6656_s22 = smov 28  }
  0x2e   :  { %s6816_s6 = sld [smem:[%s7365_s0 + %s6654_s7]]   ;;  %s6658_s7 = smov 30  }
  0x2f   :  { %s6821_s12 = sld [smem:[%s7365_s0 + %s6655_s15]]   ;;  %s6659_s15 = smov 31  }
  0x30   :  { %s6851_s30 = sld [smem:[%s7365_s0 + %s6661_s28]]  }
  0x33   :  { %7419 = sst [smem:[#allocation38_spill]] %s6806_s9 }
  0x34   :  { %7420 = sst [smem:[#allocation39_spill]] %s6816_s6 }
  0x35   :  { %7421 = sst [smem:[#allocation40_spill]] %s6821_s12 }
  0x36   :  { %s6826_s9 = sld [smem:[%s7365_s0 + %s6656_s22]]   ;;  %s6660_s22 = smov 32  }
  0x37   :  { %s6836_s6 = sld [smem:[%s7365_s0 + %s6658_s7]]   ;;  %s6662_s7 = smov 34  }
  0x38   :  { %s6841_s12 = sld [smem:[%s7365_s0 + %s6659_s15]]   ;;  %s6663_s15 = smov 35  }
  0x3c   :  { %7422 = sst [smem:[#allocation41_spill]] %s6826_s9 }
  0x3d   :  { %7423 = sst [smem:[#allocation42_spill]] %s6836_s6 }
  0x3e   :  { %7424 = sst [smem:[#allocation43_spill]] %s6841_s12 }
  0x3f   :  { %s6846_s9 = sld [smem:[%s7365_s0 + %s6660_s22]]   ;;  %s6664_s22 = smov 36  }
  0x40   :  { %s6856_s6 = sld [smem:[%s7365_s0 + %s6662_s7]]  }
  0x41   :  { %s6861_s12 = sld [smem:[%s7365_s0 + %s6663_s15]]  }
  0x45   :  { %7425 = sst [smem:[#allocation44_spill]] %s6846_s9 }
  0x46   :  { %7426 = sst [smem:[#allocation45_spill]] %s6856_s6 }
  0x47   :  { %7427 = sst [smem:[#allocation46_spill]] %s6861_s12 }
  0x48   :  { %s6866_s9 = sld [smem:[%s7365_s0 + %s6664_s22]]  }
  0x4e   :  { %7428 = sst [smem:[#allocation47_spill]] %s6866_s9 }
  0x4f   :  { %78 = vsyncpa [#allocation3], 0 }
  0x50   :  { %79 = vsyncpa [#allocation6], 0 }
  0x51   :  { %80 = vsyncpa [#allocation9], 0 }
  0x52   :  { %81 = vsyncpa [#allocation12], 0 }
  0x53   :  { %82 = vsyncpa [#allocation4], 0 }
  0x54   :  { %84 = vsyncpa [#allocation4 + $0x1], 0  ;;  %s6868_s28 = smov 0   ;;  %s6870_s1 = smov 0  }
  0x55   :  { %s6872_s2 = smov 0   ;;  %s6874_s7 = smov 0  }
  0x56 LB: > { %s7429_s13 = sld [smem:[#allocation22_spill]]  ;;  %s6889_s0 = sadd.s32 4294967295, %s6627_s7   ;;  %s6619_s1 = sphi %s6870_s1, %s7488_s1   ;;  %s6615_s28 = sphi %s6868_s28, %s7487_s28   ;;  %s6627_s7 = sphi %s6874_s7, %s7486_s7   ;;  %s6623_s2 = sphi %s6872_s2, %s7489_s2  }
  0x57   : > { %s7430_s12 = sld [smem:[#allocation46_spill]]  ;;  %s4579_s10 = sadd.s32 4294967294, %s6627_s7  }
  0x58   : > { %s7431_s8 = sld [smem:[#allocation24_spill]]  ;;  %s6893_s11 = sadd.s32 1, %s6627_s7  }
  0x59   : > { %s7432_s6 = sld [smem:[#allocation45_spill]]  ;;  %s863_s15 = sadd.s32 1, %s6623_s2 }
  0x5a   : > { %s7433_s4 = sld [smem:[#allocation35_spill]]  ;;  %s860_s16 = ssub.s32 %s6627_s7, %s6893_s11 }
  0x5b   : > { %s7434_s27 = sld [smem:[#allocation31_spill]]  ;;  %p873_p0 = scmp.ne.s32.totalorder %s6623_s2, %s6619_s1 }
  0x5c   : > { %7435 = sst [smem:[#allocation48_spill]] %s6615_s28  ;;  %p861_p1 = scmp.eq.s32.totalorder %s860_s16, 0 }
  0x5d   : > { %7436 = sst [smem:[#allocation49_spill]] %s6619_s1  ;;  %p874_p2 = scmp.eq.s32.totalorder %s6889_s0, 1 }
  0x5e   : > { %7437 = sst [smem:[#allocation50_spill]] %s6623_s2  ;;  %p879_p3 = scmp.ne.s32.totalorder %s6619_s1, %s6615_s28 }
  0x5f   : > { %7438 = sst [smem:[#allocation51_spill]] %s6627_s7  ;;  %p880_p4 = scmp.eq.s32.totalorder %s4579_s10, 1 }
  0x60   : > { %7439 = sst [smem:[#allocation52_spill]] %s6893_s11  ;;  %p6906_p5 = por %p874_p2, %p873_p0 }
  0x61   : > { %s6904_s18 = scalar_select %p861_p1, %s6623_s2, %s863_s15  }
  0x62   : > { %s7441_s22 = scalar_select %p6906_p5, 1, 0 }
  0x63   : > { %7440 = sst [smem:[#allocation53_spill]] %s6904_s18  ;;  %p6910_p6 = por %p880_p4, %p879_p3 }
  0x64   : > { %7442 = sst [smem:[#allocation54_spill]] %s7441_s22  ;;  %p4580_p7 = scmp.ge.s32.totalorder %s6627_s7, 1 }
  0x65   : > { %s7443_s23 = scalar_select %p6910_p6, 1, 0 }
  0x66   : > { %p887_p8 = scmp.lt.s32.totalorder %s6627_s7, 3  ;;  %p6232_p9 = scmp.eq.s32.totalorder %s6889_s0, 0 }
  0x67   : > { %7444 = sst [smem:[#allocation55_spill]] %s7443_s23  ;;  %s951_s10 = sshll.u32 %s7434_s27, 4  ;;  %s952_s10 = int_to_ptr.hbm [resolvable:$true] %s951_s10 }
  0x68   : > { %p6917_p10 = pnand %p4580_p7, %p887_p8  ;;  %s6665_s15 = smov [#allocation5]  }
  0x69   : > { %s953_s16 = sshll.u32 %s6665_s15, 4  ;;  %s988_s2 = sshll.u32 %s7433_s4, 4  ;;  %s954_s16 = int_to_ptr.vmem [resolvable:$true] %s953_s16  ;;  %s989_s2 = int_to_ptr.hbm [resolvable:$true] %s988_s2 }
  0x6a   : > { %p6206_p11 = pneg %p6917_p10  ;;  %s6339_s11 = sshra.s32 %s952_s10, 4  ;;  %s6340_s11 = int_to_ptr.hbm [resolvable:$true] %s6339_s11 }
  0x6b   : > { %s6341_s23 = scalar_lea.hbm %s6340_s11, 6  ;;  %s6346_s15 = scalar_lea.hbm %s7434_s27, 6 }
  0x6c   : > { %p6926_p12 = pnand %p6232_p9, %p6206_p11  ;;  %p6342_p13 = scmp.ne.s32.totalorder %s6340_s11, %s6341_s23 }
  0x6d   : > { %p6347_p3 = scmp.lt.s32.totalorder %s6340_s11, %s7434_s27  ;;  %p6348_p4 = scmp.lt.s32.totalorder %s6346_s15, %s6341_s23 }
  0x6e   : > { %p6933_p0 = pneg %p6926_p12 }
  0x6f   : > { %p6349_p7 = por %p6348_p4, %p6347_p3 }
  0x70   : > { %p6344_p1 = pnand %p6933_p0, %p6342_p13 }
  0x72   : > { %p6345_p2 = pneg %p6344_p1 }
  0x74   : > { %p6350_p8 = pnand %p6349_p7, %p6345_p2 }
  0x76   : > { %6353 = shalt.err (!%p6350_p8)
}
  0x77   : > { %s7388_s7 = smov 32   ;;  %s7389_s22 = smov 2  }
  0x78   : > { %6212 = dma.hbm_to_vmem [thread:$0]  (!%p6926_p12), %s952_s10, 96, %s954_s16, [#allocation6], %s7388_s7, %s7388_s7, %s7389_s22  }
  0x79   : > { %s6668_s9 = smov [#allocation8]   ;;  %s1034_s11 = sshll.u32 %s6831_s19, 4  ;;  %s6947_s11 = int_to_ptr.hbm [resolvable:$true] %s1034_s11 }
  0x7a   : > { %s990_s1 = sshll.u32 %s6668_s9, 4  ;;  %s6369_s23 = sshra.s32 %s989_s2, 4  ;;  %s991_s1 = int_to_ptr.vmem [resolvable:$true] %s990_s1  ;;  %s6370_s23 = int_to_ptr.hbm [resolvable:$true] %s6369_s23 }
  0x7b   : > { %s6371_s15 = scalar_lea.hbm %s6370_s23, 64  ;;  %s6376_s27 = scalar_lea.hbm %s7433_s4, 64 }
  0x7c   : > { %p6372_p11 = scmp.ne.s32.totalorder %s6370_s23, %s6371_s15  ;;  %p6377_p2 = scmp.lt.s32.totalorder %s6370_s23, %s7433_s4 }
  0x7d   : > { %p6378_p3 = scmp.lt.s32.totalorder %s6376_s27, %s6371_s15 }
  0x7e   : > { %p6374_p13 = pnand %p6372_p11, %p6933_p0 }
  0x7f   : > { %p6379_p4 = por %p6378_p3, %p6377_p2 }
  0x80   : > { %p6375_p1 = pneg %p6374_p13 }
  0x82   : > { %p6380_p7 = pnand %p6379_p4, %p6375_p1 }
  0x84   : > { %6383 = shalt.err (!%p6380_p7)
}
  0x85   : > { %s7390_s10 = smov 64   ;;  %s7391_s9 = smov 4  }
  0x86   : > { %6218 = dma.hbm_to_vmem [thread:$0]  (!%p6926_p12), %s989_s2, 1024, %s991_s1, [#allocation9], %s7390_s10, %s7390_s10, %s7391_s9  }
  0x87   : > { %s901_s16 = sshll.u32 %s6701_s17, 4  ;;  %s6671_s7 = smov [#allocation11]   ;;  %s6959_s16 = int_to_ptr.hbm [resolvable:$true] %s901_s16 }
  0x88   : > { %s1036_s23 = sshll.u32 %s6671_s7, 4  ;;  %s6399_s27 = sshra.s32 %s6947_s11, 4  ;;  %s1037_s23 = int_to_ptr.vmem [resolvable:$true] %s1036_s23  ;;  %s6400_s27 = int_to_ptr.hbm [resolvable:$true] %s6399_s27 }
  0x89   : > { %s6401_s15 = scalar_lea.hbm %s6400_s27, 64  ;;  %s6406_s22 = scalar_lea.hbm %s6831_s19, 64 }
  0x8a   : > { %p6402_p8 = scmp.ne.s32.totalorder %s6400_s27, %s6401_s15  ;;  %p6407_p1 = scmp.lt.s32.totalorder %s6400_s27, %s6831_s19 }
  0x8b   : > { %p6408_p2 = scmp.lt.s32.totalorder %s6406_s22, %s6401_s15 }
  0x8c   : > { %p6404_p11 = pnand %p6402_p8, %p6933_p0 }
  0x8d   : > { %p6409_p3 = por %p6408_p2, %p6407_p1 }
  0x8e   : > { %p6405_p13 = pneg %p6404_p11 }
  0x90   : > { %p6410_p4 = pnand %p6409_p3, %p6405_p13 }
  0x92   : > { %6413 = shalt.err (!%p6410_p4)
}
  0x93   : > { %6224 = dma.hbm_to_vmem [thread:$0]  (!%p6926_p12), %s6947_s11, 1024, %s1037_s23, [#allocation12], %s7390_s10, %s7390_s10, %s7391_s9  }
  0x94   : > { %s6672_s1 = smov [#allocation2]   ;;  %s971_s7 = sshll.u32 %s6781_s20, 4  ;;  %s6973_s7 = int_to_ptr.hbm [resolvable:$true] %s971_s7 }
  0x95   : > { %s903_s2 = sshll.u32 %s6672_s1, 4  ;;  %s6429_s22 = sshra.s32 %s6959_s16, 4  ;;  %s904_s2 = int_to_ptr.vmem [resolvable:$true] %s903_s2  ;;  %s6430_s22 = int_to_ptr.hbm [resolvable:$true] %s6429_s22 }
  0x96   : > { %s6431_s27 = scalar_lea.hbm %s6430_s22, 144  ;;  %s6436_s15 = scalar_lea.hbm %s6701_s17, 144 }
  0x97   : > { %p6432_p7 = scmp.ne.s32.totalorder %s6430_s22, %s6431_s27  ;;  %p6437_p13 = scmp.lt.s32.totalorder %s6430_s22, %s6701_s17 }
  0x98   : > { %p6438_p1 = scmp.lt.s32.totalorder %s6436_s15, %s6431_s27 }
  0x99   : > { %p6434_p8 = pnand %p6432_p7, %p6933_p0 }
  0x9a   : > { %p6439_p2 = por %p6438_p1, %p6437_p13 }
  0x9b   : > { %p6435_p11 = pneg %p6434_p8 }
  0x9d   : > { %p6440_p3 = pnand %p6439_p2, %p6435_p11 }
  0x9f   : > { %6443 = shalt.err (!%p6440_p3)
}
  0xa0   : > { %6209 = dma.hbm_to_vmem [thread:$0]  (!%p6926_p12), %s6959_s16, 2304, %s904_s2, [#allocation3], %s7390_s10, %s7390_s10, %s7391_s9  }
  0xa1   : > { %s1011_s11 = sshll.u32 %s6811_s24, 4  ;;  %s6673_s23 = smov [#allocation7]   ;;  %s6987_s11 = int_to_ptr.hbm [resolvable:$true] %s1011_s11 }
  0xa2   : > { %s973_s1 = sshll.u32 %s6673_s23, 4  ;;  %s6459_s22 = sshra.s32 %s6973_s7, 4  ;;  %s974_s1 = int_to_ptr.vmem [resolvable:$true] %s973_s1  ;;  %s6460_s22 = int_to_ptr.hbm [resolvable:$true] %s6459_s22 }
  0xa3   : > { %s6461_s27 = scalar_lea.hbm %s6460_s22, 6  ;;  %s6466_s15 = scalar_lea.hbm %s6781_s20, 6 }
  0xa4   : > { %p6462_p4 = scmp.ne.s32.totalorder %s6460_s22, %s6461_s27  ;;  %p6467_p11 = scmp.lt.s32.totalorder %s6460_s22, %s6781_s20 }
  0xa5   : > { %p6468_p13 = scmp.lt.s32.totalorder %s6466_s15, %s6461_s27 }
  0xa6   : > { %p6464_p7 = pnand %p6462_p4, %p6933_p0 }
  0xa7   : > { %p6469_p1 = por %p6468_p13, %p6467_p11 }
  0xa8   : > { %p6465_p8 = pneg %p6464_p7 }
  0xaa   : > { %p6470_p2 = pnand %p6469_p1, %p6465_p8 }
  0xac   : > { %6473 = shalt.err (!%p6470_p2)
}
  0xad   : > { %s7448_s16 = smov 2   ;;  %s7449_s2 = smov 32  }
  0xae   : > { %6215 = dma.hbm_to_vmem [thread:$0]  (!%p6926_p12), %s6973_s7, 96, %s974_s1, [#allocation6], %s7449_s2, %s7449_s2, %s7448_s16  }
  0xaf   : > { %s6674_s23 = smov [#allocation10]   ;;  %s1058_s9 = sshll.u32 %s6851_s30, 4  ;;  %s1059_s9 = int_to_ptr.hbm [resolvable:$true] %s1058_s9 }
  0xb0   : > { %s1013_s10 = sshll.u32 %s6674_s23, 4  ;;  %s6489_s22 = sshra.s32 %s6987_s11, 4  ;;  %s1014_s10 = int_to_ptr.vmem [resolvable:$true] %s1013_s10  ;;  %s6490_s22 = int_to_ptr.hbm [resolvable:$true] %s6489_s22 }
  0xb1   : > { %s6491_s27 = scalar_lea.hbm %s6490_s22, 64  ;;  %s6496_s15 = scalar_lea.hbm %s6811_s24, 64 }
  0xb2   : > { %p6492_p3 = scmp.ne.s32.totalorder %s6490_s22, %s6491_s27  ;;  %p6497_p8 = scmp.lt.s32.totalorder %s6490_s22, %s6811_s24 }
  0xb3   : > { %p6498_p11 = scmp.lt.s32.totalorder %s6496_s15, %s6491_s27 }
  0xb4   : > { %p6494_p4 = pnand %p6492_p3, %p6933_p0 }
  0xb5   : > { %p6499_p13 = por %p6498_p11, %p6497_p8 }
  0xb6   : > { %p6495_p7 = pneg %p6494_p4 }
  0xb8   : > { %p6500_p1 = pnand %p6499_p13, %p6495_p7 }
  0xba   : > { %6503 = shalt.err (!%p6500_p1)
}
  0xbb   : > { %s7450_s7 = smov 4   ;;  %s7451_s1 = smov 64  }
  0xbc   : > { %6221 = dma.hbm_to_vmem [thread:$0]  (!%p6926_p12), %s6987_s11, 1024, %s1014_s10, [#allocation9], %s7451_s1, %s7451_s1, %s7450_s7  }
  0xbd   : > { %s6675_s16 = smov [#allocation13]   ;;  %s6519_s23 = sshra.s32 %s1059_s9, 4  ;;  %s6520_s23 = int_to_ptr.hbm [resolvable:$true] %s6519_s23 }
  0xbe   : > { %s1060_s2 = sshll.u32 %s6675_s16, 4  ;;  %s6521_s22 = scalar_lea.hbm %s6520_s23, 1  ;;  %s1061_s2 = int_to_ptr.vmem [resolvable:$true] %s1060_s2 }
  0xbf   : > { %p6522_p2 = scmp.ne.s32.totalorder %s6520_s23, %s6521_s22  ;;  %s6526_s27 = scalar_lea.hbm %s6851_s30, 1 }
  0xc0   : > { %p6527_p7 = scmp.lt.s32.totalorder %s6520_s23, %s6851_s30  ;;  %p6528_p8 = scmp.lt.s32.totalorder %s6526_s27, %s6521_s22 }
  0xc1   : > { %p6524_p3 = pnand %p6522_p2, %p6933_p0 }
  0xc2   : > { %p6529_p11 = por %p6528_p8, %p6527_p7 }
  0xc3   : > { %p6525_p4 = pneg %p6524_p3 }
  0xc5   : > { %p6530_p13 = pnand %p6529_p11, %p6525_p4 }
  0xc7   : > { %6533 = shalt.err (!%p6530_p13)
}
  0xc8   : > { %6227 = dma.hbm_to_vmem [thread:$0]  (!%p6926_p12), %s1059_s9, 16, %s1061_s2, [#allocation12]  }
  0xc9   : > { %1093 = sbr.rel (%p6917_p10) target bundleno = 3275 (0xccb), region = 164 }
  0xce   : > { %6594 = dma.done.wait (%p6232_p9), [#allocation3], 2304  }
  0xcf   : > { %6596 = vsyncadd (%p6232_p9), [#allocation3], 4294964992 }
  0xd0   : > { %6598 = dma.done.wait (%p6232_p9), [#allocation6], 192  }
  0xd1   : > { %6600 = vsyncadd (%p6232_p9), [#allocation6], 4294967104 }
  0xd2   : > { %6602 = dma.done.wait (%p6232_p9), [#allocation9], 2048  }
  0xd3   : > { %6604 = vsyncadd (%p6232_p9), [#allocation9], 4294965248 }
  0xd4   : > { %6606 = dma.done.wait (%p6232_p9), [#allocation12], 1040  }
  0xd5   : > { %6608 = vsyncadd (%p6232_p9), [#allocation12], 4294966256  ;;  %s7452_s5 = sld [smem:[#allocation20_spill]]  ;;  %p1217_p10 = scmp.lt.s32.totalorder %s6889_s0, 1  ;;  %v5937_v5 = vld [vmem:[#allocation2 + $0x58] sm:$0xff]  ;;  %v5930_v6 = vld [vmem:[#allocation2 + $0x28] sm:$0xff] }
  0xd6   : > { %v5936_v8 = vld [vmem:[#allocation2 + $0x50] sm:$0xff]  ;;  %v5924_v9 = vld [vmem:[%s7429_s13] sm:$0xff]  ;;  %v5931_v10 = vld [vmem:[%s7429_s13 + $0x8] sm:$0xff]  ;;  %1351 = vmatpush.bf16.msra.mxu2 %v5937_v5  ;;  %1404 = vmatpush.bf16.msra.mxu3 %v5930_v6  ;;  %vm1239_vm0 = vcmask 261120   ;;  %vm1345_vm1 = vcmask 785408   ;;  %vm1520_vm2 = vcmask 130048  }
  0xd7   : > { %s7038_s28 = scalar_select %p1217_p10, %s6889_s0, 1  ;;  %v5929_v11 = vld [vmem:[#allocation2 + $0x20] sm:$0xff]  ;;  %v5935_v12 = vld [vmem:[#allocation2 + $0x48] sm:$0xff]  ;;  %v5928_v13 = vld [vmem:[#allocation2 + $0x18] sm:$0xff]  ;;  %vm1822_vm3 = vcmask 1043456   ;;  %vm1818_vm4 = vcmask 64512  }
  0xd8   : > { %v5938_v14 = vld [vmem:[%s7429_s13 + $0x10] sm:$0xff]  ;;  %v5934_v15 = vld [vmem:[#allocation2 + $0x40] sm:$0xff]  ;;  %v5933_v17 = vld [vmem:[#allocation2 + $0x38] sm:$0xff]  ;;  %s7453_s3 = sld [smem:[#allocation23_spill]]  ;;  %vm2124_vm5 = vcmask 1041408   ;;  %vm2120_vm6 = vcmask 31744  }
  0xd9   : > { %s5923_s18 = sshll.u32 %s7038_s28, 5  ;;  %v5927_v16 = vld [vmem:[#allocation2 + $0x10] sm:$0xff]  ;;  %v5926_v18 = vld [vmem:[#allocation2 + $0x8] sm:$0xff]  ;;  %v5925_v21 = vld [vmem:[#allocation2] sm:$0xff]  ;;  %s7454_s10 = sld [smem:[#allocation27_spill]] }
  0xda   : > { %1352 = vmatpush.bf16.msra.mxu2 %v5936_v8  ;;  %1405 = vmatpush.bf16.msra.mxu3 %v5929_v11  ;;  %v5944_v19 = vld [vmem:[#allocation2 + $0x88] sm:$0xff]  ;;  %v5932_v20 = vld [vmem:[#allocation2 + $0x30] sm:$0xff]  ;;  %v5943_v22 = vld [vmem:[#allocation2 + $0x80] sm:$0xff]  ;;  %s7455_s9 = sld [smem:[#allocation25_spill]] }
  0xdb   : > { %s1221_s26 = scalar_lea.vmem %s7452_s5, %s5923_s18  ;;  %v5942_v23 = vld [vmem:[#allocation2 + $0x78] sm:$0xff]  ;;  %v5941_v24 = vld [vmem:[#allocation2 + $0x70] sm:$0xff]  ;;  %v5940_v25 = vld [vmem:[#allocation2 + $0x68] sm:$0xff]  ;;  %s7456_s11 = sld [smem:[#allocation26_spill]] }
  0xdc   : > { %v1228_v0 = vld [vmem:[%s1221_s26 + $0x10] sm:$0xff]  ;;  %v1229_v1 = vld [vmem:[%s1221_s26 + $0x18] sm:$0xff]  ;;  %v1226_v2 = vld [vmem:[%s1221_s26] sm:$0xff]  ;;  %s7457_s15 = sld [smem:[#allocation29_spill]] }
  0xdd   : > { %v1231_v3 = vpack.c.bf16 %v1229_v1, %v1228_v0  ;;  %v1227_v4 = vld [vmem:[%s1221_s26 + $0x8] sm:$0xff]  ;;  %v5939_v26 = vld [vmem:[#allocation2 + $0x60] sm:$0xff]  ;;  %v5952_v42 = vld [vmem:[%s6716_s29 + $0x38] sm:$0xff]  ;;  %s7458_s7 = sld [smem:[#allocation21_spill]] }
  0xde   : > { %v1230_v7 = vpack.c.bf16 %v1227_v4, %v1226_v2  ;;  %1353 = vmatpush.bf16.msra.mxu2 %v5935_v12  ;;  %1406 = vmatpush.bf16.msra.mxu3 %v5928_v13  ;;  %v6328_v44 = vld [vmem:[%s6706_s21] ss:$0 sm:$0xff]  ;;  %v5951_v45 = vld [vmem:[%s6716_s29 + $0x30] sm:$0xff]  ;;  %v5968_v46 = vld [vmem:[%s6716_s29 + $0xb8] sm:$0xff]  ;;  %s7459_s16 = sld [smem:[#allocation28_spill]] }
  0xdf   : > { %1249 = vmatpush.bf16.msra.mxu0 %v1231_v3  ;;  %1287 = vmatpush.bf16.msra.mxu1 %v1231_v3  ;;  %v5967_v49 = vld [vmem:[%s6716_s29 + $0xb0] sm:$0xff]  ;;  %v5950_v52 = vld [vmem:[%s6716_s29 + $0x28] sm:$0xff]  ;;  %v5960_v57 = vld [vmem:[%s6716_s29 + $0x78] sm:$0xff]  ;;  %s7460_s2 = sld [smem:[#allocation32_spill]] }
  0xe0   : > { %v5966_v54 = vld [vmem:[%s6716_s29 + $0xa8] sm:$0xff]  ;;  %v5949_v59 = vld [vmem:[%s6716_s29 + $0x20] sm:$0xff]  ;;  %v5959_v62 = vld [vmem:[%s6716_s29 + $0x70] sm:$0xff]  ;;  %s7462_s22 = sld [smem:[#allocation30_spill]] }
  0xe1   : > { %v1519_v60 = vld [vmem:[%s6711_s25] sm:$0xf]  ;;  %v4695_v61 = vld [vmem:[%s6711_s25 + $0x4] sm:$0xf]  ;;  %v5948_v63 = vld [vmem:[%s6716_s29 + $0x18] sm:$0xff]  ;;  %s7463_s27 = sld [smem:[#allocation33_spill]] }
  0xe2   : > { %1354 = vmatpush.bf16.msra.mxu2 %v5934_v15  ;;  %1407 = vmatpush.bf16.msra.mxu3 %v5927_v16  ;;  %v5958_v0 = vld [vmem:[%s6716_s29 + $0x68] sm:$0xff]  ;;  %v5947_v1 = vld [vmem:[%s6716_s29 + $0x10] sm:$0xff]  ;;  %v5957_v2 = vld [vmem:[%s6716_s29 + $0x60] sm:$0xff]  ;;  %s7466_s26 = sld [smem:[#allocation36_spill]] }
  0xe3   : > { %1250 = vmatpush.bf16.msra.mxu0 %v1230_v7  ;;  %1288 = vmatpush.bf16.msra.mxu1 %v1230_v7  ;;  %v5956_v4 = vld [vmem:[%s6716_s29 + $0x58] sm:$0xff]  ;;  %v4777_v5 = vld [vmem:[%s6711_s25 + $0x8] sm:$0xf]  ;;  %v5955_v6 = vld [vmem:[%s6716_s29 + $0x50] sm:$0xff]  ;;  %s1224_s1 = scalar_lea.vmem %s7458_s7, %s7038_s28  ;;  %s7464_s28 = sld [smem:[#allocation34_spill]] }
  0xe4   : > { %v5965_v8 = vld [vmem:[%s6716_s29 + $0xa0] sm:$0xff]  ;;  %v5963_v12 = vld [vmem:[%s6716_s29 + $0x90] sm:$0xff]  ;;  %v5962_v13 = vld [vmem:[%s6716_s29 + $0x88] sm:$0xff]  ;;  %s7468_s7 = sld [smem:[#allocation38_spill]] }
  0xe5   : > { %v5953_v11 = vld [vmem:[%s6716_s29 + $0x40] sm:$0xff]  ;;  %s7461_s23 = smov %s7460_s2 }
  0xe6   : > { %4604 = vmatmul.msk.bf16.vlgmr.msra.gmra.mxu0 %vm1239_vm0, %v5924_v9  ;;  %4611 = vmatmul.msk.bf16.vlgmr.msra.gmra.mxu1 %vm1239_vm0, %v5931_v10  ;;  %v5954_v9 = vld [vmem:[%s6716_s29 + $0x48] sm:$0xff]  ;;  %v5964_v10 = vld [vmem:[%s6716_s29 + $0x98] sm:$0xff] }
  0xe7   : > { %1433 = vmatpush.bf16.msrb.mxu0 %v1231_v3  ;;  %1496 = vmatpush.bf16.msrb.mxu1 %v5944_v19  ;;  %v5946_v3 = vld [vmem:[%s6716_s29 + $0x8] sm:$0xff] }
  0xe8   : > { %1355 = vmatpush.bf16.msra.mxu2 %v5933_v17  ;;  %1408 = vmatpush.bf16.msra.mxu3 %v5926_v18 }
  0xe9   : > { %s7465_s18 = smov %s7464_s28 }
  0xeb   : > { %1434 = vmatpush.bf16.msrb.mxu0 %v1230_v7  ;;  %1497 = vmatpush.bf16.msrb.mxu1 %v5943_v22  ;;  %v5945_v7 = vld [vmem:[%s6716_s29] sm:$0xff] }
  0xec   : > { %1356 = vmatpush.bf16.msra.mxu2 %v5932_v20  ;;  %1409 = vmatpush.bf16.msra.mxu3 %v5925_v21 }
  0xef   : > { %1498 = vmatpush.bf16.msrb.mxu1 %v5942_v23 }
  0xf0   : > { %1796 = vmatpush.bf16.msrb.mxu2 %v5968_v46  ;;  %v1817_v46 = vld [vmem:[%s7431_s8] sm:$0x3] }
  0xf3   : > { %1499 = vmatpush.bf16.msrb.mxu1 %v5941_v24 }
  0xf4   : > { %1797 = vmatpush.bf16.msrb.mxu2 %v5967_v49  ;;  %v5991_v49 = vld [vmem:[%s6731_s14 + $0xb0] sm:$0xff] }
  0xf6   : > { %4668 = vmatmul.msk.bf16.vlgmr.msrb.gmra.mxu0 %vm1239_vm0, %v5938_v14  ;;  %v5961_v14 = vld [vmem:[%s6716_s29 + $0x80] sm:$0xff] }
  0xf7   : > { %1500 = vmatpush.bf16.msrb.mxu1 %v5940_v25  ;;  %v5984_v25 = vld [vmem:[%s6731_s14 + $0x78] sm:$0xff] }
  0xf8   : > { %1798 = vmatpush.bf16.msrb.mxu2 %v5966_v54  ;;  %v5972_v54 = vld [vmem:[%s6731_s14 + $0x18] sm:$0xff] }
  0xfb   : > { %1501 = vmatpush.bf16.msrb.mxu1 %v5939_v26  ;;  %v5983_v26 = vld [vmem:[%s6731_s14 + $0x70] sm:$0xff] }
  0xfc   : > { %1799 = vmatpush.bf16.msrb.mxu2 %v5965_v8 }
  0xff   : > { %1699 = vmatpush.bf16.msra.mxu1 %v5952_v42 }
 0x100   : > { %1800 = vmatpush.bf16.msrb.mxu2 %v5964_v10  ;;  %v6008_v10 = vld [vmem:[%s7454_s10 + $0x78] sm:$0xff] }
 0x103   : > { %1700 = vmatpush.bf16.msra.mxu1 %v5951_v45  ;;  %v4828_v45 = vld [vmem:[%s7431_s8 + $0x2] sm:$0x3] }
 0x104   : > { %1801 = vmatpush.bf16.msrb.mxu2 %v5963_v12 }
 0x107   : > { %1701 = vmatpush.bf16.msra.mxu1 %v5950_v52  ;;  %v5973_v52 = vld [vmem:[%s6731_s14 + $0x20] sm:$0xff] }
 0x108   : > { %1802 = vmatpush.bf16.msrb.mxu2 %v5962_v13  ;;  %v6006_v13 = vld [vmem:[%s7454_s10 + $0x68] sm:$0xff] }
 0x10b   : > { %1702 = vmatpush.bf16.msra.mxu1 %v5949_v59  ;;  %v5970_v59 = vld [vmem:[%s6731_s14 + $0x8] sm:$0xff] }
 0x10c   : > { %1803 = vmatpush.bf16.msrb.mxu2 %v5961_v14  ;;  %v6005_v14 = vld [vmem:[%s7454_s10 + $0x60] sm:$0xff] }
 0x10f   : > { %1703 = vmatpush.bf16.msra.mxu1 %v5948_v63  ;;  %v5977_v63 = vld [vmem:[%s6731_s14 + $0x40] sm:$0xff] }
 0x113   : > { %1704 = vmatpush.bf16.msra.mxu1 %v5947_v1 }
 0x117   : > { %1705 = vmatpush.bf16.msra.mxu1 %v5946_v3 }
 0x11b   : > { %1706 = vmatpush.bf16.msra.mxu1 %v5945_v7 }
 0x163   : > { %v1252_v27 = vpop.f32.mrf.mxu0  ;;  %v1290_v28 = vpop.f32.mrf.mxu1 }
 0x16b   : > { %v1254_v29 = vpop.f32.mrf.mxu0  ;;  %v1292_v30 = vpop.f32.mrf.mxu1 }
 0x16c   : > { %v1257_v31 = vpack.c.bf16 %v1254_v29, %v1252_v27  ;;  %v1295_v32 = vpack.c.bf16 %v1292_v30, %v1290_v28  ;;  %v5982_v28 = vld [vmem:[%s6731_s14 + $0x68] sm:$0xff]  ;;  %v5981_v30 = vld [vmem:[%s6731_s14 + $0x60] sm:$0xff] }
 0x16e   : > { %4636 = vmatmul.msk.bf16.vlgmr.msra.gmra.mxu2 %vm1345_vm1, %v1295_v32  ;;  %4661 = vmatmul.msk.bf16.vlgmr.msra.gmra.mxu3 %vm1345_vm1, %v1257_v31  ;;  %v5980_v31 = vld [vmem:[%s6731_s14 + $0x58] sm:$0xff] }
 0x173   : > { %v1436_v33 = vpop.f32.mrf.mxu0 }
 0x17b   : > { %v1438_v34 = vpop.f32.mrf.mxu0 }
 0x17c   : > { %v1441_v35 = vpack.c.bf16 %v1438_v34, %v1436_v33  ;;  %v6329_v34 = vld [vmem:[%s7453_s3] ss:$0 sm:$0xff] }
 0x17e   : > { %4693 = vmatmul.msk.bf16.vlgmr.msrb.gmra.mxu1 %vm1345_vm1, %v1441_v35 }
 0x17f   : > { %1940 = vmatpush.bf16.msrb.mxu1 %v5984_v25  ;;  %v6002_v25 = vld [vmem:[%s7454_s10 + $0x48] sm:$0xff] }
 0x183   : > { %1941 = vmatpush.bf16.msrb.mxu1 %v5983_v26 }
 0x187   : > { %1942 = vmatpush.bf16.msrb.mxu1 %v5982_v28  ;;  %v6000_v28 = vld [vmem:[%s7454_s10 + $0x38] sm:$0xff] }
 0x18b   : > { %1943 = vmatpush.bf16.msrb.mxu1 %v5981_v30  ;;  %v6016_v30 = vld [vmem:[%s7454_s10 + $0xb8] sm:$0xff] }
 0x18f   : > { %1944 = vmatpush.bf16.msrb.mxu1 %v5980_v31 }
 0x1f1   : > { %v1358_v36 = vpop.f32.mrf.mxu2  ;;  %v1411_v37 = vpop.f32.mrf.mxu3 }
 0x1f2   : > { %v1412_v39 = vadd.f32 %v1411_v37, %v1358_v36  ;;  %v5979_v36 = vld [vmem:[%s6731_s14 + $0x50] sm:$0xff] }
 0x1f3   : > { %1945 = vmatpush.bf16.msrb.mxu1 %v5979_v36  ;;  %v6015_v36 = vld [vmem:[%s7454_s10 + $0xb0] sm:$0xff] }
 0x1f9   : > { %v1360_v40 = vpop.f32.mrf.mxu2  ;;  %v1413_v41 = vpop.f32.mrf.mxu3 }
 0x1fa   : > { %v1414_v47 = vadd.f32 %v1413_v41, %v1360_v40  ;;  %v5976_v41 = vld [vmem:[%s6731_s14 + $0x38] sm:$0xff] }
 0x1fb   : > { %v1503_v38 = vpop.f32.mrf.mxu1 }
 0x1fc   : > { %v1508_v43 = vadd.f32 %v1503_v38, %v1412_v39 }
 0x1fe   : > { %v1514_v50 = vadd.f32 %v6328_v44, %v1508_v43  ;;  %v5992_v43 = vld [vmem:[%s6731_s14 + $0xb8] sm:$0xff] }
 0x200   : > { %v1516_v55 = vmax.f32 %v1514_v50, 0.0  ;;  %v5974_v50 = vld [vmem:[%s6731_s14 + $0x28] sm:$0xff] }
 0x203   : > { %v1505_v48 = vpop.f32.mrf.mxu1 }
 0x204   : > { %v1509_v51 = vadd.f32 %v1505_v48, %v1414_v47  ;;  %v4910_v47 = vld [vmem:[%s7431_s8 + $0x4] sm:$0x3]  ;;  %v5975_v48 = vld [vmem:[%s6731_s14 + $0x30] sm:$0xff] }
 0x206   : > { %v1515_v53 = vadd.f32 %v6328_v44, %v1509_v51  ;;  %v5990_v51 = vld [vmem:[%s6731_s14 + $0xa8] sm:$0xff] }
 0x208   : > { %v1517_v56 = vmax.f32 %v1515_v53, 0.0  ;;  %v5989_v53 = vld [vmem:[%s6731_s14 + $0xa0] sm:$0xff] }
 0x20a   : > { %v7056_v58 = vpack.c.bf16 %v1517_v56, %v1516_v55  ;;  %v5988_v55 = vld [vmem:[%s6731_s14 + $0x98] sm:$0xff]  ;;  %v5971_v56 = vld [vmem:[%s6731_s14 + $0x10] sm:$0xff] }
 0x20c   : > { %1531 = vmatpush.bf16.msra.mxu0 %v7056_v58  ;;  %1566 = vmatpush.bf16.msrb.mxu3 %v7056_v58 }
 0x20f   : > { %4694 = vmatmul.msk.bf16.vlgmr.msra.gmra.mxu0 %vm1520_vm2, %v1519_v60  ;;  %4696 = vmatmul.msk.bf16.vlgmr.msrb.gmra.mxu3 %vm1520_vm2, %v4695_v61  ;;  %v5978_v60 = vld [vmem:[%s6731_s14 + $0x48] sm:$0xff]  ;;  %v5969_v61 = vld [vmem:[%s6731_s14] sm:$0xff] }
 0x210   : > { %1724 = vmatpush.bf16.msrb.mxu0 %v7056_v58  ;;  %1638 = vmatpush.bf16.msra.mxu3 %v5960_v57  ;;  %v5987_v57 = vld [vmem:[%s6731_s14 + $0x90] sm:$0xff] }
 0x211   : > { %1946 = vmatpush.bf16.msrb.mxu1 %v5978_v60 }
 0x214   : > { %1639 = vmatpush.bf16.msra.mxu3 %v5959_v62  ;;  %v5986_v62 = vld [vmem:[%s6731_s14 + $0x88] sm:$0xff] }
 0x215   : > { %1947 = vmatpush.bf16.msrb.mxu1 %v5977_v63  ;;  %v6022_v63 = vld [vmem:[%s7457_s15 + $0x28] sm:$0xff] }
 0x218   : > { %1640 = vmatpush.bf16.msra.mxu3 %v5958_v0  ;;  %v5985_v0 = vld [vmem:[%s6731_s14 + $0x80] sm:$0xff] }
 0x21c   : > { %1641 = vmatpush.bf16.msra.mxu3 %v5957_v2 }
 0x21f   : > { %4778 = vmatmul.msk.bf16.vlgmr.msrb.gmra.mxu0 %vm1520_vm2, %v4777_v5 }
 0x220   : > { %1642 = vmatpush.bf16.msra.mxu3 %v5956_v4 }
 0x224   : > { %1643 = vmatpush.bf16.msra.mxu3 %v5955_v6 }
 0x228   : > { %1644 = vmatpush.bf16.msra.mxu3 %v5954_v9 }
 0x22c   : > { %1645 = vmatpush.bf16.msra.mxu3 %v5953_v11  ;;  %v6007_v11 = vld [vmem:[%s7454_s10 + $0x70] sm:$0xff] }
 0x28c   : > { %v1533_v15 = vpop.f32.mrf.mxu0 }
 0x28d   : > { %v1537_v16 = vpack.c.bf16 %v1533_v15, %v1533_v15 }
 0x28f   : > { %1707 = vmatmul.bf16.vlgmr.msra.gmra.mxu1 %v1537_v16 }
 0x292   : > { %v1568_v17 = vpop.f32.mrf.mxu3 }
 0x293   : > { %v1572_v18 = vpack.c.bf16 %v1568_v17, %v1568_v17  ;;  %v6004_v17 = vld [vmem:[%s7454_s10 + $0x58] sm:$0xff] }
 0x294   : > { %v1535_v19 = vpop.f32.mrf.mxu0 }
 0x295   : > { %1646 = vmatmul.bf16.vlgmr.msra.gmra.mxu3 %v1572_v18  ;;  %v6330_v19 = vld [vmem:[%s7455_s9] ss:$0 sm:$0xff]  ;;  %s7467_s9 = sld [smem:[#allocation37_spill]] }
 0x29a   : > { %v1570_v20 = vpop.f32.mrf.mxu3 }
 0x29c   : > { %v1726_v21 = vpop.f32.mrf.mxu0 }
 0x29d   : > { %v1730_v22 = vpack.c.bf16 %v1726_v21, %v1726_v21  ;;  %v6003_v21 = vld [vmem:[%s7454_s10 + $0x50] sm:$0xff] }
 0x29f   : > { %1804 = vmatmul.bf16.vlgmr.msrb.gmra.mxu2 %v1730_v22 }
 0x2a4   : > { %v1728_v23 = vpop.f32.mrf.mxu0 }
 0x30c   : > { %v1708_v24 = vpop.f32.mrf.mxu1 }
 0x314   : > { %v1710_v27 = vpop.f32.mrf.mxu1 }
 0x318   : > { %v1647_v29 = vpop.f32.mrf.mxu3 }
 0x319   : > { %v1709_v33 = vadd.f32 %v1708_v24, %v1647_v29 }
 0x320   : > { %v1649_v32 = vpop.f32.mrf.mxu3 }
 0x321   : > { %v2119_v32 = vld [vmem:[%s7456_s11] sm:$0x3] }
 0x322   : > { %v1805_v35 = vpop.f32.mrf.mxu2 }
 0x323   : > { %v1809_v37 = vadd.f32 %v1805_v35, %v1709_v33  ;;  %v4961_v33 = vld [vmem:[%s7456_s11 + $0x2] sm:$0x3]  ;;  %v5999_v35 = vld [vmem:[%s7454_s10 + $0x30] sm:$0xff] }
 0x325   : > { %v1814_v38 = vadd.f32 %v6329_v34, %v1809_v37  ;;  %v5043_v34 = vld [vmem:[%s7456_s11 + $0x4] sm:$0x3]  ;;  %v5998_v37 = vld [vmem:[%s7454_s10 + $0x28] sm:$0xff] }
 0x327   : > { %v1815_v39 = vmax.f32 %v1814_v38, 0.0  ;;  %v6014_v38 = vld [vmem:[%s7454_s10 + $0xa8] sm:$0xff] }
 0x329   : > { %v7091_v40 = vpack.c.bf16 %v1815_v39, %v1815_v39  ;;  %v5997_v39 = vld [vmem:[%s7454_s10 + $0x20] sm:$0xff] }
 0x32a   : > { %v1807_v42 = vpop.f32.mrf.mxu2 }
 0x32b   : > { %v1824_v44 = vsel %vm1822_vm3, %v7091_v40, 0  ;;  %v5996_v42 = vld [vmem:[%s7454_s10 + $0x18] sm:$0xff] }
 0x32c   : > { %1833 = vmatpush.bf16.msra.mxu0 %v1824_v44  ;;  %1868 = vmatpush.bf16.msrb.mxu3 %v1824_v44 }
 0x32d   : > { %2026 = vmatpush.bf16.msra.mxu2 %v1824_v44  ;;  %v5995_v44 = vld [vmem:[%s7454_s10 + $0x10] sm:$0xff] }
 0x32f   : > { %4829 = vmatmul.msk.bf16.vlgmr.msrb.gmra.mxu3 %vm1818_vm4, %v4828_v45  ;;  %4827 = vmatmul.msk.bf16.vlgmr.msra.gmra.mxu0 %vm1818_vm4, %v1817_v46  ;;  %v6011_v45 = vld [vmem:[%s7454_s10 + $0x90] sm:$0xff]  ;;  %v5994_v46 = vld [vmem:[%s7454_s10 + $0x8] sm:$0xff] }
 0x330   : > { %2001 = vmatpush.bf16.msrb.mxu0 %v5976_v41  ;;  %2098 = vmatpush.bf16.msra.mxu3 %v5992_v43  ;;  %v6013_v41 = vld [vmem:[%s7454_s10 + $0xa0] sm:$0xff]  ;;  %v6012_v43 = vld [vmem:[%s7454_s10 + $0x98] sm:$0xff] }
 0x331   : > { %4911 = vmatmul.msk.bf16.vlgmr.msra.gmra.mxu2 %vm1818_vm4, %v4910_v47  ;;  %v6010_v47 = vld [vmem:[%s7454_s10 + $0x88] sm:$0xff] }
 0x334   : > { %2002 = vmatpush.bf16.msrb.mxu0 %v5975_v48  ;;  %2099 = vmatpush.bf16.msra.mxu3 %v5991_v49  ;;  %v6001_v48 = vld [vmem:[%s7454_s10 + $0x40] sm:$0xff] }
 0x335   : > { %v5993_v49 = vld [vmem:[%s7454_s10] sm:$0xff] }
 0x338   : > { %2003 = vmatpush.bf16.msrb.mxu0 %v5974_v50  ;;  %2100 = vmatpush.bf16.msra.mxu3 %v5990_v51  ;;  %v6009_v50 = vld [vmem:[%s7454_s10 + $0x80] sm:$0xff]  ;;  %v6024_v51 = vld [vmem:[%s7457_s15 + $0x38] sm:$0xff] }
 0x33c   : > { %2004 = vmatpush.bf16.msrb.mxu0 %v5973_v52  ;;  %2101 = vmatpush.bf16.msra.mxu3 %v5989_v53  ;;  %v6023_v52 = vld [vmem:[%s7457_s15 + $0x30] sm:$0xff] }
 0x340   : > { %2005 = vmatpush.bf16.msrb.mxu0 %v5972_v54  ;;  %2102 = vmatpush.bf16.msra.mxu3 %v5988_v55 }
 0x344   : > { %2006 = vmatpush.bf16.msrb.mxu0 %v5971_v56  ;;  %2103 = vmatpush.bf16.msra.mxu3 %v5987_v57 }
 0x348   : > { %2007 = vmatpush.bf16.msrb.mxu0 %v5970_v59  ;;  %2104 = vmatpush.bf16.msra.mxu3 %v5986_v62 }
 0x34c   : > { %2008 = vmatpush.bf16.msrb.mxu0 %v5969_v61  ;;  %2105 = vmatpush.bf16.msra.mxu3 %v5985_v0  ;;  %v6021_v0 = vld [vmem:[%s7457_s15 + $0x20] sm:$0xff] }
 0x350   : > { %2242 = vmatpush.bf16.msra.mxu0 %v6008_v10  ;;  %v6331_v10 = vld [vmem:[%s7459_s16] ss:$0 sm:$0xff]  ;;  %s7469_s16 = smov %s7468_s7 }
 0x354   : > { %2243 = vmatpush.bf16.msra.mxu0 %v6007_v11 }
 0x358   : > { %2244 = vmatpush.bf16.msra.mxu0 %v6006_v13 }
 0x35c   : > { %2245 = vmatpush.bf16.msra.mxu0 %v6005_v14 }
 0x360   : > { %2246 = vmatpush.bf16.msra.mxu0 %v6004_v17  ;;  %v6332_v17 = vld [vmem:[%s1224_s1] ss:$0 sm:$0xff]  ;;  %s7470_s1 = sld [smem:[#allocation39_spill]] }
 0x364   : > { %2247 = vmatpush.bf16.msra.mxu0 %v6003_v21  ;;  %v6040_v21 = vld [vmem:[%s7460_s2 + $0x78] sm:$0xff]  ;;  %s7471_s2 = sld [smem:[#allocation40_spill]] }
 0x368   : > { %2248 = vmatpush.bf16.msra.mxu0 %v6002_v25 }
 0x36c   : > { %2249 = vmatpush.bf16.msra.mxu0 %v6001_v48  ;;  %v6027_v48 = vld [vmem:[%s7461_s23 + $0x10] sm:$0xff] }
 0x3ac   : > { %v1835_v1 = vpop.f32.mrf.mxu0 }
 0x3ad   : > { %v1839_v2 = vpack.c.bf16 %v1835_v1, %v1835_v1  ;;  %v6020_v1 = vld [vmem:[%s7457_s15 + $0x18] sm:$0xff] }
 0x3af   : > { %2009 = vmatmul.bf16.vlgmr.msrb.gmra.mxu0 %v1839_v2  ;;  %v6019_v2 = vld [vmem:[%s7457_s15 + $0x10] sm:$0xff] }
 0x3b2   : > { %v1870_v3 = vpop.f32.mrf.mxu3 }
 0x3b3   : > { %v1874_v4 = vpack.c.bf16 %v1870_v3, %v1870_v3  ;;  %v6018_v3 = vld [vmem:[%s7457_s15 + $0x8] sm:$0xff] }
 0x3b4   : > { %v2028_v5 = vpop.f32.mrf.mxu2  ;;  %v1837_v7 = vpop.f32.mrf.mxu0 }
 0x3b5   : > { %v2032_v6 = vpack.c.bf16 %v2028_v5, %v2028_v5  ;;  %1948 = vmatmul.bf16.vlgmr.msrb.gmra.mxu1 %v1874_v4  ;;  %v6017_v4 = vld [vmem:[%s7457_s15] sm:$0xff] }
 0x3b7   : > { %2106 = vmatmul.bf16.vlgmr.msra.gmra.mxu3 %v2032_v6 }
 0x3ba   : > { %v1872_v8 = vpop.f32.mrf.mxu3 }
 0x3bc   : > { %v2030_v9 = vpop.f32.mrf.mxu2 }
 0x42c   : > { %v2010_v12 = vpop.f32.mrf.mxu0 }
 0x432   : > { %v1949_v15 = vpop.f32.mrf.mxu1 }
 0x433   : > { %v2011_v18 = vadd.f32 %v2010_v12, %v1949_v15 }
 0x434   : > { %v2012_v16 = vpop.f32.mrf.mxu0 }
 0x43a   : > { %v2107_v20 = vpop.f32.mrf.mxu3  ;;  %v1951_v23 = vpop.f32.mrf.mxu1 }
 0x43b   : > { %v2111_v22 = vadd.f32 %v2107_v20, %v2011_v18  ;;  %v6039_v23 = vld [vmem:[%s7461_s23 + $0x70] sm:$0xff] }
 0x43d   : > { %v2116_v24 = vadd.f32 %v6330_v19, %v2111_v22  ;;  %v6333_v22 = vld [vmem:[%s7462_s22] ss:$0 sm:$0xff]  ;;  %s7472_s22 = smov %s7471_s2 }
 0x43f   : > { %v2117_v26 = vmax.f32 %v2116_v24, 0.0  ;;  %v6048_v24 = vld [vmem:[%s7461_s23 + $0xb8] sm:$0xff] }
 0x441   : > { %v7127_v27 = vpack.c.bf16 %v2117_v26, %v2117_v26  ;;  %v6047_v26 = vld [vmem:[%s7461_s23 + $0xb0] sm:$0xff] }
 0x442   : > { %v2109_v29 = vpop.f32.mrf.mxu3 }
 0x443   : > { %v2126_v31 = vsel %vm2124_vm5, %v7127_v27, 0  ;;  %v6038_v29 = vld [vmem:[%s7461_s23 + $0x68] sm:$0xff] }
 0x444   : > { %2135 = vmatpush.bf16.msrb.mxu2 %v2126_v31  ;;  %2170 = vmatpush.bf16.msra.mxu1 %v2126_v31 }
 0x445   : > { %2328 = vmatpush.bf16.msrb.mxu3 %v2126_v31 }
 0x447   : > { %4960 = vmatmul.msk.bf16.vlgmr.msrb.gmra.mxu2 %vm2120_vm6, %v2119_v32  ;;  %4962 = vmatmul.msk.bf16.vlgmr.msra.gmra.mxu1 %vm2120_vm6, %v4961_v33  ;;  %v6032_v32 = vld [vmem:[%s7461_s23 + $0x38] sm:$0xff]  ;;  %v6037_v33 = vld [vmem:[%s7461_s23 + $0x60] sm:$0xff] }
 0x448   : > { %2303 = vmatpush.bf16.msra.mxu2 %v6000_v28  ;;  %2400 = vmatpush.bf16.msrb.mxu1 %v6016_v30 }
 0x449   : > { %5044 = vmatmul.msk.bf16.vlgmr.msrb.gmra.mxu3 %vm2120_vm6, %v5043_v34  ;;  %v6046_v34 = vld [vmem:[%s7461_s23 + $0xa8] sm:$0xff] }
 0x44a   : > { %2496 = vmatpush.bf16.msra.mxu3 %v6024_v51  ;;  %v6025_v51 = vld [vmem:[%s7461_s23] sm:$0xff] }
 0x44c   : > { %2304 = vmatpush.bf16.msra.mxu2 %v5999_v35  ;;  %2401 = vmatpush.bf16.msrb.mxu1 %v6015_v36 }
 0x44e   : > { %2497 = vmatpush.bf16.msra.mxu3 %v6023_v52  ;;  %v6045_v52 = vld [vmem:[%s7461_s23 + $0xa0] sm:$0xff] }
 0x450   : > { %2305 = vmatpush.bf16.msra.mxu2 %v5998_v37  ;;  %2402 = vmatpush.bf16.msrb.mxu1 %v6014_v38  ;;  %v2549_v37 = vld [vmem:[#allocation5 + $0x2] sm:$0x3]  ;;  %v2511_v38 = vld [vmem:[#allocation5] sm:$0x3] }
 0x452   : > { %2498 = vmatpush.bf16.msra.mxu3 %v6022_v63 }
 0x454   : > { %2306 = vmatpush.bf16.msra.mxu2 %v5997_v39  ;;  %2403 = vmatpush.bf16.msrb.mxu1 %v6013_v41  ;;  %v6031_v39 = vld [vmem:[%s7461_s23 + $0x30] sm:$0xff]  ;;  %v6036_v41 = vld [vmem:[%s7461_s23 + $0x58] sm:$0xff] }
 0x456   : > { %2499 = vmatpush.bf16.msra.mxu3 %v6021_v0 }
 0x458   : > { %2307 = vmatpush.bf16.msra.mxu2 %v5996_v42  ;;  %2404 = vmatpush.bf16.msrb.mxu1 %v6012_v43  ;;  %v6030_v42 = vld [vmem:[%s7461_s23 + $0x28] sm:$0xff]  ;;  %v6035_v43 = vld [vmem:[%s7461_s23 + $0x50] sm:$0xff] }
 0x45a   : > { %2500 = vmatpush.bf16.msra.mxu3 %v6020_v1 }
 0x45c   : > { %2308 = vmatpush.bf16.msra.mxu2 %v5995_v44  ;;  %2405 = vmatpush.bf16.msrb.mxu1 %v6011_v45  ;;  %v6029_v44 = vld [vmem:[%s7461_s23 + $0x20] sm:$0xff]  ;;  %v6034_v45 = vld [vmem:[%s7461_s23 + $0x48] sm:$0xff] }
 0x45e   : > { %2501 = vmatpush.bf16.msra.mxu3 %v6019_v2 }
 0x460   : > { %2309 = vmatpush.bf16.msra.mxu2 %v5994_v46  ;;  %2406 = vmatpush.bf16.msrb.mxu1 %v6010_v47  ;;  %v6028_v46 = vld [vmem:[%s7461_s23 + $0x18] sm:$0xff]  ;;  %v2707_v47 = vld [vmem:[#allocation5 + $0x4] sm:$0x3] }
 0x462   : > { %2502 = vmatpush.bf16.msra.mxu3 %v6018_v3 }
 0x464   : > { %2310 = vmatpush.bf16.msra.mxu2 %v5993_v49  ;;  %2407 = vmatpush.bf16.msrb.mxu1 %v6009_v50  ;;  %v6026_v49 = vld [vmem:[%s7461_s23 + $0x8] sm:$0xff]  ;;  %v6033_v50 = vld [vmem:[%s7461_s23 + $0x40] sm:$0xff] }
 0x466   : > { %2503 = vmatpush.bf16.msra.mxu3 %v6017_v4 }
 0x468   : > { %2632 = vmatpush.bf16.msra.mxu1 %v6040_v21  ;;  %v6056_v21 = vld [vmem:[%s7465_s18 + $0x38] sm:$0xff] }
 0x46a   : > { %2790 = vmatpush.bf16.msrb.mxu3 %v6048_v24  ;;  %v6063_v24 = vld [vmem:[%s7465_s18 + $0x70] sm:$0xff] }
 0x46c   : > { %2633 = vmatpush.bf16.msra.mxu1 %v6039_v23  ;;  %v6079_v23 = vld [vmem:[#allocation8 + $0x30] sm:$0xff] }
 0x46e   : > { %2791 = vmatpush.bf16.msrb.mxu3 %v6047_v26  ;;  %v6071_v26 = vld [vmem:[%s7465_s18 + $0xb0] sm:$0xff] }
 0x470   : > { %2634 = vmatpush.bf16.msra.mxu1 %v6038_v29  ;;  %v6062_v29 = vld [vmem:[%s7465_s18 + $0x68] sm:$0xff] }
 0x472   : > { %2792 = vmatpush.bf16.msrb.mxu3 %v6046_v34  ;;  %v6053_v34 = vld [vmem:[%s7465_s18 + $0x20] sm:$0xff] }
 0x474   : > { %2635 = vmatpush.bf16.msra.mxu1 %v6037_v33  ;;  %v6061_v33 = vld [vmem:[%s7465_s18 + $0x60] sm:$0xff] }
 0x476   : > { %2793 = vmatpush.bf16.msrb.mxu3 %v6045_v52  ;;  %v6065_v52 = vld [vmem:[%s7465_s18 + $0x80] sm:$0xff] }
 0x478   : > { %2636 = vmatpush.bf16.msra.mxu1 %v6036_v41  ;;  %v6075_v41 = vld [vmem:[#allocation8 + $0x10] sm:$0xff] }
 0x47c   : > { %2637 = vmatpush.bf16.msra.mxu1 %v6035_v43  ;;  %v6051_v43 = vld [vmem:[%s7465_s18 + $0x10] sm:$0xff] }
 0x480   : > { %2638 = vmatpush.bf16.msra.mxu1 %v6034_v45  ;;  %v6074_v45 = vld [vmem:[#allocation8 + $0x8] sm:$0xff] }
 0x484   : > { %2639 = vmatpush.bf16.msra.mxu1 %v6033_v50  ;;  %v6057_v50 = vld [vmem:[%s7465_s18 + $0x40] sm:$0xff] }
 0x4c4   : > { %v2172_v53 = vpop.f32.mrf.mxu1 }
 0x4c5   : > { %v2176_v54 = vpack.c.bf16 %v2172_v53, %v2172_v53  ;;  %v6044_v53 = vld [vmem:[%s7461_s23 + $0x98] sm:$0xff] }
 0x4c6   : > { %2794 = vmatpush.bf16.msrb.mxu3 %v6044_v53 }
 0x4c7   : > { %2250 = vmatmul.bf16.vlgmr.msra.gmra.mxu0 %v2176_v54  ;;  %v6043_v54 = vld [vmem:[%s7461_s23 + $0x90] sm:$0xff] }
 0x4ca   : > { %v2137_v55 = vpop.f32.mrf.mxu2  ;;  %2795 = vmatpush.bf16.msrb.mxu3 %v6043_v54 }
 0x4cb   : > { %v2141_v56 = vpack.c.bf16 %v2137_v55, %v2137_v55  ;;  %v6042_v55 = vld [vmem:[%s7461_s23 + $0x88] sm:$0xff] }
 0x4cc   : > { %v2330_v57 = vpop.f32.mrf.mxu3  ;;  %v2174_v60 = vpop.f32.mrf.mxu1 }
 0x4cd   : > { %v2334_v59 = vpack.c.bf16 %v2330_v57, %v2330_v57  ;;  %2311 = vmatmul.bf16.vlgmr.msra.gmra.mxu2 %v2141_v56  ;;  %v6041_v56 = vld [vmem:[%s7461_s23 + $0x80] sm:$0xff] }
 0x4ce   : > { %2796 = vmatpush.bf16.msrb.mxu3 %v6042_v55 }
 0x4cf   : > { %2408 = vmatmul.bf16.vlgmr.msrb.gmra.mxu1 %v2334_v59 }
 0x4d2   : > { %v2139_v61 = vpop.f32.mrf.mxu2  ;;  %2797 = vmatpush.bf16.msrb.mxu3 %v6041_v56 }
 0x4d4   : > { %v2332_v62 = vpop.f32.mrf.mxu3 }
 0x544   : > { %v2251_v5 = vpop.f32.mrf.mxu0 }
 0x54c   : > { %v2409_v6 = vpop.f32.mrf.mxu1  ;;  %v2253_v7 = vpop.f32.mrf.mxu0 }
 0x550   : > { %v2312_v8 = vpop.f32.mrf.mxu2 }
 0x551   : > { %v2313_v9 = vadd.f32 %v2312_v8, %v2251_v5  ;;  %v6334_v8 = vld [vmem:[%s7463_s27] ss:$0 sm:$0xff]  ;;  %s7473_s27 = sld [smem:[#allocation41_spill]] }
 0x553   : > { %v2413_v11 = vadd.f32 %v2409_v6, %v2313_v9 }
 0x554   : > { %v2411_v12 = vpop.f32.mrf.mxu1 }
 0x555   : > { %v2418_v13 = vadd.f32 %v6331_v10, %v2413_v11 }
 0x557   : > { %v2419_v14 = vmax.f32 %v2418_v13, 0.0 }
 0x558   : > { %v2314_v15 = vpop.f32.mrf.mxu2 }
 0x559   : > { %v2420_v16 = vpack.c.bf16 %v2419_v14, %v2419_v14  ;;  %v6080_v15 = vld [vmem:[#allocation8 + $0x38] sm:$0xff] }
 0x55b   : > { %v2421_v18 = vunpack.c.l.bf16 %v2420_v16 }
 0x55d   : > { %v2426_v19 = vmul.f32 %v6332_v17, %v2421_v18  ;;  %v2811_v17 = vld [vmem:[#allocation7] sm:$0x3]  ;;  %v3007_v18 = vld [vmem:[#allocation7 + $0x4] sm:$0x3] }
 0x55f   : > { %v2427_v20 = vpack.c.bf16 %v2426_v19, %v2426_v19  ;;  %v2849_v19 = vld [vmem:[#allocation7 + $0x2] sm:$0x3] }
 0x561   : > { %2504 = vmatmul.bf16.vlgmr.msra.gmra.mxu3 %v2427_v20  ;;  %v6064_v20 = vld [vmem:[%s7464_s28 + $0x78] sm:$0xff]  ;;  %s7474_s28 = sld [smem:[#allocation44_spill]] }
 0x5e4   : > { %v2505_v25 = vpop.f32.mrf.mxu3 }
 0x5e5   : > { %v2506_v28 = vadd.f32 %v6333_v22, %v2505_v25  ;;  %v6072_v22 = vld [vmem:[%s7465_s18 + $0xb8] sm:$0xff]  ;;  %v6055_v25 = vld [vmem:[%s7465_s18 + $0x30] sm:$0xff] }
 0x5e7   : > { %v2509_v30 = vmax.f32 %v2506_v28, 0.0  ;;  %v6078_v28 = vld [vmem:[#allocation8 + $0x28] sm:$0xff] }
 0x5e9   : > { %v2510_v31 = vpack.c.bf16 %v2509_v30, %v2509_v30  ;;  %v6054_v30 = vld [vmem:[%s7465_s18 + $0x28] sm:$0xff] }
 0x5eb   : > { %v2516_v35 = vsel %vm2124_vm5, %v2510_v31, 0  ;;  %v6070_v31 = vld [vmem:[%s7465_s18 + $0xa8] sm:$0xff] }
 0x5ec   : > { %v2507_v36 = vpop.f32.mrf.mxu3  ;;  %2525 = vmatpush.bf16.msrb.mxu0 %v2516_v35  ;;  %2560 = vmatpush.bf16.msrb.mxu2 %v2516_v35 }
 0x5ed   : > { %v6076_v36 = vld [vmem:[#allocation8 + $0x18] sm:$0xff] }
 0x5ef   : > { %5126 = vmatmul.msk.bf16.vlgmr.msrb.gmra.mxu2 %vm2120_vm6, %v2549_v37  ;;  %5125 = vmatmul.msk.bf16.vlgmr.msrb.gmra.mxu0 %vm2120_vm6, %v2511_v38  ;;  %v6060_v37 = vld [vmem:[%s7465_s18 + $0x58] sm:$0xff] }
 0x5f0   : > { %2718 = vmatpush.bf16.msra.mxu2 %v2516_v35  ;;  %2693 = vmatpush.bf16.msra.mxu0 %v6032_v32  ;;  %v6077_v32 = vld [vmem:[#allocation8 + $0x20] sm:$0xff] }
 0x5f1   : > { %v6069_v35 = vld [vmem:[%s7465_s18 + $0xa0] sm:$0xff]  ;;  %v6052_v38 = vld [vmem:[%s7465_s18 + $0x18] sm:$0xff] }
 0x5f4   : > { %2694 = vmatpush.bf16.msra.mxu0 %v6031_v39  ;;  %v6068_v39 = vld [vmem:[%s7465_s18 + $0x98] sm:$0xff] }
 0x5f8   : > { %2695 = vmatpush.bf16.msra.mxu0 %v6030_v42  ;;  %v6059_v42 = vld [vmem:[%s7465_s18 + $0x50] sm:$0xff] }
 0x5fc   : > { %2696 = vmatpush.bf16.msra.mxu0 %v6029_v44  ;;  %v6067_v44 = vld [vmem:[%s7465_s18 + $0x90] sm:$0xff] }
 0x5ff   : > { %5207 = vmatmul.msk.bf16.vlgmr.msra.gmra.mxu2 %vm2120_vm6, %v2707_v47  ;;  %v6050_v47 = vld [vmem:[%s7465_s18 + $0x8] sm:$0xff] }
 0x600   : > { %2697 = vmatpush.bf16.msra.mxu0 %v6028_v46  ;;  %v6058_v46 = vld [vmem:[%s7465_s18 + $0x48] sm:$0xff] }
 0x604   : > { %2698 = vmatpush.bf16.msra.mxu0 %v6027_v48  ;;  %v6066_v48 = vld [vmem:[%s7465_s18 + $0x88] sm:$0xff] }
 0x608   : > { %2699 = vmatpush.bf16.msra.mxu0 %v6026_v49  ;;  %v6073_v49 = vld [vmem:[#allocation8] sm:$0xff] }
 0x60c   : > { %2700 = vmatpush.bf16.msra.mxu0 %v6025_v51  ;;  %v6049_v51 = vld [vmem:[%s7465_s18] sm:$0xff] }
 0x610   : > { %2932 = vmatpush.bf16.msrb.mxu0 %v6064_v20  ;;  %v6095_v20 = vld [vmem:[%s7469_s16 + $0x70] sm:$0xff] }
 0x614   : > { %2933 = vmatpush.bf16.msrb.mxu0 %v6063_v24  ;;  %v6103_v24 = vld [vmem:[%s7469_s16 + $0xb0] sm:$0xff] }
 0x618   : > { %2934 = vmatpush.bf16.msrb.mxu0 %v6062_v29  ;;  %v6102_v29 = vld [vmem:[%s7469_s16 + $0xa8] sm:$0xff] }
 0x61c   : > { %2935 = vmatpush.bf16.msrb.mxu0 %v6061_v33  ;;  %v6108_v33 = vld [vmem:[#allocation10 + $0x18] sm:$0xff] }
 0x620   : > { %2936 = vmatpush.bf16.msrb.mxu0 %v6060_v37  ;;  %v6091_v37 = vld [vmem:[%s7469_s16 + $0x50] sm:$0xff] }
 0x624   : > { %2937 = vmatpush.bf16.msrb.mxu0 %v6059_v42  ;;  %v6082_v42 = vld [vmem:[%s7469_s16 + $0x8] sm:$0xff] }
 0x628   : > { %2938 = vmatpush.bf16.msrb.mxu0 %v6058_v46  ;;  %v6101_v46 = vld [vmem:[%s7469_s16 + $0xa0] sm:$0xff] }
 0x62c   : > { %2939 = vmatpush.bf16.msrb.mxu0 %v6057_v50  ;;  %v6097_v50 = vld [vmem:[%s7469_s16 + $0x80] sm:$0xff] }
 0x66c   : > { %v2527_v57 = vpop.f32.mrf.mxu0 }
 0x66d   : > { %v2531_v59 = vpack.c.bf16 %v2527_v57, %v2527_v57 }
 0x66f   : > { %2701 = vmatmul.bf16.vlgmr.msra.gmra.mxu0 %v2531_v59 }
 0x672   : > { %v2562_v60 = vpop.f32.mrf.mxu2 }
 0x673   : > { %v2566_v61 = vpack.c.bf16 %v2562_v60, %v2562_v60 }
 0x674   : > { %v2529_v62 = vpop.f32.mrf.mxu0 }
 0x675   : > { %2640 = vmatmul.bf16.vlgmr.msra.gmra.mxu1 %v2566_v61 }
 0x67a   : > { %v2564_v63 = vpop.f32.mrf.mxu2 }
 0x682   : > { %v2720_v0 = vpop.f32.mrf.mxu2 }
 0x683   : > { %v2724_v1 = vpack.c.bf16 %v2720_v0, %v2720_v0 }
 0x685   : > { %2798 = vmatmul.bf16.vlgmr.msrb.gmra.mxu3 %v2724_v1 }
 0x68a   : > { %v2722_v2 = vpop.f32.mrf.mxu2 }
 0x6ec   : > { %v2702_v3 = vpop.f32.mrf.mxu0 }
 0x6f2   : > { %v2641_v4 = vpop.f32.mrf.mxu1 }
 0x6f3   : > { %v2703_v7 = vadd.f32 %v2702_v3, %v2641_v4 }
 0x6f4   : > { %v2704_v5 = vpop.f32.mrf.mxu0 }
 0x6fa   : > { %v2643_v6 = vpop.f32.mrf.mxu1 }
 0x708   : > { %v2799_v9 = vpop.f32.mrf.mxu3 }
 0x709   : > { %v2803_v10 = vadd.f32 %v2799_v9, %v2703_v7  ;;  %v6335_v7 = vld [vmem:[%s7466_s26] ss:$0 sm:$0xff]  ;;  %s7475_s26 = smov %s7474_s28 }
 0x70b   : > { %v2808_v11 = vadd.f32 %v6334_v8, %v2803_v10 }
 0x70d   : > { %v2809_v12 = vmax.f32 %v2808_v11, 0.0 }
 0x70f   : > { %v2810_v13 = vpack.c.bf16 %v2809_v12, %v2809_v12 }
 0x710   : > { %v2801_v14 = vpop.f32.mrf.mxu3 }
 0x711   : > { %v2816_v16 = vsel %vm2124_vm5, %v2810_v13, 0  ;;  %v5420_v14 = vld [vmem:[%s7467_s9 + $0x4] sm:$0xf] }
 0x712   : > { %2825 = vmatpush.bf16.msrb.mxu2 %v2816_v16  ;;  %2860 = vmatpush.bf16.msrb.mxu1 %v2816_v16 }
 0x713   : > { %3018 = vmatpush.bf16.msra.mxu3 %v2816_v16  ;;  %v3189_v16 = vld [vmem:[%s7467_s9] sm:$0xf] }
 0x715   : > { %5256 = vmatmul.msk.bf16.vlgmr.msrb.gmra.mxu2 %vm2120_vm6, %v2811_v17  ;;  %5257 = vmatmul.msk.bf16.vlgmr.msrb.gmra.mxu1 %vm2120_vm6, %v2849_v19  ;;  %v6096_v17 = vld [vmem:[%s7468_s7 + $0x78] sm:$0xff]  ;;  %v6111_v19 = vld [vmem:[#allocation10 + $0x30] sm:$0xff]  ;;  %s7476_s7 = sld [smem:[#allocation42_spill]] }
 0x716   : > { %5338 = vmatmul.msk.bf16.vlgmr.msra.gmra.mxu3 %vm2120_vm6, %v3007_v18  ;;  %2993 = vmatpush.bf16.msra.mxu2 %v6056_v21  ;;  %v6088_v18 = vld [vmem:[%s7469_s16 + $0x38] sm:$0xff]  ;;  %v6087_v21 = vld [vmem:[%s7469_s16 + $0x30] sm:$0xff] }
 0x717   : > { %3168 = vmatpush.bf16.msrb.mxu3 %v6080_v15  ;;  %3090 = vmatpush.bf16.msra.mxu1 %v6072_v22  ;;  %v6112_v15 = vld [vmem:[#allocation10 + $0x38] sm:$0xff] }
 0x718   : > { %v6104_v22 = vld [vmem:[%s7469_s16 + $0xb8] sm:$0xff] }
 0x71a   : > { %2994 = vmatpush.bf16.msra.mxu2 %v6055_v25  ;;  %v6094_v25 = vld [vmem:[%s7469_s16 + $0x68] sm:$0xff] }
 0x71b   : > { %3169 = vmatpush.bf16.msrb.mxu3 %v6079_v23  ;;  %3091 = vmatpush.bf16.msra.mxu1 %v6071_v26  ;;  %v6110_v23 = vld [vmem:[#allocation10 + $0x28] sm:$0xff] }
 0x71c   : > { %v6086_v26 = vld [vmem:[%s7469_s16 + $0x28] sm:$0xff] }
 0x71e   : > { %2995 = vmatpush.bf16.msra.mxu2 %v6054_v30  ;;  %v6093_v30 = vld [vmem:[%s7469_s16 + $0x60] sm:$0xff] }
 0x71f   : > { %3170 = vmatpush.bf16.msrb.mxu3 %v6078_v28  ;;  %3092 = vmatpush.bf16.msra.mxu1 %v6070_v31  ;;  %v6109_v28 = vld [vmem:[#allocation10 + $0x20] sm:$0xff] }
 0x720   : > { %v6085_v31 = vld [vmem:[%s7469_s16 + $0x20] sm:$0xff] }
 0x722   : > { %2996 = vmatpush.bf16.msra.mxu2 %v6053_v34  ;;  %v6092_v34 = vld [vmem:[%s7469_s16 + $0x58] sm:$0xff] }
 0x723   : > { %3171 = vmatpush.bf16.msrb.mxu3 %v6077_v32  ;;  %3093 = vmatpush.bf16.msra.mxu1 %v6069_v35  ;;  %v5502_v32 = vld [vmem:[%s7467_s9 + $0x8] sm:$0xf]  ;;  %v6084_v35 = vld [vmem:[%s7469_s16 + $0x18] sm:$0xff] }
 0x726   : > { %2997 = vmatpush.bf16.msra.mxu2 %v6052_v38  ;;  %v6083_v38 = vld [vmem:[%s7469_s16 + $0x10] sm:$0xff] }
 0x727   : > { %3172 = vmatpush.bf16.msrb.mxu3 %v6076_v36  ;;  %3094 = vmatpush.bf16.msra.mxu1 %v6068_v39  ;;  %v6107_v36 = vld [vmem:[#allocation10 + $0x10] sm:$0xff]  ;;  %v6106_v39 = vld [vmem:[#allocation10 + $0x8] sm:$0xff] }
 0x72a   : > { %2998 = vmatpush.bf16.msra.mxu2 %v6051_v43  ;;  %v6105_v43 = vld [vmem:[#allocation10] sm:$0xff] }
 0x72b   : > { %3173 = vmatpush.bf16.msrb.mxu3 %v6075_v41  ;;  %3095 = vmatpush.bf16.msra.mxu1 %v6067_v44  ;;  %v6090_v41 = vld [vmem:[%s7469_s16 + $0x48] sm:$0xff]  ;;  %v6089_v44 = vld [vmem:[%s7469_s16 + $0x40] sm:$0xff] }
 0x72e   : > { %2999 = vmatpush.bf16.msra.mxu2 %v6050_v47  ;;  %v6100_v47 = vld [vmem:[%s7469_s16 + $0x98] sm:$0xff] }
 0x72f   : > { %3174 = vmatpush.bf16.msrb.mxu3 %v6074_v45  ;;  %3096 = vmatpush.bf16.msra.mxu1 %v6066_v48  ;;  %v6081_v45 = vld [vmem:[%s7469_s16] sm:$0xff]  ;;  %v6099_v48 = vld [vmem:[%s7469_s16 + $0x90] sm:$0xff] }
 0x732   : > { %3000 = vmatpush.bf16.msra.mxu2 %v6049_v51 }
 0x733   : > { %3175 = vmatpush.bf16.msrb.mxu3 %v6073_v49  ;;  %3097 = vmatpush.bf16.msra.mxu1 %v6065_v52  ;;  %v6098_v49 = vld [vmem:[%s7469_s16 + $0x88] sm:$0xff] }
 0x736   : > { %3176 = vmatmul.bf16.vlgmr.msrb.gmra.mxu3 %v7127_v27 }
 0x737   : > { %3310 = vmatpush.bf16.msrb.mxu1 %v6096_v17  ;;  %3468 = vmatpush.bf16.msra.mxu3 %v6104_v22  ;;  %v6129_v17 = vld [vmem:[%s7473_s27 + $0x70] sm:$0xff]  ;;  %v6119_v22 = vld [vmem:[%s7473_s27 + $0x28] sm:$0xff] }
 0x73b   : > { %3311 = vmatpush.bf16.msrb.mxu1 %v6095_v20  ;;  %3469 = vmatpush.bf16.msra.mxu3 %v6103_v24  ;;  %v6145_v20 = vld [vmem:[#allocation11 + $0x28] sm:$0xff] }
 0x73c   : > { %v6127_v24 = vld [vmem:[%s7473_s27 + $0x60] sm:$0xff] }
 0x73f   : > { %3312 = vmatpush.bf16.msrb.mxu1 %v6094_v25  ;;  %3470 = vmatpush.bf16.msra.mxu3 %v6102_v29  ;;  %v6118_v25 = vld [vmem:[%s7473_s27 + $0x20] sm:$0xff]  ;;  %v6126_v29 = vld [vmem:[%s7473_s27 + $0x58] sm:$0xff] }
 0x743   : > { %3313 = vmatpush.bf16.msrb.mxu1 %v6093_v30  ;;  %3471 = vmatpush.bf16.msra.mxu3 %v6101_v46  ;;  %v6142_v30 = vld [vmem:[#allocation11 + $0x10] sm:$0xff]  ;;  %v6132_v46 = vld [vmem:[%s7473_s27 + $0x80] sm:$0xff] }
 0x747   : > { %3314 = vmatpush.bf16.msrb.mxu1 %v6092_v34  ;;  %3472 = vmatpush.bf16.msra.mxu3 %v6100_v47  ;;  %v6117_v34 = vld [vmem:[%s7473_s27 + $0x18] sm:$0xff] }
 0x74b   : > { %3315 = vmatpush.bf16.msrb.mxu1 %v6091_v37  ;;  %3473 = vmatpush.bf16.msra.mxu3 %v6099_v48  ;;  %v6116_v37 = vld [vmem:[%s7473_s27 + $0x10] sm:$0xff] }
 0x74f   : > { %3316 = vmatpush.bf16.msrb.mxu1 %v6090_v41  ;;  %3474 = vmatpush.bf16.msra.mxu3 %v6098_v49  ;;  %v6115_v41 = vld [vmem:[%s7473_s27 + $0x8] sm:$0xff] }
 0x753   : > { %3317 = vmatpush.bf16.msrb.mxu1 %v6089_v44  ;;  %3475 = vmatpush.bf16.msra.mxu3 %v6097_v50  ;;  %v6134_v44 = vld [vmem:[%s7473_s27 + $0x90] sm:$0xff] }
 0x792   : > { %v2862_v53 = vpop.f32.mrf.mxu1 }
 0x793   : > { %v2866_v54 = vpack.c.bf16 %v2862_v53, %v2862_v53 }
 0x795   : > { %2940 = vmatmul.bf16.vlgmr.msrb.gmra.mxu0 %v2866_v54 }
 0x798   : > { %v2827_v55 = vpop.f32.mrf.mxu2 }
 0x799   : > { %v2831_v56 = vpack.c.bf16 %v2827_v55, %v2827_v55  ;;  %v3020_v57 = vpop.f32.mrf.mxu3 }
 0x79a   : > { %v3024_v59 = vpack.c.bf16 %v3020_v57, %v3020_v57  ;;  %v2864_v60 = vpop.f32.mrf.mxu1 }
 0x79b   : > { %3001 = vmatmul.bf16.vlgmr.msra.gmra.mxu2 %v2831_v56 }
 0x79c   : > { %3098 = vmatmul.bf16.vlgmr.msra.gmra.mxu1 %v3024_v59 }
 0x7a0   : > { %v2829_v61 = vpop.f32.mrf.mxu2 }
 0x7a1   : > { %v3022_v62 = vpop.f32.mrf.mxu3 }
 0x7b9   : > { %v3177_v27 = vpop.f32.mrf.mxu3 }
 0x7c1   : > { %v3179_v63 = vpop.f32.mrf.mxu3 }
 0x812   : > { %v2941_v0 = vpop.f32.mrf.mxu0 }
 0x819   : > { %v3099_v1 = vpop.f32.mrf.mxu1 }
 0x81a   : > { %v2943_v2 = vpop.f32.mrf.mxu0 }
 0x81e   : > { %v3002_v3 = vpop.f32.mrf.mxu2 }
 0x81f   : > { %v3003_v4 = vadd.f32 %v3002_v3, %v2941_v0 }
 0x821   : > { %v3103_v5 = vadd.f32 %v3099_v1, %v3003_v4  ;;  %v3101_v6 = vpop.f32.mrf.mxu1  ;;  %v6336_v4 = vld [vmem:[%s7470_s1] ss:$0 sm:$0xff]  ;;  %s7477_s1 = sld [smem:[#allocation43_spill]] }
 0x823   : > { %v3181_v8 = vadd.f32 %v3177_v27, %v3103_v5 }
 0x825   : > { %v3186_v9 = vadd.f32 %v6335_v7, %v3181_v8 }
 0x826   : > { %v3004_v10 = vpop.f32.mrf.mxu2 }
 0x827   : > { %v3187_v11 = vmax.f32 %v3186_v9, 0.0  ;;  %s7478_s3 = smov %s7477_s1 }
 0x829   : > { %v3188_v12 = vpack.c.bf16 %v3187_v11, %v3187_v11  ;;  %v6122_v11 = vld [vmem:[%s7471_s2 + $0x8] sm:$0xff]  ;;  %s7479_s2 = sld [smem:[#allocation49_spill]] }
 0x82b   : > { %v3194_v13 = vsel %vm2124_vm5, %v3188_v12, 0  ;;  %v6113_v12 = vld [vmem:[%s7472_s22] sm:$0xff] }
 0x82c   : > { %3203 = vmatpush.bf16.msra.mxu0 %v3194_v13  ;;  %3238 = vmatpush.bf16.msrb.mxu2 %v3194_v13 }
 0x82f   : > { %5421 = vmatmul.msk.bf16.vlgmr.msrb.gmra.mxu2 %vm2120_vm6, %v5420_v14  ;;  %5419 = vmatmul.msk.bf16.vlgmr.msra.gmra.mxu0 %vm2120_vm6, %v3189_v16  ;;  %v6130_v14 = vld [vmem:[%s7473_s27 + $0x78] sm:$0xff]  ;;  %v6146_v16 = vld [vmem:[#allocation11 + $0x30] sm:$0xff] }
 0x830   : > { %3396 = vmatpush.bf16.msra.mxu2 %v3194_v13  ;;  %3371 = vmatpush.bf16.msrb.mxu0 %v6088_v18  ;;  %v6147_v13 = vld [vmem:[#allocation11 + $0x38] sm:$0xff] }
 0x831   : > { %3702 = vmatpush.bf16.msrb.mxu3 %v6130_v14  ;;  %v6120_v18 = vld [vmem:[%s7473_s27 + $0x30] sm:$0xff]  ;;  %v6156_v14 = vld [vmem:[%s7475_s26 + $0x38] sm:$0xff] }
 0x834   : > { %3546 = vmatpush.bf16.msrb.mxu2 %v6112_v15  ;;  %3372 = vmatpush.bf16.msrb.mxu0 %v6087_v21  ;;  %v6121_v15 = vld [vmem:[%s7473_s27 + $0x38] sm:$0xff]  ;;  %v6128_v21 = vld [vmem:[%s7473_s27 + $0x68] sm:$0xff] }
 0x835   : > { %3703 = vmatpush.bf16.msrb.mxu3 %v6129_v17  ;;  %v6148_v17 = vld [vmem:[%s7477_s1] sm:$0xff] }
 0x838   : > { %3547 = vmatpush.bf16.msrb.mxu2 %v6111_v19  ;;  %3373 = vmatpush.bf16.msrb.mxu0 %v6086_v26  ;;  %v6139_v19 = vld [vmem:[%s7473_s27 + $0xb8] sm:$0xff]  ;;  %v6131_v26 = vld [vmem:[%s7472_s22 + $0x10] sm:$0xff] }
 0x839   : > { %3704 = vmatpush.bf16.msrb.mxu3 %v6128_v21  ;;  %v6154_v21 = vld [vmem:[%s7475_s26 + $0x28] sm:$0xff] }
 0x83c   : > { %3548 = vmatpush.bf16.msrb.mxu2 %v6110_v23  ;;  %3374 = vmatpush.bf16.msrb.mxu0 %v6085_v31  ;;  %v6144_v23 = vld [vmem:[#allocation11 + $0x20] sm:$0xff]  ;;  %v6141_v31 = vld [vmem:[#allocation11 + $0x8] sm:$0xff] }
 0x83d   : > { %3705 = vmatpush.bf16.msrb.mxu3 %v6127_v24  ;;  %v6160_v24 = vld [vmem:[%s7475_s26 + $0x50] sm:$0xff] }
 0x83f   : > { %5503 = vmatmul.msk.bf16.vlgmr.msra.gmra.mxu2 %vm2120_vm6, %v5502_v32  ;;  %v6140_v32 = vld [vmem:[#allocation11] sm:$0xff] }
 0x840   : > { %3549 = vmatpush.bf16.msrb.mxu2 %v6109_v28  ;;  %3375 = vmatpush.bf16.msrb.mxu0 %v6084_v35  ;;  %v6143_v28 = vld [vmem:[#allocation11 + $0x18] sm:$0xff] }
 0x841   : > { %3706 = vmatpush.bf16.msrb.mxu3 %v6126_v29  ;;  %v6138_v35 = vld [vmem:[%s7473_s27 + $0xb0] sm:$0xff]  ;;  %v6172_v29 = vld [vmem:[%s7475_s26 + $0xa8] sm:$0xff] }
 0x844   : > { %3550 = vmatpush.bf16.msrb.mxu2 %v6108_v33  ;;  %3376 = vmatpush.bf16.msrb.mxu0 %v6083_v38  ;;  %v6125_v33 = vld [vmem:[%s7473_s27 + $0x50] sm:$0xff]  ;;  %v6137_v38 = vld [vmem:[%s7473_s27 + $0xa8] sm:$0xff] }
 0x845   : > { %3707 = vmatpush.bf16.msrb.mxu3 %v6125_v33  ;;  %v6150_v33 = vld [vmem:[%s7475_s26 + $0x8] sm:$0xff] }
 0x848   : > { %3551 = vmatpush.bf16.msrb.mxu2 %v6107_v36  ;;  %3377 = vmatpush.bf16.msrb.mxu0 %v6082_v42  ;;  %v6124_v36 = vld [vmem:[%s7473_s27 + $0x48] sm:$0xff]  ;;  %v6114_v42 = vld [vmem:[%s7473_s27] sm:$0xff] }
 0x849   : > { %3708 = vmatpush.bf16.msrb.mxu3 %v6124_v36  ;;  %v6169_v36 = vld [vmem:[%s7475_s26 + $0x90] sm:$0xff] }
 0x84c   : > { %3552 = vmatpush.bf16.msrb.mxu2 %v6106_v39  ;;  %3378 = vmatpush.bf16.msrb.mxu0 %v6081_v45  ;;  %v6123_v39 = vld [vmem:[%s7473_s27 + $0x40] sm:$0xff]  ;;  %v6133_v45 = vld [vmem:[%s7473_s27 + $0x88] sm:$0xff] }
 0x84d   : > { %3709 = vmatpush.bf16.msrb.mxu3 %v6123_v39 }
 0x850   : > { %3553 = vmatpush.bf16.msrb.mxu2 %v6105_v43  ;;  %v6135_v43 = vld [vmem:[%s7473_s27 + $0x98] sm:$0xff] }
 0x853   : > { %3554 = vmatmul.bf16.vlgmr.msrb.gmra.mxu2 %v7091_v40 }
 0x854   : > { %3869 = vmatpush.bf16.msra.mxu2 %v6139_v19  ;;  %v6155_v19 = vld [vmem:[%s7475_s26 + $0x30] sm:$0xff] }
 0x858   : > { %3870 = vmatpush.bf16.msra.mxu2 %v6138_v35  ;;  %v6149_v35 = vld [vmem:[%s7475_s26] sm:$0xff] }
 0x85c   : > { %3871 = vmatpush.bf16.msra.mxu2 %v6137_v38  ;;  %v6167_v38 = vld [vmem:[%s7475_s26 + $0x80] sm:$0xff] }
 0x8ac   : > { %v3205_v51 = vpop.f32.mrf.mxu0 }
 0x8ad   : > { %v3209_v52 = vpack.c.bf16 %v3205_v51, %v3205_v51 }
 0x8af   : > { %3379 = vmatmul.bf16.vlgmr.msrb.gmra.mxu0 %v3209_v52 }
 0x8b2   : > { %v3240_v53 = vpop.f32.mrf.mxu2 }
 0x8b3   : > { %v3244_v54 = vpack.c.bf16 %v3240_v53, %v3240_v53 }
 0x8b4   : > { %v3207_v40 = vpop.f32.mrf.mxu0 }
 0x8b5   : > { %3318 = vmatmul.bf16.vlgmr.msrb.gmra.mxu1 %v3244_v54 }
 0x8ba   : > { %v3242_v55 = vpop.f32.mrf.mxu2 }
 0x8c2   : > { %v3398_v56 = vpop.f32.mrf.mxu2 }
 0x8c3   : > { %v3402_v57 = vpack.c.bf16 %v3398_v56, %v3398_v56 }
 0x8c5   : > { %3476 = vmatmul.bf16.vlgmr.msra.gmra.mxu3 %v3402_v57 }
 0x8ca   : > { %v3400_v59 = vpop.f32.mrf.mxu2 }
 0x8d6   : > { %v3555_v60 = vpop.f32.mrf.mxu2 }
 0x8de   : > { %v3557_v61 = vpop.f32.mrf.mxu2 }
 0x92c   : > { %v3380_v62 = vpop.f32.mrf.mxu0 }
 0x932   : > { %v3319_v27 = vpop.f32.mrf.mxu1 }
 0x933   : > { %v3381_v1 = vadd.f32 %v3380_v62, %v3319_v27 }
 0x934   : > { %v3382_v63 = vpop.f32.mrf.mxu0 }
 0x935   : > { %v6165_v63 = vld [vmem:[%s7474_s28 + $0x78] sm:$0xff]  ;;  %s7480_s28 = sld [smem:[#allocation47_spill]] }
 0x93a   : > { %v3321_v0 = vpop.f32.mrf.mxu1 }
 0x948   : > { %v3477_v2 = vpop.f32.mrf.mxu3 }
 0x949   : > { %v3481_v3 = vadd.f32 %v3477_v2, %v3381_v1  ;;  %v6337_v2 = vld [vmem:[%s7476_s7] ss:$0 sm:$0xff]  ;;  %s1214_s7 = sand.u32 1, %s7479_s2  }
 0x94a   : > { %s4597_s1 = sshll.u32 %s1214_s7, 5  ;;  %s4388_s2 = scalar_lea.sflag [#allocation4], %s1214_s7 }
 0x94b   : > { %v3559_v5 = vadd.f32 %v3555_v60, %v3481_v3  ;;  %s1216_s4 = scalar_lea.vmem [#allocation14], %s4597_s1 }
 0x94c   : > { %s4400_s9 = sshll.u32 %s1216_s4, 4  ;;  %s4401_s9 = int_to_ptr.vmem [resolvable:$true] %s4400_s9 }
 0x94d   : > { %v3564_v6 = vadd.f32 %v6336_v4, %v3559_v5  ;;  %v6164_v4 = vld [vmem:[%s7475_s26 + $0x70] sm:$0xff]  ;;  %v6174_v5 = vld [vmem:[%s7475_s26 + $0xb8] sm:$0xff] }
 0x94f   : > { %v3565_v7 = vmax.f32 %v3564_v6, 0.0 }
 0x950   : > { %v3479_v8 = vpop.f32.mrf.mxu3 }
 0x951   : > { %v3566_v9 = vpack.c.bf16 %v3565_v7, %v3565_v7 }
 0x953   : > { %v3578_v10 = vsel %vm1822_vm3, %v3566_v9, 0 }
 0x954   : > { %3587 = vmatpush.bf16.msra.mxu1 %v3578_v10  ;;  %3629 = vmatpush.bf16.msra.mxu0 %v3578_v10 }
 0x957   : > { %5595 = vmatmul.msk.bf16.vlgmr.msra.gmra.mxu0 %vm1818_vm4, %v6122_v11  ;;  %5588 = vmatmul.msk.bf16.vlgmr.msra.gmra.mxu1 %vm1818_vm4, %v6113_v12 }
 0x958   : > { %3796 = vmatpush.bf16.msrb.mxu0 %v3578_v10  ;;  %3764 = vmatpush.bf16.msrb.mxu1 %v6121_v15  ;;  %v6163_v10 = vld [vmem:[%s7475_s26 + $0x68] sm:$0xff] }
 0x95c   : > { %3949 = vmatpush.bf16.msra.mxu0 %v6147_v13  ;;  %3765 = vmatpush.bf16.msrb.mxu1 %v6120_v18  ;;  %v6157_v18 = vld [vmem:[%s7478_s3 + $0x8] sm:$0xff] }
 0x960   : > { %3950 = vmatpush.bf16.msra.mxu0 %v6146_v16  ;;  %3766 = vmatpush.bf16.msrb.mxu1 %v6119_v22  ;;  %v6162_v16 = vld [vmem:[%s7475_s26 + $0x60] sm:$0xff] }
 0x961   : > { %v6153_v22 = vld [vmem:[%s7475_s26 + $0x20] sm:$0xff] }
 0x964   : > { %3951 = vmatpush.bf16.msra.mxu0 %v6145_v20  ;;  %3767 = vmatpush.bf16.msrb.mxu1 %v6118_v25  ;;  %v6161_v20 = vld [vmem:[%s7475_s26 + $0x58] sm:$0xff]  ;;  %v6173_v25 = vld [vmem:[%s7475_s26 + $0xb0] sm:$0xff] }
 0x967   : > { %5682 = vmatmul.msk.bf16.vlgmr.msrb.gmra.mxu0 %vm1818_vm4, %v6131_v26  ;;  %v6152_v26 = vld [vmem:[%s7475_s26 + $0x18] sm:$0xff] }
 0x968   : > { %3952 = vmatpush.bf16.msra.mxu0 %v6144_v23  ;;  %3768 = vmatpush.bf16.msrb.mxu1 %v6117_v34  ;;  %v6166_v23 = vld [vmem:[%s7478_s3 + $0x10] sm:$0xff]  ;;  %v6170_v34 = vld [vmem:[%s7475_s26 + $0x98] sm:$0xff]  ;;  %s7481_s3 = smov %s7480_s28 }
 0x96c   : > { %3953 = vmatpush.bf16.msra.mxu0 %v6143_v28  ;;  %3769 = vmatpush.bf16.msrb.mxu1 %v6116_v37  ;;  %v6159_v28 = vld [vmem:[%s7475_s26 + $0x48] sm:$0xff] }
 0x96d   : > { %v6168_v37 = vld [vmem:[%s7475_s26 + $0x88] sm:$0xff] }
 0x970   : > { %3954 = vmatpush.bf16.msra.mxu0 %v6142_v30  ;;  %3770 = vmatpush.bf16.msrb.mxu1 %v6115_v41  ;;  %v6151_v30 = vld [vmem:[%s7475_s26 + $0x10] sm:$0xff] }
 0x974   : > { %3955 = vmatpush.bf16.msra.mxu0 %v6141_v31  ;;  %3771 = vmatpush.bf16.msrb.mxu1 %v6114_v42  ;;  %v6158_v31 = vld [vmem:[%s7475_s26 + $0x40] sm:$0xff] }
 0x978   : > { %3956 = vmatpush.bf16.msra.mxu0 %v6140_v32  ;;  %v6171_v32 = vld [vmem:[%s7475_s26 + $0xa0] sm:$0xff] }
 0x97b   : > { %3957 = vmatmul.bf16.vlgmr.msra.gmra.mxu0 %v7056_v58  ;;  %v6136_v58 = vld [vmem:[%s7473_s27 + $0xa0] sm:$0xff] }
 0x97c   : > { %3872 = vmatpush.bf16.msra.mxu2 %v6136_v58  ;;  %4273 = vmatpush.bf16.msrb.mxu0 %v6174_v5 }
 0x980   : > { %3873 = vmatpush.bf16.msra.mxu2 %v6135_v43  ;;  %4274 = vmatpush.bf16.msrb.mxu0 %v6173_v25 }
 0x984   : > { %3874 = vmatpush.bf16.msra.mxu2 %v6134_v44  ;;  %4275 = vmatpush.bf16.msrb.mxu0 %v6172_v29 }
 0x988   : > { %3875 = vmatpush.bf16.msra.mxu2 %v6133_v45  ;;  %4276 = vmatpush.bf16.msrb.mxu0 %v6171_v32 }
 0x98c   : > { %3876 = vmatpush.bf16.msra.mxu2 %v6132_v46  ;;  %4277 = vmatpush.bf16.msrb.mxu0 %v6170_v34 }
 0x990   : > { %4106 = vmatpush.bf16.msrb.mxu2 %v6165_v63  ;;  %4278 = vmatpush.bf16.msrb.mxu0 %v6169_v36  ;;  %v4296_v63 = vld [vmem:[%s7432_s6 + $0x8] sm:$0xff] }
 0x994   : > { %4107 = vmatpush.bf16.msrb.mxu2 %v6164_v4  ;;  %4279 = vmatpush.bf16.msrb.mxu0 %v6168_v37 }
 0x998   : > { %4108 = vmatpush.bf16.msrb.mxu2 %v6163_v10  ;;  %4280 = vmatpush.bf16.msrb.mxu0 %v6167_v38 }
 0x99c   : > { %4109 = vmatpush.bf16.msrb.mxu2 %v6162_v16 }
 0x9a0   : > { %4110 = vmatpush.bf16.msrb.mxu2 %v6161_v20 }
 0x9a4   : > { %4111 = vmatpush.bf16.msrb.mxu2 %v6160_v24 }
 0x9a8   : > { %4112 = vmatpush.bf16.msrb.mxu2 %v6159_v28 }
 0x9ac   : > { %4113 = vmatpush.bf16.msrb.mxu2 %v6158_v31 }
 0x9d4   : > { %v3631_v47 = vpop.f32.mrf.mxu0  ;;  %v3589_v48 = vpop.f32.mrf.mxu1 }
 0x9dc   : > { %v3633_v49 = vpop.f32.mrf.mxu0  ;;  %v3591_v50 = vpop.f32.mrf.mxu1 }
 0x9dd   : > { %v3636_v51 = vpack.c.bf16 %v3633_v49, %v3631_v47  ;;  %v3594_v52 = vpack.c.bf16 %v3591_v50, %v3589_v48 }
 0x9df   : > { %3710 = vmatmul.bf16.vlgmr.msrb.gmra.mxu3 %v3636_v51  ;;  %3772 = vmatmul.bf16.vlgmr.msrb.gmra.mxu1 %v3594_v52 }
 0x9e4   : > { %v3798_v53 = vpop.f32.mrf.mxu0 }
 0x9ec   : > { %v3800_v54 = vpop.f32.mrf.mxu0 }
 0x9ed   : > { %v3803_v40 = vpack.c.bf16 %v3800_v54, %v3798_v53 }
 0x9ef   : > { %3877 = vmatmul.bf16.vlgmr.msra.gmra.mxu2 %v3803_v40 }
 0x9f8   : > { %v3958_v57 = vpop.f32.mrf.mxu0 }
 0xa00   : > { %v3960_v7 = vpop.f32.mrf.mxu0 }
 0xa5c   : > { %v3773_v56 = vpop.f32.mrf.mxu1 }
 0xa62   : > { %v3711_v55 = vpop.f32.mrf.mxu3 }
 0xa63   : > { %v3774_v60 = vadd.f32 %v3773_v56, %v3711_v55  ;;  %v4341_v55 = vld [vmem:[%s7430_s12 + $0x8] sm:$0xff]  ;;  %v4340_v56 = vld [vmem:[%s7430_s12] sm:$0xff] }
 0xa64   : > { %v3775_v27 = vpop.f32.mrf.mxu1  ;;  %4368 = vmatpush.msra.mxu2 %v4341_v55 }
 0xa66   : > { %4369 = vmatpush.msra.mxu2 %v4340_v56 }
 0xa6a   : > { %v3713_v62 = vpop.f32.mrf.mxu3 }
 0xa6b   : > { %v3776_v0 = vadd.f32 %v3775_v27, %v3713_v62  ;;  %v4295_v27 = vld [vmem:[%s7432_s6] sm:$0xff] }
 0xa72   : > { %v3878_v59 = vpop.f32.mrf.mxu2 }
 0xa73   : > { %v3883_v61 = vadd.f32 %v3878_v59, %v3774_v60  ;;  %v6338_v59 = vld [vmem:[#allocation13] ss:$0 sm:$0xff] }
 0xa75   : > { %v3963_v1 = vadd.f32 %v3958_v57, %v3883_v61 }
 0xa77   : > { %v3969_v8 = vadd.f32 %v6337_v2, %v3963_v1  ;;  %v4298_v1 = vld [vmem:[%s7432_s6 + $0x18] sm:$0xff] }
 0xa79   : > { %v3971_v12 = vmax.f32 %v3969_v8, 0.0 }
 0xa7a   : > { %v3880_v3 = vpop.f32.mrf.mxu2 }
 0xa7b   : > { %v3884_v6 = vadd.f32 %v3880_v3, %v3776_v0  ;;  %v4297_v0 = vld [vmem:[%s7432_s6 + $0x10] sm:$0xff]  ;;  %s6175_s6 = sshll.u32 %s6889_s0, 5  ;;  %s6569_s0 = scalar_lea.hbm %s7481_s3, 64 }
 0xa7c   : > { %s4399_s8 = scalar_lea.hbm %s7480_s28, %s6175_s6 }
 0xa7d   : > { %v3964_v9 = vadd.f32 %v3960_v7, %v3884_v6  ;;  %s4402_s10 = sshll.u32 %s4399_s8, 4  ;;  %s4403_s10 = int_to_ptr.hbm [resolvable:$true] %s4402_s10 }
 0xa7e   : > { %s6563_s1 = sshra.s32 %s4403_s10, 4  ;;  %s6564_s1 = int_to_ptr.hbm [resolvable:$true] %s6563_s1 }
 0xa7f   : > { %v3970_v11 = vadd.f32 %v6337_v2, %v3964_v9  ;;  %s6565_s11 = scalar_lea.hbm %s6564_s1, 32  ;;  %p6570_p1 = scmp.lt.s32.totalorder %s6564_s1, %s7481_s3 }
 0xa80   : > { %p6566_p9 = scmp.ne.s32.totalorder %s6564_s1, %s6565_s11  ;;  %p6571_p2 = scmp.lt.s32.totalorder %s6569_s0, %s6565_s11 }
 0xa81   : > { %v3972_v13 = vmax.f32 %v3970_v11, 0.0 }
 0xa82   : > { %p6567_p12 = pnand %p6566_p9, %p6906_p5  ;;  %p6572_p3 = por %p6571_p2, %p6570_p1 }
 0xa83   : > { %v3973_v15 = vpack.c.bf16 %v3972_v13, %v3971_v12 }
 0xa84   : > { %p6568_p0 = pneg %p6567_p12 }
 0xa85   : > { %3991 = vmatpush.bf16.msra.mxu3 %v3973_v15  ;;  %4033 = vmatpush.bf16.msra.mxu1 %v3973_v15 }
 0xa86   : > { %p6573_p4 = pnand %p6572_p3, %p6568_p0 }
 0xa88   : > { %5767 = vmatmul.msk.bf16.vlgmr.msra.gmra.mxu3 %vm1520_vm2, %v6148_v17  ;;  %5774 = vmatmul.msk.bf16.vlgmr.msra.gmra.mxu1 %vm1520_vm2, %v6157_v18 }
 0xa89   : > { %4200 = vmatpush.bf16.msrb.mxu1 %v3973_v15  ;;  %4168 = vmatpush.bf16.msrb.mxu3 %v6156_v14 }
 0xa8d   : > { %4169 = vmatpush.bf16.msrb.mxu3 %v6155_v19 }
 0xa91   : > { %4170 = vmatpush.bf16.msrb.mxu3 %v6154_v21 }
 0xa95   : > { %4171 = vmatpush.bf16.msrb.mxu3 %v6153_v22 }
 0xa98   : > { %5861 = vmatmul.msk.bf16.vlgmr.msrb.gmra.mxu1 %vm1520_vm2, %v6166_v23 }
 0xa99   : > { %4172 = vmatpush.bf16.msrb.mxu3 %v6152_v26 }
 0xa9d   : > { %4173 = vmatpush.bf16.msrb.mxu3 %v6151_v30 }
 0xaa1   : > { %4174 = vmatpush.bf16.msrb.mxu3 %v6150_v33 }
 0xaa5   : > { %4175 = vmatpush.bf16.msrb.mxu3 %v6149_v35 }
 0xb05   : > { %v4035_v39 = vpop.f32.mrf.mxu1 }
 0xb0b   : > { %v3993_v41 = vpop.f32.mrf.mxu3 }
 0xb0d   : > { %v4037_v58 = vpop.f32.mrf.mxu1 }
 0xb0e   : > { %v4040_v42 = vpack.c.bf16 %v4037_v58, %v4035_v39 }
 0xb10   : > { %4114 = vmatmul.bf16.vlgmr.msrb.gmra.mxu2 %v4040_v42 }
 0xb13   : > { %v3995_v43 = vpop.f32.mrf.mxu3 }
 0xb14   : > { %v3998_v44 = vpack.c.bf16 %v3995_v43, %v3993_v41 }
 0xb15   : > { %v4202_v45 = vpop.f32.mrf.mxu1 }
 0xb16   : > { %4176 = vmatmul.bf16.vlgmr.msrb.gmra.mxu3 %v3998_v44 }
 0xb1d   : > { %v4204_v46 = vpop.f32.mrf.mxu1 }
 0xb1e   : > { %v4207_v47 = vpack.c.bf16 %v4204_v46, %v4202_v45 }
 0xb20   : > { %4281 = vmatmul.bf16.vlgmr.msrb.gmra.mxu0 %v4207_v47 }
 0xb93   : > { %v4115_v48 = vpop.f32.mrf.mxu2 }
 0xb99   : > { %v4177_v49 = vpop.f32.mrf.mxu3 }
 0xb9a   : > { %v4178_v53 = vadd.f32 %v4177_v49, %v4115_v48 }
 0xb9b   : > { %v4117_v52 = vpop.f32.mrf.mxu2 }
 0xb9d   : > { %v4282_v50 = vpop.f32.mrf.mxu0 }
 0xb9e   : > { %v4287_v57 = vadd.f32 %v4282_v50, %v4178_v53 }
 0xba0   : > { %v4293_v62 = vadd.f32 %v6338_v59, %v4287_v57 }
 0xba1   : > { %v4179_v51 = vpop.f32.mrf.mxu3 }
 0xba2   : > { %v4180_v54 = vadd.f32 %v4179_v51, %v4117_v52 }
 0xba5   : > { %v4284_v40 = vpop.f32.mrf.mxu0 }
 0xba6   : > { %v4288_v60 = vadd.f32 %v4284_v40, %v4180_v54 }
 0xba8   : > { %v4294_v61 = vadd.f32 %v6338_v59, %v4288_v60 }
 0xbaa   : > { %4325 = vmatpush.msra.mxu1 %v4294_v61 }
 0xbac   : > { %4326 = vmatpush.msra.mxu1 %v4293_v62 }
 0xbad   : > { %5910 = vmatmul.msk.f32.vlgmr.msra.gmra.mxu1 %vm1520_vm2, %v4295_v27 }
 0xbb5   : > { %5911 = vmatmul.msk.f32.gmra.mxu1 %vm1520_vm2, %v4296_v63 }
 0xbbd   : > { %5912 = vmatmul.msk.f32.gmra.mxu1 %vm1520_vm2, %v4297_v0 }
 0xbc5   : > { %5913 = vmatmul.msk.f32.gmra.mxu1 %vm1520_vm2, %v4298_v1 }
 0xc2a   : > { %v4328_v2 = vpop.f32.mrf.mxu1 }
 0xc2b   : > { %5914 = vmatmul.msk.f32.vlgmr.msra.gmra.mxu2 %vm1520_vm2, %v4328_v2 }
 0xc32   : > { %v4331_v3 = vpop.f32.mrf.mxu1 }
 0xc33   : > { %5915 = vmatmul.msk.f32.gmra.mxu2 %vm1520_vm2, %v4331_v3 }
 0xc3a   : > { %v4334_v4 = vpop.f32.mrf.mxu1 }
 0xc3b   : > { %5916 = vmatmul.msk.f32.gmra.mxu2 %vm1520_vm2, %v4334_v4 }
 0xc42   : > { %v4337_v5 = vpop.f32.mrf.mxu1 }
 0xc43   : > { %5917 = vmatmul.msk.f32.gmra.mxu2 %vm1520_vm2, %v4337_v5 }
 0xcae   : > { %v4371_v6 = vpop.f32.mrf.mxu2 }
 0xcaf   : > { %4383 = vst.msk [vmem:[%s1216_s4] sm:$0xff] %vm1239_vm0, %v4371_v6 }
 0xcb6   : > { %v4374_v7 = vpop.f32.mrf.mxu2 }
 0xcb7   : > { %4384 = vst.msk [vmem:[%s1216_s4 + $0x8] sm:$0xff] %vm1239_vm0, %v4374_v7 }
 0xcbe   : > { %v4377_v8 = vpop.f32.mrf.mxu2 }
 0xcbf   : > { %4385 = vst.msk [vmem:[%s1216_s4 + $0x10] sm:$0xff] %vm1239_vm0, %v4377_v8 }
 0xcc6   : > { %v4380_v9 = vpop.f32.mrf.mxu2 }
 0xcc7   : > { %4386 = vst.msk [vmem:[%s1216_s4 + $0x18] sm:$0xff] %vm1239_vm0, %v4380_v9 }
 0xcc8   : > { %6576 = shalt.err (!%p6573_p4)
}
 0xcc9   : > { %s6676_s8 = smov 128   ;;  %s6677_s6 = smov 8  }
 0xcca   : > { %6204 = dma.vmem_to_hbm [thread:$0]  (%p6906_p5), %s4401_s9, 512, %s4403_s10, %s4388_s2, %s6676_s8, %s6676_s8, %s6677_s6  }
 0xccb PF: > { %s7483_s4 = sld [smem:[#allocation51_spill]] }
 0xccc   : > { %s7484_s28 = sld [smem:[#allocation48_spill]] }
 0xcd1   : > { %p6246_p7 = scmp.ge.s32.totalorder %s7483_s4, 2 }
 0xcd2   : > { %s4417_s12 = sand.u32 1, %s7484_s28  }
 0xcd3   : > { %p6229_p8 = pnand %p6246_p7, %p6910_p6  ;;  %s4418_s13 = scalar_lea.sflag [#allocation4], %s4417_s12 }
 0xcd5   : > { %p6230_p11 = pneg %p6229_p8 }
 0xcd7   : > { %6610 = dma.done.wait (%p6230_p11), %s4418_s13, 512  }
 0xcd8   : > { %6612 = vsyncadd (%p6230_p11), %s4418_s13, 4294966784  ;;  %s7486_s7 = sld [smem:[#allocation52_spill]] }
 0xcd9   : > { %s7487_s28 = sld [smem:[#allocation49_spill]] }
 0xcda   : > { %s7488_s1 = sld [smem:[#allocation50_spill]] }
 0xcdb   : > { %s7489_s2 = sld [smem:[#allocation53_spill]] }
 0xcde   : > { %p87_p13 = scmp.ge.s32.totalorder %s7486_s7, 4  }
 0xce0   :  { %89 = sbr.rel (!%p87_p13) target bundleno = 86 (0x56), region = 303 }
 0xce5   :  { %4424 = vsyncpa [#allocation3], 1 }
 0xce6   :  { %4426 = vsyncpa [#allocation3 + $0x1], 1 }
 0xce7   :  { %4427 = vsyncpa [#allocation6], 1 }
 0xce8   :  { %4428 = vsyncpa [#allocation9], 1 }
 0xce9   :  { %4429 = vsyncpa [#allocation12], 1 }
 0xcea   :  { %4430 = vsyncpa [#allocation4], 1 }
 0xceb   :  { %4432 = vsyncpa [#allocation4 + $0x1], 1 }

</bundles_post_ra>
